<compile_context>
chip_gen: v7x
topology: tpu7x:2x2x1
jax: 0.10.0
libtpu: 0.0.40
codegen_flags: <defaults>
</compile_context>

<pallas_src>
import jax
import jax.numpy as jnp
from jax import lax
from jax.experimental import pallas as pl
from jax.experimental.pallas import tpu as pltpu


def _round_up(x, m):
    return ((x + m - 1) // m) * m


# ----------------------------------------------------------------------------- #
# Fused encoder kernel (all layers + LayerNorm, one grid step per batch shard)
# ----------------------------------------------------------------------------- #
def _make_encoder_kernel(num_layers, T, Bs, H, Hg, chunks, n_slots, mxu_dtype):
    H3g = 3 * Hg
    H4g = 4 * Hg
    n_chunks = len(chunks)
    has_seq = num_layers >= 2
    inv_h = 1.0 / float(H)

    def kernel(*refs):
        # refs: x, (wih_t, whh_t, bias) * L, gamma, beta | y, hid_ln, cell | gx_sc[, seq_sc]
        x_ref = refs[0]
        w_refs = refs[1:1 + 3 * num_layers]
        gamma_ref = refs[1 + 3 * num_layers]
        beta_ref = refs[2 + 3 * num_layers]
        y_ref = refs[3 + 3 * num_layers]
        hid_ref = refs[4 + 3 * num_layers]
        cell_ref = refs[5 + 3 * num_layers]
        gx_sc = refs[6 + 3 * num_layers]
        seq_sc = refs[7 + 3 * num_layers] if has_seq else None

        for l in range(num_layers):
            wih_ref = w_refs[3 * l + 0]   # (Din_l, 4Hg) mxu_dtype, gate order [i, f, o, g]
            whh_ref = w_refs[3 * l + 1]   # (Hg,    4Hg) mxu_dtype
            bias_ref = w_refs[3 * l + 2]  # (1,     4Hg) f32, b_ih + b_hh (zero in padded lanes)
            last_layer = (l == num_layers - 1)

            # Phase 1 (per chunk): hoisted input projection — one row-dense MXU matmul.
            def compute_gx(chunk_idx, l=l, wih_ref=wih_ref, bias_ref=bias_ref):
                c0, csz = chunks[chunk_idx]
                rows = csz * Bs
                slot = chunk_idx % n_slots
                if l == 0:
                    xin = x_ref[pl.ds(c0 * Bs, rows), :]
                else:
                    xin = seq_sc[pl.ds(c0 * Bs, rows), :]
                gx_sc[slot, pl.ds(0, rows), :] = (
                    jnp.dot(xin, wih_ref[...], preferred_element_type=jnp.float32)
                    + bias_ref[...])

            compute_gx(0)

            # h / c state stays f32; only the matmul operands are cast to mxu_dtype.
            h = jnp.zeros((Bs, Hg), jnp.float32)
            c = jnp.zeros((Bs, Hg), jnp.float32)

            for chunk_idx, (c0, csz) in enumerate(chunks):
                # Double-buffer: issue the NEXT chunk's projection matmul before the serial
                # recurrence over the current chunk so the scheduler can overlap them.
                if chunk_idx + 1 < n_chunks:
                    compute_gx(chunk_idx + 1)
                slot = chunk_idx % n_slots

                # Phase 2: serial recurrence — only h @ W_hh per step (W_hh streamed from VMEM).
                def step(t, carry, c0=c0, slot=slot, last_layer=last_layer, whh_ref=whh_ref):
                    h, c = carry
                    gx_off = pl.multiple_of(t * Bs, Bs)
                    gates = gx_sc[slot, pl.ds(gx_off, Bs), :] + jnp.dot(
                        h.astype(mxu_dtype), whh_ref[...],
                        preferred_element_type=jnp.float32)          # (Bs, 4Hg) f32
                    sig = jax.nn.sigmoid(gates[:, :H3g])             # i, f, o — contiguous slab
                    i_g = sig[:, 0:Hg]
                    f_g = sig[:, Hg:2 * Hg]
                    o_g = sig[:, 2 * Hg:H3g]
                    g_g = jnp.tanh(gates[:, H3g:H4g])
                    c_new = f_g * c + i_g * g_g                      # padded lanes stay exactly 0
                    h_new = o_g * jnp.tanh(c_new)
                    out_off = pl.multiple_of(c0 * Bs + t * Bs, Bs)
                    if last_layer:
                        # Lane-dense direct write of the encoder output (no trailing copy).
                        y_ref[pl.ds(out_off, Bs), :] = h_new.astype(y_ref.dtype)
                    else:
                        seq_sc[pl.ds(out_off, Bs), :] = h_new.astype(seq_sc.dtype)
                    return h_new, c_new

                unroll = csz if csz <= 16 else 8
                h, c = lax.fori_loop(0, csz, step, (h, c), unroll=unroll)

            # Final states, written exactly once per layer.
            cell_ref[l] = c.astype(cell_ref.dtype)

            # Fused LayerNorm of the final hidden state (eps = 1e-5, like nn.LayerNorm).
            # Padded lanes of h are exactly zero, so sum / sum-of-squares over the padded
            # width are correct once rescaled by 1/H (E[x^2] - mean^2 formulation).
            mean = jnp.sum(h, axis=-1, keepdims=True) * inv_h
            ex2 = jnp.sum(h * h, axis=-1, keepdims=True) * inv_h
            var = ex2 - mean * mean
            h_ln = (h - mean) * lax.rsqrt(var + 1e-5) * gamma_ref[...] + beta_ref[...]
            hid_ref[l] = h_ln.astype(hid_ref.dtype)

    return kernel


# ----------------------------------------------------------------------------- #
# Weight preparation: PyTorch gate order [i, f, g, o] -> lane-aligned [i, f, o, g] slabs
# ----------------------------------------------------------------------------- #
def _prep_layer_weights(w_ih, w_hh, b_ih, b_hh, H, Hg, in_pad, mxu_dtype):
    def gate_blocks(w):
        i, f, g, o = jnp.split(w, 4, axis=0)
        return [i, f, o, g]                       # sigmoid gates contiguous, tanh gate last

    d_in = w_ih.shape[1]
    wih_t = jnp.zeros((in_pad, 4 * Hg), jnp.float32)
    for gi, gw in enumerate(gate_blocks(w_ih.astype(jnp.float32))):
        wih_t = wih_t.at[:d_in, gi * Hg:gi * Hg + H].set(gw.T)

    whh_t = jnp.zeros((Hg, 4 * Hg), jnp.float32)
    for gi, gw in enumerate(gate_blocks(w_hh.astype(jnp.float32))):
        whh_t = whh_t.at[:H, gi * Hg:gi * Hg + H].set(gw.T)

    bias = jnp.zeros((1, 4 * Hg), jnp.float32)
    for gi, gb in enumerate(gate_blocks((b_ih + b_hh).astype(jnp.float32))):
        bias = bias.at[0, gi * Hg:gi * Hg + H].set(gb)

    return wih_t.astype(mxu_dtype), whh_t.astype(mxu_dtype), bias


# ----------------------------------------------------------------------------- #
# Encoder_bones forward
# ----------------------------------------------------------------------------- #
def encoder_bones_forward(x, params, *, mxu_dtype=jnp.float32, gx_chunk=64):
    """x: (B, T, input_size). Returns (output, (layernorm(hidden), cell)) like the nn.Module."""
    B, T, D = x.shape
    lstm_params = params["lstm"]
    L = len(lstm_params)
    H = lstm_params[0][1].shape[1]               # w_hh: (4H, H)
    Hg = _round_up(H, 128)                       # lane-aligned gate / hidden width
    dtype = x.dtype

    # Megacore batch sharding: grid over shards, each a sublane multiple of rows.
    n_shards = 2 if B > 8 else 1
    Bp = _round_up(B, 8 * n_shards)
    Bs = Bp // n_shards

    # Time-chunked hoisted input projection (bounds gx scratch; 2 slots when >1 chunk).
    CHUNK = max(1, min(T, int(gx_chunk)))
    chunks = [(c0, min(CHUNK, T - c0)) for c0 in range(0, T, CHUNK)]
    n_slots = 2 if len(chunks) > 1 else 1

    # One transpose to per-shard time-major layout; padded batch rows are zeros.
    x_p = jnp.pad(x, ((0, Bp - B), (0, 0), (0, 0)))
    x_sh = (x_p.reshape(n_shards, Bs, T, D)
            .transpose(0, 2, 1, 3)
            .reshape(n_shards, T * Bs, D)
            .astype(mxu_dtype))

    flat_w = []
    for li, (w_ih, w_hh, b_ih, b_hh) in enumerate(lstm_params):
        in_pad = w_ih.shape[1] if li == 0 else Hg
        flat_w += list(_prep_layer_weights(w_ih, w_hh, b_ih, b_hh, H, Hg, in_pad, mxu_dtype))

    gamma = jnp.zeros((1, Hg), jnp.float32).at[0, :H].set(params["ln_gamma"].astype(jnp.float32))
    beta = jnp.zeros((1, Hg), jnp.float32).at[0, :H].set(params["ln_beta"].astype(jnp.float32))

    kernel = _make_encoder_kernel(L, T, Bs, H, Hg, chunks, n_slots, mxu_dtype)

    in_specs = [pl.BlockSpec((None, T * Bs, D), lambda s: (s, 0, 0))]
    for w in flat_w:
        in_specs.append(pl.BlockSpec(w.shape, lambda s: (0, 0)))
    in_specs += [pl.BlockSpec((1, Hg), lambda s: (0, 0)),
                 pl.BlockSpec((1, Hg), lambda s: (0, 0))]

    out_specs = (pl.BlockSpec((None, T * Bs, Hg), lambda s: (s, 0, 0)),
                 pl.BlockSpec((None, L, Bs, Hg), lambda s: (s, 0, 0, 0)),
                 pl.BlockSpec((None, L, Bs, Hg), lambda s: (s, 0, 0, 0)))
    out_shape = (jax.ShapeDtypeStruct((n_shards, T * Bs, Hg), dtype),
                 jax.ShapeDtypeStruct((n_shards, L, Bs, Hg), dtype),
                 jax.ShapeDtypeStruct((n_shards, L, Bs, Hg), dtype))

    scratch_shapes = [pltpu.VMEM((n_slots, CHUNK * Bs, 4 * Hg), jnp.float32)]
    if L >= 2:
        scratch_shapes.append(pltpu.VMEM((T * Bs, Hg), mxu_dtype))

    # VMEM budget sized from the actual working set (double-buffered I/O blocks, resident
    # weights, scratch) with generous slack, instead of relying on the default scoped limit.
    def nbytes(shape, dt):
        n = 1
        for s in shape:
            n *= int(s)
        return n * jnp.dtype(dt).itemsize

    working = 2 * nbytes((T * Bs, D), mxu_dtype)
    working += 2 * sum(nbytes(w.shape, w.dtype) for w in flat_w)
    working += 2 * 2 * nbytes((1, Hg), jnp.float32)
    working += 2 * (nbytes((T * Bs, Hg), dtype) + 2 * nbytes((L, Bs, Hg), dtype))
    working += nbytes((n_slots, CHUNK * Bs, 4 * Hg), jnp.float32)
    if L >= 2:
        working += nbytes((T * Bs, Hg), mxu_dtype)
    vmem_limit = int(min(max(working + working // 2 + (8 << 20), 32 << 20), 128 << 20))

    y_sh, hid_sh, cell_sh = pl.pallas_call(
        kernel,
        grid=(n_shards,),
        in_specs=in_specs,
        out_specs=out_specs,
        out_shape=out_shape,
        scratch_shapes=scratch_shapes,
        compiler_params=pltpu.CompilerParams(
            dimension_semantics=("parallel",),
            vmem_limit_bytes=vmem_limit),
    )(x_sh, *flat_w, gamma, beta)

    y = (y_sh.reshape(n_shards, T, Bs, Hg)
         .transpose(0, 2, 1, 3)
         .reshape(Bp, T, Hg)[:B, :, :H])
    hid = hid_sh.transpose(1, 0, 2, 3).reshape(L, Bp, Hg)[:, :B, :H]
    cell = cell_sh.transpose(1, 0, 2, 3).reshape(L, Bp, Hg)[:, :B, :H]
    return y, (hid, cell)


# ----------------------------------------------------------------------------- #
# Pure-JAX reference (mirrors torch.nn.LSTM + nn.LayerNorm semantics)
# ----------------------------------------------------------------------------- #
def encoder_bones_reference(x, params):
    B, T, _ = x.shape
    out = x
    h_list, c_list = [], []
    for (w_ih, w_hh, b_ih, b_hh) in params["lstm"]:
        H = w_hh.shape[1]
        h = jnp.zeros((B, H), jnp.float32)
        c = jnp.zeros((B, H), jnp.float32)
        ys = []
        for t in range(T):
            gates = out[:, t, :] @ w_ih.T + b_ih + h @ w_hh.T + b_hh
            i = jax.nn.sigmoid(gates[:, 0 * H:1 * H])
            f = jax.nn.sigmoid(gates[:, 1 * H:2 * H])
            g = jnp.tanh(gates[:, 2 * H:3 * H])
            o = jax.nn.sigmoid(gates[:, 3 * H:4 * H])
            c = f * c + i * g
            h = o * jnp.tanh(c)
            ys.append(h)
        out = jnp.stack(ys, axis=1)
        h_list.append(h)
        c_list.append(c)
    hidden = jnp.stack(h_list, 0)
    cell = jnp.stack(c_list, 0)
    mean = jnp.mean(hidden, -1, keepdims=True)
    var = jnp.mean((hidden - mean) ** 2, -1, keepdims=True)
    hidden_ln = (hidden - mean) * lax.rsqrt(var + 1e-5) * params["ln_gamma"] + params["ln_beta"]
    return out, (hidden_ln, cell)


# ----------------------------------------------------------------------------- #
def init_params(key, input_size, hidden_size, num_layers):
    params = {"lstm": []}
    scale = 1.0 / jnp.sqrt(hidden_size)
    for layer in range(num_layers):
        d_in = input_size if layer == 0 else hidden_size
        key, k1, k2, k3, k4 = jax.random.split(key, 5)
        w_ih = jax.random.uniform(k1, (4 * hidden_size, d_in), jnp.float32, -scale, scale)
        w_hh = jax.random.uniform(k2, (4 * hidden_size, hidden_size), jnp.float32, -scale, scale)
        b_ih = jax.random.uniform(k3, (4 * hidden_size,), jnp.float32, -scale, scale)
        b_hh = jax.random.uniform(k4, (4 * hidden_size,), jnp.float32, -scale, scale)
        params["lstm"].append((w_ih, w_hh, b_ih, b_hh))
    # nn.LayerNorm default init: weight = 1, bias = 0
    params["ln_gamma"] = jnp.ones((hidden_size,), jnp.float32)
    params["ln_beta"] = jnp.zeros((hidden_size,), jnp.float32)
    return params


if __name__ == "__main__":
    input_size, hidden_size, num_layers = 16, 32, 2
    batch, seq = 2, 8

    key = jax.random.PRNGKey(0)
    key, kx = jax.random.split(key)
    x = jax.random.normal(kx, (batch, seq, input_size), jnp.float32)
    params = init_params(key, input_size, hidden_size, num_layers)

    out_r, (hid_r, cell_r) = encoder_bones_reference(x, params)

    # 1) f32 MXU path — tight agreement with the f32 reference.
    out, (hid, cell) = encoder_bones_forward(x, params)
    jax.block_until_ready((out, hid, cell))
    assert out.shape == (batch, seq, hidden_size)
    assert hid.shape == (num_layers, batch, hidden_size)
    assert cell.shape == (num_layers, batch, hidden_size)
    assert jnp.allclose(out, out_r, atol=1e-4, rtol=1e-4)
    assert jnp.allclose(hid, hid_r, atol=1e-4, rtol=1e-4)
    assert jnp.allclose(cell, cell_r, atol=1e-4, rtol=1e-4)

    # 2) chunked + double-buffered input projection path (same math, split along rows).
    out_c, (hid_c, cell_c) = encoder_bones_forward(x, params, gx_chunk=4)
    jax.block_until_ready((out_c, hid_c, cell_c))
    assert jnp.allclose(out_c, out_r, atol=1e-4, rtol=1e-4)
    assert jnp.allclose(hid_c, hid_r, atol=1e-4, rtol=1e-4)
    assert jnp.allclose(cell_c, cell_r, atol=1e-4, rtol=1e-4)

    # 3) bf16 MXU path (halved weight residency, native MXU dtype); h/c stay f32.
    #    Looser tolerances: bf16-rounded weights/activations vs the f32 reference, and
    #    LayerNorm amplifies hidden-state rounding by ~1/std.
    out_b, (hid_b, cell_b) = encoder_bones_forward(x, params, mxu_dtype=jnp.bfloat16)
    jax.block_until_ready((out_b, hid_b, cell_b))
    assert jnp.allclose(out_b, out_r, atol=5e-2, rtol=5e-2)
    assert jnp.allclose(cell_b, cell_r, atol=5e-2, rtol=5e-2)
    assert jnp.allclose(hid_b, hid_r, atol=2.5e-1, rtol=1e-1)

    # 4) batch-sharded (2-shard "parallel" grid / megacore) path, f32.
    key, kx2 = jax.random.split(key)
    x2 = jax.random.normal(kx2, (18, seq, input_size), jnp.float32)
    out2_r, (hid2_r, cell2_r) = encoder_bones_reference(x2, params)
    out2, (hid2, cell2) = encoder_bones_forward(x2, params)
    jax.block_until_ready((out2, hid2, cell2))
    assert out2.shape == (18, seq, hidden_size)
    assert jnp.allclose(out2, out2_r, atol=1e-4, rtol=1e-4)
    assert jnp.allclose(hid2, hid2_r, atol=1e-4, rtol=1e-4)
    assert jnp.allclose(cell2, cell2_r, atol=1e-4, rtol=1e-4)

    print("KERNEL_OK")
</pallas_src>

<mosaic_0001>
module attributes {stable_mosaic.version = 11 : i64} {
  func.func @kernel(%arg0: i32, %arg1: memref<1x64x16xf32, #tpu.memory_space<vmem>>, %arg2: memref<16x512xf32, #tpu.memory_space<vmem>>, %arg3: memref<128x512xf32, #tpu.memory_space<vmem>>, %arg4: memref<1x512xf32, #tpu.memory_space<vmem>>, %arg5: memref<128x512xf32, #tpu.memory_space<vmem>>, %arg6: memref<128x512xf32, #tpu.memory_space<vmem>>, %arg7: memref<1x512xf32, #tpu.memory_space<vmem>>, %arg8: memref<1x128xf32, #tpu.memory_space<vmem>>, %arg9: memref<1x128xf32, #tpu.memory_space<vmem>>, %arg10: memref<1x64x128xf32, #tpu.memory_space<vmem>>, %arg11: memref<1x2x8x128xf32, #tpu.memory_space<vmem>>, %arg12: memref<1x2x8x128xf32, #tpu.memory_space<vmem>>, %arg13: memref<1x64x512xf32, #tpu.memory_space<vmem>>, %arg14: memref<64x128xf32, #tpu.memory_space<vmem>>) attributes {dimension_semantics = [#tpu.dimension_semantics<parallel>], iteration_bounds = array<i64: 1>, scalar_prefetch = 0 : i64, scratch_operands = 2 : i64, tpu.core_type = #tpu.core_type<tc>, window_params = [{transform_indices = @transform_0, window_bounds = array<i64: 1, 64, 16>}, {pipeline_mode = #tpu.pipeline_mode<synchronous>, transform_indices = @transform_1, window_bounds = array<i64: 16, 512>}, {pipeline_mode = #tpu.pipeline_mode<synchronous>, transform_indices = @transform_2, window_bounds = array<i64: 128, 512>}, {pipeline_mode = #tpu.pipeline_mode<synchronous>, transform_indices = @transform_3, window_bounds = array<i64: 1, 512>}, {pipeline_mode = #tpu.pipeline_mode<synchronous>, transform_indices = @transform_4, window_bounds = array<i64: 128, 512>}, {pipeline_mode = #tpu.pipeline_mode<synchronous>, transform_indices = @transform_5, window_bounds = array<i64: 128, 512>}, {pipeline_mode = #tpu.pipeline_mode<synchronous>, transform_indices = @transform_6, window_bounds = array<i64: 1, 512>}, {pipeline_mode = #tpu.pipeline_mode<synchronous>, transform_indices = @transform_7, window_bounds = array<i64: 1, 128>}, {pipeline_mode = #tpu.pipeline_mode<synchronous>, transform_indices = @transform_8, window_bounds = array<i64: 1, 128>}, {transform_indices = @transform_9, window_bounds = array<i64: 1, 64, 128>}, {transform_indices = @transform_10, window_bounds = array<i64: 1, 2, 8, 128>}, {transform_indices = @transform_11, window_bounds = array<i64: 1, 2, 8, 128>}]} {
    %c0 = arith.constant 0 : index
    %c0_0 = arith.constant 0 : index
    %c0_1 = arith.constant 0 : index
    %0 = vector.load %arg1[%c0, %c0_0, %c0_1] : memref<1x64x16xf32, #tpu.memory_space<vmem>>, vector<1x64x16xf32>
    %1 = vector.shape_cast %0 : vector<1x64x16xf32> to vector<64x16xf32>
    %c0_2 = arith.constant 0 : index
    %c0_3 = arith.constant 0 : index
    %2 = vector.load %arg2[%c0_2, %c0_3] : memref<16x512xf32, #tpu.memory_space<vmem>>, vector<16x512xf32>
    %cst = arith.constant dense<0.000000e+00> : vector<64x512xf32>
    %3 = tpu.matmul %1, %2, %cst {dimension_numbers = #tpu.dot_dimension_numbers<[1], [0], [0], [1], [0, 0, 1, 1], [], []>} : vector<64x16xf32>, vector<16x512xf32>, vector<64x512xf32> -> vector<64x512xf32>
    %c0_4 = arith.constant 0 : index
    %c0_5 = arith.constant 0 : index
    %4 = vector.load %arg4[%c0_4, %c0_5] : memref<1x512xf32, #tpu.memory_space<vmem>>, vector<1x512xf32>
    %5 = vector.broadcast %4 : vector<1x512xf32> to vector<64x512xf32>
    %6 = arith.addf %3, %5 : vector<64x512xf32>
    %c0_6 = arith.constant 0 : index
    %c0_7 = arith.constant 0 : index
    %c0_8 = arith.constant 0 : index
    %7 = vector.load %arg13[%c0_6, %c0_7, %c0_8] : memref<1x64x512xf32, #tpu.memory_space<vmem>>, vector<1x64x512xf32>
    %8 = vector.shape_cast %7 : vector<1x64x512xf32> to vector<64x512xf32>
    %9 = vector.shape_cast %6 : vector<64x512xf32> to vector<1x64x512xf32>
    tpu.vector_store %arg13[%c0_6, %c0_7, %c0_8], %9 {strides = array<i32>} : memref<1x64x512xf32, #tpu.memory_space<vmem>>, vector<1x64x512xf32>,
    %cst_9 = arith.constant 0.000000e+00 : f32
    %10 = vector.broadcast %cst_9 : f32 to vector<8x128xf32>
    %cst_10 = arith.constant 0.000000e+00 : f32
    %11 = vector.broadcast %cst_10 : f32 to vector<8x128xf32>
    %c0_i32 = arith.constant 0 : i32
    %c8_i32 = arith.constant 8 : i32
    %12 = arith.muli %c0_i32, %c8_i32 : i32
    %13 = tpu.assume_multiple %12, 8 : i32
    %c0_11 = arith.constant 0 : index
    %14 = arith.index_cast %13 : i32 to index
    %c0_12 = arith.constant 0 : index
    %15 = vector.load %arg13[%c0_11, %14, %c0_12] : memref<1x64x512xf32, #tpu.memory_space<vmem>>, vector<1x8x512xf32>
    %16 = vector.shape_cast %15 : vector<1x8x512xf32> to vector<8x512xf32>
    %c0_13 = arith.constant 0 : index
    %c0_14 = arith.constant 0 : index
    %17 = vector.load %arg3[%c0_13, %c0_14] : memref<128x512xf32, #tpu.memory_space<vmem>>, vector<128x512xf32>
    %cst_15 = arith.constant dense<0.000000e+00> : vector<8x512xf32>
    %18 = tpu.matmul %10, %17, %cst_15 {dimension_numbers = #tpu.dot_dimension_numbers<[1], [0], [0], [1], [0, 0, 1, 1], [], []>} : vector<8x128xf32>, vector<128x512xf32>, vector<8x512xf32> -> vector<8x512xf32>
    %19 = arith.addf %16, %18 : vector<8x512xf32>
    %20 = vector.extract_strided_slice %19 {offsets = [0, 0], sizes = [8, 384], strides = [1, 1]} : vector<8x512xf32> to vector<8x384xf32>
    %21 = arith.negf %20 : vector<8x384xf32>
    %22 = math.exp %21 : vector<8x384xf32>
    %cst_16 = arith.constant 1.000000e+00 : f32
    %23 = vector.broadcast %cst_16 : f32 to vector<8x384xf32>
    %24 = arith.addf %23, %22 : vector<8x384xf32>
    %25 = arith.divf %23, %24 : vector<8x384xf32>
    %26 = vector.extract_strided_slice %25 {offsets = [0, 0], sizes = [8, 128], strides = [1, 1]} : vector<8x384xf32> to vector<8x128xf32>
    %27 = vector.extract_strided_slice %25 {offsets = [0, 128], sizes = [8, 128], strides = [1, 1]} : vector<8x384xf32> to vector<8x128xf32>
    %28 = vector.extract_strided_slice %25 {offsets = [0, 256], sizes = [8, 128], strides = [1, 1]} : vector<8x384xf32> to vector<8x128xf32>
    %29 = vector.extract_strided_slice %19 {offsets = [0, 384], sizes = [8, 128], strides = [1, 1]} : vector<8x512xf32> to vector<8x128xf32>
    %30 = math.tanh %29 : vector<8x128xf32>
    %31 = arith.mulf %27, %11 : vector<8x128xf32>
    %32 = arith.mulf %26, %30 : vector<8x128xf32>
    %33 = arith.addf %31, %32 : vector<8x128xf32>
    %34 = math.tanh %33 : vector<8x128xf32>
    %35 = arith.mulf %28, %34 : vector<8x128xf32>
    %c8_i32_17 = arith.constant 8 : i32
    %36 = arith.muli %c0_i32, %c8_i32_17 : i32
    %c0_i32_18 = arith.constant 0 : i32
    %37 = arith.addi %c0_i32_18, %36 : i32
    %38 = tpu.assume_multiple %37, 8 : i32
    %39 = arith.index_cast %38 : i32 to index
    %c0_19 = arith.constant 0 : index
    %40 = vector.load %arg14[%39, %c0_19] : memref<64x128xf32, #tpu.memory_space<vmem>>, vector<8x128xf32>
    tpu.vector_store %arg14[%39, %c0_19], %35 {strides = array<i32>} : memref<64x128xf32, #tpu.memory_space<vmem>>, vector<8x128xf32>,
    %c1_i32 = arith.constant 1 : i32
    %c8_i32_20 = arith.constant 8 : i32
    %41 = arith.muli %c1_i32, %c8_i32_20 : i32
    %42 = tpu.assume_multiple %41, 8 : i32
    %c0_21 = arith.constant 0 : index
    %43 = arith.index_cast %42 : i32 to index
    %c0_22 = arith.constant 0 : index
    %44 = vector.load %arg13[%c0_21, %43, %c0_22] : memref<1x64x512xf32, #tpu.memory_space<vmem>>, vector<1x8x512xf32>
    %45 = vector.shape_cast %44 : vector<1x8x512xf32> to vector<8x512xf32>
    %c0_23 = arith.constant 0 : index
    %c0_24 = arith.constant 0 : index
    %46 = vector.load %arg3[%c0_23, %c0_24] : memref<128x512xf32, #tpu.memory_space<vmem>>, vector<128x512xf32>
    %cst_25 = arith.constant dense<0.000000e+00> : vector<8x512xf32>
    %47 = tpu.matmul %35, %46, %cst_25 {dimension_numbers = #tpu.dot_dimension_numbers<[1], [0], [0], [1], [0, 0, 1, 1], [], []>} : vector<8x128xf32>, vector<128x512xf32>, vector<8x512xf32> -> vector<8x512xf32>
    %48 = arith.addf %45, %47 : vector<8x512xf32>
    %49 = vector.extract_strided_slice %48 {offsets = [0, 0], sizes = [8, 384], strides = [1, 1]} : vector<8x512xf32> to vector<8x384xf32>
    %50 = arith.negf %49 : vector<8x384xf32>
    %51 = math.exp %50 : vector<8x384xf32>
    %cst_26 = arith.constant 1.000000e+00 : f32
    %52 = vector.broadcast %cst_26 : f32 to vector<8x384xf32>
    %53 = arith.addf %52, %51 : vector<8x384xf32>
    %54 = arith.divf %52, %53 : vector<8x384xf32>
    %55 = vector.extract_strided_slice %54 {offsets = [0, 0], sizes = [8, 128], strides = [1, 1]} : vector<8x384xf32> to vector<8x128xf32>
    %56 = vector.extract_strided_slice %54 {offsets = [0, 128], sizes = [8, 128], strides = [1, 1]} : vector<8x384xf32> to vector<8x128xf32>
    %57 = vector.extract_strided_slice %54 {offsets = [0, 256], sizes = [8, 128], strides = [1, 1]} : vector<8x384xf32> to vector<8x128xf32>
    %58 = vector.extract_strided_slice %48 {offsets = [0, 384], sizes = [8, 128], strides = [1, 1]} : vector<8x512xf32> to vector<8x128xf32>
    %59 = math.tanh %58 : vector<8x128xf32>
    %60 = arith.mulf %56, %33 : vector<8x128xf32>
    %61 = arith.mulf %55, %59 : vector<8x128xf32>
    %62 = arith.addf %60, %61 : vector<8x128xf32>
    %63 = math.tanh %62 : vector<8x128xf32>
    %64 = arith.mulf %57, %63 : vector<8x128xf32>
    %c8_i32_27 = arith.constant 8 : i32
    %65 = arith.muli %c1_i32, %c8_i32_27 : i32
    %c0_i32_28 = arith.constant 0 : i32
    %66 = arith.addi %c0_i32_28, %65 : i32
    %67 = tpu.assume_multiple %66, 8 : i32
    %68 = arith.index_cast %67 : i32 to index
    %c0_29 = arith.constant 0 : index
    %69 = vector.load %arg14[%68, %c0_29] : memref<64x128xf32, #tpu.memory_space<vmem>>, vector<8x128xf32>
    tpu.vector_store %arg14[%68, %c0_29], %64 {strides = array<i32>} : memref<64x128xf32, #tpu.memory_space<vmem>>, vector<8x128xf32>,
    %c2_i32 = arith.constant 2 : i32
    %c8_i32_30 = arith.constant 8 : i32
    %70 = arith.muli %c2_i32, %c8_i32_30 : i32
    %71 = tpu.assume_multiple %70, 8 : i32
    %c0_31 = arith.constant 0 : index
    %72 = arith.index_cast %71 : i32 to index
    %c0_32 = arith.constant 0 : index
    %73 = vector.load %arg13[%c0_31, %72, %c0_32] : memref<1x64x512xf32, #tpu.memory_space<vmem>>, vector<1x8x512xf32>
    %74 = vector.shape_cast %73 : vector<1x8x512xf32> to vector<8x512xf32>
    %c0_33 = arith.constant 0 : index
    %c0_34 = arith.constant 0 : index
    %75 = vector.load %arg3[%c0_33, %c0_34] : memref<128x512xf32, #tpu.memory_space<vmem>>, vector<128x512xf32>
    %cst_35 = arith.constant dense<0.000000e+00> : vector<8x512xf32>
    %76 = tpu.matmul %64, %75, %cst_35 {dimension_numbers = #tpu.dot_dimension_numbers<[1], [0], [0], [1], [0, 0, 1, 1], [], []>} : vector<8x128xf32>, vector<128x512xf32>, vector<8x512xf32> -> vector<8x512xf32>
    %77 = arith.addf %74, %76 : vector<8x512xf32>
    %78 = vector.extract_strided_slice %77 {offsets = [0, 0], sizes = [8, 384], strides = [1, 1]} : vector<8x512xf32> to vector<8x384xf32>
    %79 = arith.negf %78 : vector<8x384xf32>
    %80 = math.exp %79 : vector<8x384xf32>
    %cst_36 = arith.constant 1.000000e+00 : f32
    %81 = vector.broadcast %cst_36 : f32 to vector<8x384xf32>
    %82 = arith.addf %81, %80 : vector<8x384xf32>
    %83 = arith.divf %81, %82 : vector<8x384xf32>
    %84 = vector.extract_strided_slice %83 {offsets = [0, 0], sizes = [8, 128], strides = [1, 1]} : vector<8x384xf32> to vector<8x128xf32>
    %85 = vector.extract_strided_slice %83 {offsets = [0, 128], sizes = [8, 128], strides = [1, 1]} : vector<8x384xf32> to vector<8x128xf32>
    %86 = vector.extract_strided_slice %83 {offsets = [0, 256], sizes = [8, 128], strides = [1, 1]} : vector<8x384xf32> to vector<8x128xf32>
    %87 = vector.extract_strided_slice %77 {offsets = [0, 384], sizes = [8, 128], strides = [1, 1]} : vector<8x512xf32> to vector<8x128xf32>
    %88 = math.tanh %87 : vector<8x128xf32>
    %89 = arith.mulf %85, %62 : vector<8x128xf32>
    %90 = arith.mulf %84, %88 : vector<8x128xf32>
    %91 = arith.addf %89, %90 : vector<8x128xf32>
    %92 = math.tanh %91 : vector<8x128xf32>
    %93 = arith.mulf %86, %92 : vector<8x128xf32>
    %c8_i32_37 = arith.constant 8 : i32
    %94 = arith.muli %c2_i32, %c8_i32_37 : i32
    %c0_i32_38 = arith.constant 0 : i32
    %95 = arith.addi %c0_i32_38, %94 : i32
    %96 = tpu.assume_multiple %95, 8 : i32
    %97 = arith.index_cast %96 : i32 to index
    %c0_39 = arith.constant 0 : index
    %98 = vector.load %arg14[%97, %c0_39] : memref<64x128xf32, #tpu.memory_space<vmem>>, vector<8x128xf32>
    tpu.vector_store %arg14[%97, %c0_39], %93 {strides = array<i32>} : memref<64x128xf32, #tpu.memory_space<vmem>>, vector<8x128xf32>,
    %c3_i32 = arith.constant 3 : i32
    %c8_i32_40 = arith.constant 8 : i32
    %99 = arith.muli %c3_i32, %c8_i32_40 : i32
    %100 = tpu.assume_multiple %99, 8 : i32
    %c0_41 = arith.constant 0 : index
    %101 = arith.index_cast %100 : i32 to index
    %c0_42 = arith.constant 0 : index
    %102 = vector.load %arg13[%c0_41, %101, %c0_42] : memref<1x64x512xf32, #tpu.memory_space<vmem>>, vector<1x8x512xf32>
    %103 = vector.shape_cast %102 : vector<1x8x512xf32> to vector<8x512xf32>
    %c0_43 = arith.constant 0 : index
    %c0_44 = arith.constant 0 : index
    %104 = vector.load %arg3[%c0_43, %c0_44] : memref<128x512xf32, #tpu.memory_space<vmem>>, vector<128x512xf32>
    %cst_45 = arith.constant dense<0.000000e+00> : vector<8x512xf32>
    %105 = tpu.matmul %93, %104, %cst_45 {dimension_numbers = #tpu.dot_dimension_numbers<[1], [0], [0], [1], [0, 0, 1, 1], [], []>} : vector<8x128xf32>, vector<128x512xf32>, vector<8x512xf32> -> vector<8x512xf32>
    %106 = arith.addf %103, %105 : vector<8x512xf32>
    %107 = vector.extract_strided_slice %106 {offsets = [0, 0], sizes = [8, 384], strides = [1, 1]} : vector<8x512xf32> to vector<8x384xf32>
    %108 = arith.negf %107 : vector<8x384xf32>
    %109 = math.exp %108 : vector<8x384xf32>
    %cst_46 = arith.constant 1.000000e+00 : f32
    %110 = vector.broadcast %cst_46 : f32 to vector<8x384xf32>
    %111 = arith.addf %110, %109 : vector<8x384xf32>
    %112 = arith.divf %110, %111 : vector<8x384xf32>
    %113 = vector.extract_strided_slice %112 {offsets = [0, 0], sizes = [8, 128], strides = [1, 1]} : vector<8x384xf32> to vector<8x128xf32>
    %114 = vector.extract_strided_slice %112 {offsets = [0, 128], sizes = [8, 128], strides = [1, 1]} : vector<8x384xf32> to vector<8x128xf32>
    %115 = vector.extract_strided_slice %112 {offsets = [0, 256], sizes = [8, 128], strides = [1, 1]} : vector<8x384xf32> to vector<8x128xf32>
    %116 = vector.extract_strided_slice %106 {offsets = [0, 384], sizes = [8, 128], strides = [1, 1]} : vector<8x512xf32> to vector<8x128xf32>
    %117 = math.tanh %116 : vector<8x128xf32>
    %118 = arith.mulf %114, %91 : vector<8x128xf32>
    %119 = arith.mulf %113, %117 : vector<8x128xf32>
    %120 = arith.addf %118, %119 : vector<8x128xf32>
    %121 = math.tanh %120 : vector<8x128xf32>
    %122 = arith.mulf %115, %121 : vector<8x128xf32>
    %c8_i32_47 = arith.constant 8 : i32
    %123 = arith.muli %c3_i32, %c8_i32_47 : i32
    %c0_i32_48 = arith.constant 0 : i32
    %124 = arith.addi %c0_i32_48, %123 : i32
    %125 = tpu.assume_multiple %124, 8 : i32
    %126 = arith.index_cast %125 : i32 to index
    %c0_49 = arith.constant 0 : index
    %127 = vector.load %arg14[%126, %c0_49] : memref<64x128xf32, #tpu.memory_space<vmem>>, vector<8x128xf32>
    tpu.vector_store %arg14[%126, %c0_49], %122 {strides = array<i32>} : memref<64x128xf32, #tpu.memory_space<vmem>>, vector<8x128xf32>,
    %c4_i32 = arith.constant 4 : i32
    %c8_i32_50 = arith.constant 8 : i32
    %128 = arith.muli %c4_i32, %c8_i32_50 : i32
    %129 = tpu.assume_multiple %128, 8 : i32
    %c0_51 = arith.constant 0 : index
    %130 = arith.index_cast %129 : i32 to index
    %c0_52 = arith.constant 0 : index
    %131 = vector.load %arg13[%c0_51, %130, %c0_52] : memref<1x64x512xf32, #tpu.memory_space<vmem>>, vector<1x8x512xf32>
    %132 = vector.shape_cast %131 : vector<1x8x512xf32> to vector<8x512xf32>
    %c0_53 = arith.constant 0 : index
    %c0_54 = arith.constant 0 : index
    %133 = vector.load %arg3[%c0_53, %c0_54] : memref<128x512xf32, #tpu.memory_space<vmem>>, vector<128x512xf32>
    %cst_55 = arith.constant dense<0.000000e+00> : vector<8x512xf32>
    %134 = tpu.matmul %122, %133, %cst_55 {dimension_numbers = #tpu.dot_dimension_numbers<[1], [0], [0], [1], [0, 0, 1, 1], [], []>} : vector<8x128xf32>, vector<128x512xf32>, vector<8x512xf32> -> vector<8x512xf32>
    %135 = arith.addf %132, %134 : vector<8x512xf32>
    %136 = vector.extract_strided_slice %135 {offsets = [0, 0], sizes = [8, 384], strides = [1, 1]} : vector<8x512xf32> to vector<8x384xf32>
    %137 = arith.negf %136 : vector<8x384xf32>
    %138 = math.exp %137 : vector<8x384xf32>
    %cst_56 = arith.constant 1.000000e+00 : f32
    %139 = vector.broadcast %cst_56 : f32 to vector<8x384xf32>
    %140 = arith.addf %139, %138 : vector<8x384xf32>
    %141 = arith.divf %139, %140 : vector<8x384xf32>
    %142 = vector.extract_strided_slice %141 {offsets = [0, 0], sizes = [8, 128], strides = [1, 1]} : vector<8x384xf32> to vector<8x128xf32>
    %143 = vector.extract_strided_slice %141 {offsets = [0, 128], sizes = [8, 128], strides = [1, 1]} : vector<8x384xf32> to vector<8x128xf32>
    %144 = vector.extract_strided_slice %141 {offsets = [0, 256], sizes = [8, 128], strides = [1, 1]} : vector<8x384xf32> to vector<8x128xf32>
    %145 = vector.extract_strided_slice %135 {offsets = [0, 384], sizes = [8, 128], strides = [1, 1]} : vector<8x512xf32> to vector<8x128xf32>
    %146 = math.tanh %145 : vector<8x128xf32>
    %147 = arith.mulf %143, %120 : vector<8x128xf32>
    %148 = arith.mulf %142, %146 : vector<8x128xf32>
    %149 = arith.addf %147, %148 : vector<8x128xf32>
    %150 = math.tanh %149 : vector<8x128xf32>
    %151 = arith.mulf %144, %150 : vector<8x128xf32>
    %c8_i32_57 = arith.constant 8 : i32
    %152 = arith.muli %c4_i32, %c8_i32_57 : i32
    %c0_i32_58 = arith.constant 0 : i32
    %153 = arith.addi %c0_i32_58, %152 : i32
    %154 = tpu.assume_multiple %153, 8 : i32
    %155 = arith.index_cast %154 : i32 to index
    %c0_59 = arith.constant 0 : index
    %156 = vector.load %arg14[%155, %c0_59] : memref<64x128xf32, #tpu.memory_space<vmem>>, vector<8x128xf32>
    tpu.vector_store %arg14[%155, %c0_59], %151 {strides = array<i32>} : memref<64x128xf32, #tpu.memory_space<vmem>>, vector<8x128xf32>,
    %c5_i32 = arith.constant 5 : i32
    %c8_i32_60 = arith.constant 8 : i32
    %157 = arith.muli %c5_i32, %c8_i32_60 : i32
    %158 = tpu.assume_multiple %157, 8 : i32
    %c0_61 = arith.constant 0 : index
    %159 = arith.index_cast %158 : i32 to index
    %c0_62 = arith.constant 0 : index
    %160 = vector.load %arg13[%c0_61, %159, %c0_62] : memref<1x64x512xf32, #tpu.memory_space<vmem>>, vector<1x8x512xf32>
    %161 = vector.shape_cast %160 : vector<1x8x512xf32> to vector<8x512xf32>
    %c0_63 = arith.constant 0 : index
    %c0_64 = arith.constant 0 : index
    %162 = vector.load %arg3[%c0_63, %c0_64] : memref<128x512xf32, #tpu.memory_space<vmem>>, vector<128x512xf32>
    %cst_65 = arith.constant dense<0.000000e+00> : vector<8x512xf32>
    %163 = tpu.matmul %151, %162, %cst_65 {dimension_numbers = #tpu.dot_dimension_numbers<[1], [0], [0], [1], [0, 0, 1, 1], [], []>} : vector<8x128xf32>, vector<128x512xf32>, vector<8x512xf32> -> vector<8x512xf32>
    %164 = arith.addf %161, %163 : vector<8x512xf32>
    %165 = vector.extract_strided_slice %164 {offsets = [0, 0], sizes = [8, 384], strides = [1, 1]} : vector<8x512xf32> to vector<8x384xf32>
    %166 = arith.negf %165 : vector<8x384xf32>
    %167 = math.exp %166 : vector<8x384xf32>
    %cst_66 = arith.constant 1.000000e+00 : f32
    %168 = vector.broadcast %cst_66 : f32 to vector<8x384xf32>
    %169 = arith.addf %168, %167 : vector<8x384xf32>
    %170 = arith.divf %168, %169 : vector<8x384xf32>
    %171 = vector.extract_strided_slice %170 {offsets = [0, 0], sizes = [8, 128], strides = [1, 1]} : vector<8x384xf32> to vector<8x128xf32>
    %172 = vector.extract_strided_slice %170 {offsets = [0, 128], sizes = [8, 128], strides = [1, 1]} : vector<8x384xf32> to vector<8x128xf32>
    %173 = vector.extract_strided_slice %170 {offsets = [0, 256], sizes = [8, 128], strides = [1, 1]} : vector<8x384xf32> to vector<8x128xf32>
    %174 = vector.extract_strided_slice %164 {offsets = [0, 384], sizes = [8, 128], strides = [1, 1]} : vector<8x512xf32> to vector<8x128xf32>
    %175 = math.tanh %174 : vector<8x128xf32>
    %176 = arith.mulf %172, %149 : vector<8x128xf32>
    %177 = arith.mulf %171, %175 : vector<8x128xf32>
    %178 = arith.addf %176, %177 : vector<8x128xf32>
    %179 = math.tanh %178 : vector<8x128xf32>
    %180 = arith.mulf %173, %179 : vector<8x128xf32>
    %c8_i32_67 = arith.constant 8 : i32
    %181 = arith.muli %c5_i32, %c8_i32_67 : i32
    %c0_i32_68 = arith.constant 0 : i32
    %182 = arith.addi %c0_i32_68, %181 : i32
    %183 = tpu.assume_multiple %182, 8 : i32
    %184 = arith.index_cast %183 : i32 to index
    %c0_69 = arith.constant 0 : index
    %185 = vector.load %arg14[%184, %c0_69] : memref<64x128xf32, #tpu.memory_space<vmem>>, vector<8x128xf32>
    tpu.vector_store %arg14[%184, %c0_69], %180 {strides = array<i32>} : memref<64x128xf32, #tpu.memory_space<vmem>>, vector<8x128xf32>,
    %c6_i32 = arith.constant 6 : i32
    %c8_i32_70 = arith.constant 8 : i32
    %186 = arith.muli %c6_i32, %c8_i32_70 : i32
    %187 = tpu.assume_multiple %186, 8 : i32
    %c0_71 = arith.constant 0 : index
    %188 = arith.index_cast %187 : i32 to index
    %c0_72 = arith.constant 0 : index
    %189 = vector.load %arg13[%c0_71, %188, %c0_72] : memref<1x64x512xf32, #tpu.memory_space<vmem>>, vector<1x8x512xf32>
    %190 = vector.shape_cast %189 : vector<1x8x512xf32> to vector<8x512xf32>
    %c0_73 = arith.constant 0 : index
    %c0_74 = arith.constant 0 : index
    %191 = vector.load %arg3[%c0_73, %c0_74] : memref<128x512xf32, #tpu.memory_space<vmem>>, vector<128x512xf32>
    %cst_75 = arith.constant dense<0.000000e+00> : vector<8x512xf32>
    %192 = tpu.matmul %180, %191, %cst_75 {dimension_numbers = #tpu.dot_dimension_numbers<[1], [0], [0], [1], [0, 0, 1, 1], [], []>} : vector<8x128xf32>, vector<128x512xf32>, vector<8x512xf32> -> vector<8x512xf32>
    %193 = arith.addf %190, %192 : vector<8x512xf32>
    %194 = vector.extract_strided_slice %193 {offsets = [0, 0], sizes = [8, 384], strides = [1, 1]} : vector<8x512xf32> to vector<8x384xf32>
    %195 = arith.negf %194 : vector<8x384xf32>
    %196 = math.exp %195 : vector<8x384xf32>
    %cst_76 = arith.constant 1.000000e+00 : f32
    %197 = vector.broadcast %cst_76 : f32 to vector<8x384xf32>
    %198 = arith.addf %197, %196 : vector<8x384xf32>
    %199 = arith.divf %197, %198 : vector<8x384xf32>
    %200 = vector.extract_strided_slice %199 {offsets = [0, 0], sizes = [8, 128], strides = [1, 1]} : vector<8x384xf32> to vector<8x128xf32>
    %201 = vector.extract_strided_slice %199 {offsets = [0, 128], sizes = [8, 128], strides = [1, 1]} : vector<8x384xf32> to vector<8x128xf32>
    %202 = vector.extract_strided_slice %199 {offsets = [0, 256], sizes = [8, 128], strides = [1, 1]} : vector<8x384xf32> to vector<8x128xf32>
    %203 = vector.extract_strided_slice %193 {offsets = [0, 384], sizes = [8, 128], strides = [1, 1]} : vector<8x512xf32> to vector<8x128xf32>
    %204 = math.tanh %203 : vector<8x128xf32>
    %205 = arith.mulf %201, %178 : vector<8x128xf32>
    %206 = arith.mulf %200, %204 : vector<8x128xf32>
    %207 = arith.addf %205, %206 : vector<8x128xf32>
    %208 = math.tanh %207 : vector<8x128xf32>
    %209 = arith.mulf %202, %208 : vector<8x128xf32>
    %c8_i32_77 = arith.constant 8 : i32
    %210 = arith.muli %c6_i32, %c8_i32_77 : i32
    %c0_i32_78 = arith.constant 0 : i32
    %211 = arith.addi %c0_i32_78, %210 : i32
    %212 = tpu.assume_multiple %211, 8 : i32
    %213 = arith.index_cast %212 : i32 to index
    %c0_79 = arith.constant 0 : index
    %214 = vector.load %arg14[%213, %c0_79] : memref<64x128xf32, #tpu.memory_space<vmem>>, vector<8x128xf32>
    tpu.vector_store %arg14[%213, %c0_79], %209 {strides = array<i32>} : memref<64x128xf32, #tpu.memory_space<vmem>>, vector<8x128xf32>,
    %c7_i32 = arith.constant 7 : i32
    %c8_i32_80 = arith.constant 8 : i32
    %215 = arith.muli %c7_i32, %c8_i32_80 : i32
    %216 = tpu.assume_multiple %215, 8 : i32
    %c0_81 = arith.constant 0 : index
    %217 = arith.index_cast %216 : i32 to index
    %c0_82 = arith.constant 0 : index
    %218 = vector.load %arg13[%c0_81, %217, %c0_82] : memref<1x64x512xf32, #tpu.memory_space<vmem>>, vector<1x8x512xf32>
    %219 = vector.shape_cast %218 : vector<1x8x512xf32> to vector<8x512xf32>
    %c0_83 = arith.constant 0 : index
    %c0_84 = arith.constant 0 : index
    %220 = vector.load %arg3[%c0_83, %c0_84] : memref<128x512xf32, #tpu.memory_space<vmem>>, vector<128x512xf32>
    %cst_85 = arith.constant dense<0.000000e+00> : vector<8x512xf32>
    %221 = tpu.matmul %209, %220, %cst_85 {dimension_numbers = #tpu.dot_dimension_numbers<[1], [0], [0], [1], [0, 0, 1, 1], [], []>} : vector<8x128xf32>, vector<128x512xf32>, vector<8x512xf32> -> vector<8x512xf32>
    %222 = arith.addf %219, %221 : vector<8x512xf32>
    %223 = vector.extract_strided_slice %222 {offsets = [0, 0], sizes = [8, 384], strides = [1, 1]} : vector<8x512xf32> to vector<8x384xf32>
    %224 = arith.negf %223 : vector<8x384xf32>
    %225 = math.exp %224 : vector<8x384xf32>
    %cst_86 = arith.constant 1.000000e+00 : f32
    %226 = vector.broadcast %cst_86 : f32 to vector<8x384xf32>
    %227 = arith.addf %226, %225 : vector<8x384xf32>
    %228 = arith.divf %226, %227 : vector<8x384xf32>
    %229 = vector.extract_strided_slice %228 {offsets = [0, 0], sizes = [8, 128], strides = [1, 1]} : vector<8x384xf32> to vector<8x128xf32>
    %230 = vector.extract_strided_slice %228 {offsets = [0, 128], sizes = [8, 128], strides = [1, 1]} : vector<8x384xf32> to vector<8x128xf32>
    %231 = vector.extract_strided_slice %228 {offsets = [0, 256], sizes = [8, 128], strides = [1, 1]} : vector<8x384xf32> to vector<8x128xf32>
    %232 = vector.extract_strided_slice %222 {offsets = [0, 384], sizes = [8, 128], strides = [1, 1]} : vector<8x512xf32> to vector<8x128xf32>
    %233 = math.tanh %232 : vector<8x128xf32>
    %234 = arith.mulf %230, %207 : vector<8x128xf32>
    %235 = arith.mulf %229, %233 : vector<8x128xf32>
    %236 = arith.addf %234, %235 : vector<8x128xf32>
    %237 = math.tanh %236 : vector<8x128xf32>
    %238 = arith.mulf %231, %237 : vector<8x128xf32>
    %c8_i32_87 = arith.constant 8 : i32
    %239 = arith.muli %c7_i32, %c8_i32_87 : i32
    %c0_i32_88 = arith.constant 0 : i32
    %240 = arith.addi %c0_i32_88, %239 : i32
    %241 = tpu.assume_multiple %240, 8 : i32
    %242 = arith.index_cast %241 : i32 to index
    %c0_89 = arith.constant 0 : index
    %243 = vector.load %arg14[%242, %c0_89] : memref<64x128xf32, #tpu.memory_space<vmem>>, vector<8x128xf32>
    tpu.vector_store %arg14[%242, %c0_89], %238 {strides = array<i32>} : memref<64x128xf32, #tpu.memory_space<vmem>>, vector<8x128xf32>,
    %c8_i32_90 = arith.constant 8 : i32
    %c0_91 = arith.constant 0 : index
    %c0_92 = arith.constant 0 : index
    %c0_93 = arith.constant 0 : index
    %c0_94 = arith.constant 0 : index
    %244 = vector.load %arg12[%c0_91, %c0_92, %c0_93, %c0_94] : memref<1x2x8x128xf32, #tpu.memory_space<vmem>>, vector<1x1x8x128xf32>
    %245 = vector.shape_cast %244 : vector<1x1x8x128xf32> to vector<8x128xf32>
    %246 = vector.shape_cast %236 : vector<8x128xf32> to vector<1x1x8x128xf32>
    tpu.vector_store %arg12[%c0_91, %c0_92, %c0_93, %c0_94], %246 {strides = array<i32>} : memref<1x2x8x128xf32, #tpu.memory_space<vmem>>, vector<1x1x8x128xf32>,
    %cst_95 = arith.constant dense<0.000000e+00> : vector<8xf32>
    %247 = vector.multi_reduction <add>, %238, %cst_95 [1] : vector<8x128xf32> to vector<8xf32>
    %248 = vector.shape_cast %247 : vector<8xf32> to vector<8x1xf32>
    %cst_96 = arith.constant 3.125000e-02 : f32
    %249 = vector.broadcast %cst_96 : f32 to vector<8x1xf32>
    %250 = arith.mulf %248, %249 : vector<8x1xf32>
    %251 = arith.mulf %238, %238 : vector<8x128xf32>
    %cst_97 = arith.constant dense<0.000000e+00> : vector<8xf32>
    %252 = vector.multi_reduction <add>, %251, %cst_97 [1] : vector<8x128xf32> to vector<8xf32>
    %253 = vector.shape_cast %252 : vector<8xf32> to vector<8x1xf32>
    %cst_98 = arith.constant 3.125000e-02 : f32
    %254 = vector.broadcast %cst_98 : f32 to vector<8x1xf32>
    %255 = arith.mulf %253, %254 : vector<8x1xf32>
    %256 = arith.mulf %250, %250 : vector<8x1xf32>
    %257 = arith.subf %255, %256 : vector<8x1xf32>
    %258 = vector.broadcast %250 : vector<8x1xf32> to vector<8x128xf32>
    %259 = arith.subf %238, %258 : vector<8x128xf32>
    %cst_99 = arith.constant 9.99999974E-6 : f32
    %260 = vector.broadcast %cst_99 : f32 to vector<8x1xf32>
    %261 = arith.addf %257, %260 : vector<8x1xf32>
    %262 = math.rsqrt %261 : vector<8x1xf32>
    %263 = vector.broadcast %262 : vector<8x1xf32> to vector<8x128xf32>
    %264 = arith.mulf %259, %263 : vector<8x128xf32>
    %c0_100 = arith.constant 0 : index
    %c0_101 = arith.constant 0 : index
    %265 = vector.load %arg8[%c0_100, %c0_101] : memref<1x128xf32, #tpu.memory_space<vmem>>, vector<1x128xf32>
    %266 = vector.broadcast %265 : vector<1x128xf32> to vector<8x128xf32>
    %267 = arith.mulf %264, %266 : vector<8x128xf32>
    %c0_102 = arith.constant 0 : index
    %c0_103 = arith.constant 0 : index
    %268 = vector.load %arg9[%c0_102, %c0_103] : memref<1x128xf32, #tpu.memory_space<vmem>>, vector<1x128xf32>
    %269 = vector.broadcast %268 : vector<1x128xf32> to vector<8x128xf32>
    %270 = arith.addf %267, %269 : vector<8x128xf32>
    %c0_104 = arith.constant 0 : index
    %c0_105 = arith.constant 0 : index
    %c0_106 = arith.constant 0 : index
    %c0_107 = arith.constant 0 : index
    %271 = vector.load %arg11[%c0_104, %c0_105, %c0_106, %c0_107] : memref<1x2x8x128xf32, #tpu.memory_space<vmem>>, vector<1x1x8x128xf32>
    %272 = vector.shape_cast %271 : vector<1x1x8x128xf32> to vector<8x128xf32>
    %273 = vector.shape_cast %270 : vector<8x128xf32> to vector<1x1x8x128xf32>
    tpu.vector_store %arg11[%c0_104, %c0_105, %c0_106, %c0_107], %273 {strides = array<i32>} : memref<1x2x8x128xf32, #tpu.memory_space<vmem>>, vector<1x1x8x128xf32>,
    %c0_108 = arith.constant 0 : index
    %c0_109 = arith.constant 0 : index
    %274 = vector.load %arg14[%c0_108, %c0_109] : memref<64x128xf32, #tpu.memory_space<vmem>>, vector<64x128xf32>
    %c0_110 = arith.constant 0 : index
    %c0_111 = arith.constant 0 : index
    %275 = vector.load %arg5[%c0_110, %c0_111] : memref<128x512xf32, #tpu.memory_space<vmem>>, vector<128x512xf32>
    %cst_112 = arith.constant dense<0.000000e+00> : vector<64x512xf32>
    %276 = tpu.matmul %274, %275, %cst_112 {dimension_numbers = #tpu.dot_dimension_numbers<[1], [0], [0], [1], [0, 0, 1, 1], [], []>} : vector<64x128xf32>, vector<128x512xf32>, vector<64x512xf32> -> vector<64x512xf32>
    %c0_113 = arith.constant 0 : index
    %c0_114 = arith.constant 0 : index
    %277 = vector.load %arg7[%c0_113, %c0_114] : memref<1x512xf32, #tpu.memory_space<vmem>>, vector<1x512xf32>
    %278 = vector.broadcast %277 : vector<1x512xf32> to vector<64x512xf32>
    %279 = arith.addf %276, %278 : vector<64x512xf32>
    %c0_115 = arith.constant 0 : index
    %c0_116 = arith.constant 0 : index
    %c0_117 = arith.constant 0 : index
    %280 = vector.load %arg13[%c0_115, %c0_116, %c0_117] : memref<1x64x512xf32, #tpu.memory_space<vmem>>, vector<1x64x512xf32>
    %281 = vector.shape_cast %280 : vector<1x64x512xf32> to vector<64x512xf32>
    %282 = vector.shape_cast %279 : vector<64x512xf32> to vector<1x64x512xf32>
    tpu.vector_store %arg13[%c0_115, %c0_116, %c0_117], %282 {strides = array<i32>} : memref<1x64x512xf32, #tpu.memory_space<vmem>>, vector<1x64x512xf32>,
    %cst_118 = arith.constant 0.000000e+00 : f32
    %283 = vector.broadcast %cst_118 : f32 to vector<8x128xf32>
    %cst_119 = arith.constant 0.000000e+00 : f32
    %284 = vector.broadcast %cst_119 : f32 to vector<8x128xf32>
    %c0_i32_120 = arith.constant 0 : i32
    %c8_i32_121 = arith.constant 8 : i32
    %285 = arith.muli %c0_i32_120, %c8_i32_121 : i32
    %286 = tpu.assume_multiple %285, 8 : i32
    %c0_122 = arith.constant 0 : index
    %287 = arith.index_cast %286 : i32 to index
    %c0_123 = arith.constant 0 : index
    %288 = vector.load %arg13[%c0_122, %287, %c0_123] : memref<1x64x512xf32, #tpu.memory_space<vmem>>, vector<1x8x512xf32>
    %289 = vector.shape_cast %288 : vector<1x8x512xf32> to vector<8x512xf32>
    %c0_124 = arith.constant 0 : index
    %c0_125 = arith.constant 0 : index
    %290 = vector.load %arg6[%c0_124, %c0_125] : memref<128x512xf32, #tpu.memory_space<vmem>>, vector<128x512xf32>
    %cst_126 = arith.constant dense<0.000000e+00> : vector<8x512xf32>
    %291 = tpu.matmul %283, %290, %cst_126 {dimension_numbers = #tpu.dot_dimension_numbers<[1], [0], [0], [1], [0, 0, 1, 1], [], []>} : vector<8x128xf32>, vector<128x512xf32>, vector<8x512xf32> -> vector<8x512xf32>
    %292 = arith.addf %289, %291 : vector<8x512xf32>
    %293 = vector.extract_strided_slice %292 {offsets = [0, 0], sizes = [8, 384], strides = [1, 1]} : vector<8x512xf32> to vector<8x384xf32>
    %294 = arith.negf %293 : vector<8x384xf32>
    %295 = math.exp %294 : vector<8x384xf32>
    %cst_127 = arith.constant 1.000000e+00 : f32
    %296 = vector.broadcast %cst_127 : f32 to vector<8x384xf32>
    %297 = arith.addf %296, %295 : vector<8x384xf32>
    %298 = arith.divf %296, %297 : vector<8x384xf32>
    %299 = vector.extract_strided_slice %298 {offsets = [0, 0], sizes = [8, 128], strides = [1, 1]} : vector<8x384xf32> to vector<8x128xf32>
    %300 = vector.extract_strided_slice %298 {offsets = [0, 128], sizes = [8, 128], strides = [1, 1]} : vector<8x384xf32> to vector<8x128xf32>
    %301 = vector.extract_strided_slice %298 {offsets = [0, 256], sizes = [8, 128], strides = [1, 1]} : vector<8x384xf32> to vector<8x128xf32>
    %302 = vector.extract_strided_slice %292 {offsets = [0, 384], sizes = [8, 128], strides = [1, 1]} : vector<8x512xf32> to vector<8x128xf32>
    %303 = math.tanh %302 : vector<8x128xf32>
    %304 = arith.mulf %300, %284 : vector<8x128xf32>
    %305 = arith.mulf %299, %303 : vector<8x128xf32>
    %306 = arith.addf %304, %305 : vector<8x128xf32>
    %307 = math.tanh %306 : vector<8x128xf32>
    %308 = arith.mulf %301, %307 : vector<8x128xf32>
    %c8_i32_128 = arith.constant 8 : i32
    %309 = arith.muli %c0_i32_120, %c8_i32_128 : i32
    %c0_i32_129 = arith.constant 0 : i32
    %310 = arith.addi %c0_i32_129, %309 : i32
    %311 = tpu.assume_multiple %310, 8 : i32
    %c0_130 = arith.constant 0 : index
    %312 = arith.index_cast %311 : i32 to index
    %c0_131 = arith.constant 0 : index
    %313 = vector.load %arg10[%c0_130, %312, %c0_131] : memref<1x64x128xf32, #tpu.memory_space<vmem>>, vector<1x8x128xf32>
    %314 = vector.shape_cast %313 : vector<1x8x128xf32> to vector<8x128xf32>
    %315 = vector.shape_cast %308 : vector<8x128xf32> to vector<1x8x128xf32>
    tpu.vector_store %arg10[%c0_130, %312, %c0_131], %315 {strides = array<i32>} : memref<1x64x128xf32, #tpu.memory_space<vmem>>, vector<1x8x128xf32>,
    %c1_i32_132 = arith.constant 1 : i32
    %c8_i32_133 = arith.constant 8 : i32
    %316 = arith.muli %c1_i32_132, %c8_i32_133 : i32
    %317 = tpu.assume_multiple %316, 8 : i32
    %c0_134 = arith.constant 0 : index
    %318 = arith.index_cast %317 : i32 to index
    %c0_135 = arith.constant 0 : index
    %319 = vector.load %arg13[%c0_134, %318, %c0_135] : memref<1x64x512xf32, #tpu.memory_space<vmem>>, vector<1x8x512xf32>
    %320 = vector.shape_cast %319 : vector<1x8x512xf32> to vector<8x512xf32>
    %c0_136 = arith.constant 0 : index
    %c0_137 = arith.constant 0 : index
    %321 = vector.load %arg6[%c0_136, %c0_137] : memref<128x512xf32, #tpu.memory_space<vmem>>, vector<128x512xf32>
    %cst_138 = arith.constant dense<0.000000e+00> : vector<8x512xf32>
    %322 = tpu.matmul %308, %321, %cst_138 {dimension_numbers = #tpu.dot_dimension_numbers<[1], [0], [0], [1], [0, 0, 1, 1], [], []>} : vector<8x128xf32>, vector<128x512xf32>, vector<8x512xf32> -> vector<8x512xf32>
    %323 = arith.addf %320, %322 : vector<8x512xf32>
    %324 = vector.extract_strided_slice %323 {offsets = [0, 0], sizes = [8, 384], strides = [1, 1]} : vector<8x512xf32> to vector<8x384xf32>
    %325 = arith.negf %324 : vector<8x384xf32>
    %326 = math.exp %325 : vector<8x384xf32>
    %cst_139 = arith.constant 1.000000e+00 : f32
    %327 = vector.broadcast %cst_139 : f32 to vector<8x384xf32>
    %328 = arith.addf %327, %326 : vector<8x384xf32>
    %329 = arith.divf %327, %328 : vector<8x384xf32>
    %330 = vector.extract_strided_slice %329 {offsets = [0, 0], sizes = [8, 128], strides = [1, 1]} : vector<8x384xf32> to vector<8x128xf32>
    %331 = vector.extract_strided_slice %329 {offsets = [0, 128], sizes = [8, 128], strides = [1, 1]} : vector<8x384xf32> to vector<8x128xf32>
    %332 = vector.extract_strided_slice %329 {offsets = [0, 256], sizes = [8, 128], strides = [1, 1]} : vector<8x384xf32> to vector<8x128xf32>
    %333 = vector.extract_strided_slice %323 {offsets = [0, 384], sizes = [8, 128], strides = [1, 1]} : vector<8x512xf32> to vector<8x128xf32>
    %334 = math.tanh %333 : vector<8x128xf32>
    %335 = arith.mulf %331, %306 : vector<8x128xf32>
    %336 = arith.mulf %330, %334 : vector<8x128xf32>
    %337 = arith.addf %335, %336 : vector<8x128xf32>
    %338 = math.tanh %337 : vector<8x128xf32>
    %339 = arith.mulf %332, %338 : vector<8x128xf32>
    %c8_i32_140 = arith.constant 8 : i32
    %340 = arith.muli %c1_i32_132, %c8_i32_140 : i32
    %c0_i32_141 = arith.constant 0 : i32
    %341 = arith.addi %c0_i32_141, %340 : i32
    %342 = tpu.assume_multiple %341, 8 : i32
    %c0_142 = arith.constant 0 : index
    %343 = arith.index_cast %342 : i32 to index
    %c0_143 = arith.constant 0 : index
    %344 = vector.load %arg10[%c0_142, %343, %c0_143] : memref<1x64x128xf32, #tpu.memory_space<vmem>>, vector<1x8x128xf32>
    %345 = vector.shape_cast %344 : vector<1x8x128xf32> to vector<8x128xf32>
    %346 = vector.shape_cast %339 : vector<8x128xf32> to vector<1x8x128xf32>
    tpu.vector_store %arg10[%c0_142, %343, %c0_143], %346 {strides = array<i32>} : memref<1x64x128xf32, #tpu.memory_space<vmem>>, vector<1x8x128xf32>,
    %c2_i32_144 = arith.constant 2 : i32
    %c8_i32_145 = arith.constant 8 : i32
    %347 = arith.muli %c2_i32_144, %c8_i32_145 : i32
    %348 = tpu.assume_multiple %347, 8 : i32
    %c0_146 = arith.constant 0 : index
    %349 = arith.index_cast %348 : i32 to index
    %c0_147 = arith.constant 0 : index
    %350 = vector.load %arg13[%c0_146, %349, %c0_147] : memref<1x64x512xf32, #tpu.memory_space<vmem>>, vector<1x8x512xf32>
    %351 = vector.shape_cast %350 : vector<1x8x512xf32> to vector<8x512xf32>
    %c0_148 = arith.constant 0 : index
    %c0_149 = arith.constant 0 : index
    %352 = vector.load %arg6[%c0_148, %c0_149] : memref<128x512xf32, #tpu.memory_space<vmem>>, vector<128x512xf32>
    %cst_150 = arith.constant dense<0.000000e+00> : vector<8x512xf32>
    %353 = tpu.matmul %339, %352, %cst_150 {dimension_numbers = #tpu.dot_dimension_numbers<[1], [0], [0], [1], [0, 0, 1, 1], [], []>} : vector<8x128xf32>, vector<128x512xf32>, vector<8x512xf32> -> vector<8x512xf32>
    %354 = arith.addf %351, %353 : vector<8x512xf32>
    %355 = vector.extract_strided_slice %354 {offsets = [0, 0], sizes = [8, 384], strides = [1, 1]} : vector<8x512xf32> to vector<8x384xf32>
    %356 = arith.negf %355 : vector<8x384xf32>
    %357 = math.exp %356 : vector<8x384xf32>
    %cst_151 = arith.constant 1.000000e+00 : f32
    %358 = vector.broadcast %cst_151 : f32 to vector<8x384xf32>
    %359 = arith.addf %358, %357 : vector<8x384xf32>
    %360 = arith.divf %358, %359 : vector<8x384xf32>
    %361 = vector.extract_strided_slice %360 {offsets = [0, 0], sizes = [8, 128], strides = [1, 1]} : vector<8x384xf32> to vector<8x128xf32>
    %362 = vector.extract_strided_slice %360 {offsets = [0, 128], sizes = [8, 128], strides = [1, 1]} : vector<8x384xf32> to vector<8x128xf32>
    %363 = vector.extract_strided_slice %360 {offsets = [0, 256], sizes = [8, 128], strides = [1, 1]} : vector<8x384xf32> to vector<8x128xf32>
    %364 = vector.extract_strided_slice %354 {offsets = [0, 384], sizes = [8, 128], strides = [1, 1]} : vector<8x512xf32> to vector<8x128xf32>
    %365 = math.tanh %364 : vector<8x128xf32>
    %366 = arith.mulf %362, %337 : vector<8x128xf32>
    %367 = arith.mulf %361, %365 : vector<8x128xf32>
    %368 = arith.addf %366, %367 : vector<8x128xf32>
    %369 = math.tanh %368 : vector<8x128xf32>
    %370 = arith.mulf %363, %369 : vector<8x128xf32>
    %c8_i32_152 = arith.constant 8 : i32
    %371 = arith.muli %c2_i32_144, %c8_i32_152 : i32
    %c0_i32_153 = arith.constant 0 : i32
    %372 = arith.addi %c0_i32_153, %371 : i32
    %373 = tpu.assume_multiple %372, 8 : i32
    %c0_154 = arith.constant 0 : index
    %374 = arith.index_cast %373 : i32 to index
    %c0_155 = arith.constant 0 : index
    %375 = vector.load %arg10[%c0_154, %374, %c0_155] : memref<1x64x128xf32, #tpu.memory_space<vmem>>, vector<1x8x128xf32>
    %376 = vector.shape_cast %375 : vector<1x8x128xf32> to vector<8x128xf32>
    %377 = vector.shape_cast %370 : vector<8x128xf32> to vector<1x8x128xf32>
    tpu.vector_store %arg10[%c0_154, %374, %c0_155], %377 {strides = array<i32>} : memref<1x64x128xf32, #tpu.memory_space<vmem>>, vector<1x8x128xf32>,
    %c3_i32_156 = arith.constant 3 : i32
    %c8_i32_157 = arith.constant 8 : i32
    %378 = arith.muli %c3_i32_156, %c8_i32_157 : i32
    %379 = tpu.assume_multiple %378, 8 : i32
    %c0_158 = arith.constant 0 : index
    %380 = arith.index_cast %379 : i32 to index
    %c0_159 = arith.constant 0 : index
    %381 = vector.load %arg13[%c0_158, %380, %c0_159] : memref<1x64x512xf32, #tpu.memory_space<vmem>>, vector<1x8x512xf32>
    %382 = vector.shape_cast %381 : vector<1x8x512xf32> to vector<8x512xf32>
    %c0_160 = arith.constant 0 : index
    %c0_161 = arith.constant 0 : index
    %383 = vector.load %arg6[%c0_160, %c0_161] : memref<128x512xf32, #tpu.memory_space<vmem>>, vector<128x512xf32>
    %cst_162 = arith.constant dense<0.000000e+00> : vector<8x512xf32>
    %384 = tpu.matmul %370, %383, %cst_162 {dimension_numbers = #tpu.dot_dimension_numbers<[1], [0], [0], [1], [0, 0, 1, 1], [], []>} : vector<8x128xf32>, vector<128x512xf32>, vector<8x512xf32> -> vector<8x512xf32>
    %385 = arith.addf %382, %384 : vector<8x512xf32>
    %386 = vector.extract_strided_slice %385 {offsets = [0, 0], sizes = [8, 384], strides = [1, 1]} : vector<8x512xf32> to vector<8x384xf32>
    %387 = arith.negf %386 : vector<8x384xf32>
    %388 = math.exp %387 : vector<8x384xf32>
    %cst_163 = arith.constant 1.000000e+00 : f32
    %389 = vector.broadcast %cst_163 : f32 to vector<8x384xf32>
    %390 = arith.addf %389, %388 : vector<8x384xf32>
    %391 = arith.divf %389, %390 : vector<8x384xf32>
    %392 = vector.extract_strided_slice %391 {offsets = [0, 0], sizes = [8, 128], strides = [1, 1]} : vector<8x384xf32> to vector<8x128xf32>
    %393 = vector.extract_strided_slice %391 {offsets = [0, 128], sizes = [8, 128], strides = [1, 1]} : vector<8x384xf32> to vector<8x128xf32>
    %394 = vector.extract_strided_slice %391 {offsets = [0, 256], sizes = [8, 128], strides = [1, 1]} : vector<8x384xf32> to vector<8x128xf32>
    %395 = vector.extract_strided_slice %385 {offsets = [0, 384], sizes = [8, 128], strides = [1, 1]} : vector<8x512xf32> to vector<8x128xf32>
    %396 = math.tanh %395 : vector<8x128xf32>
    %397 = arith.mulf %393, %368 : vector<8x128xf32>
    %398 = arith.mulf %392, %396 : vector<8x128xf32>
    %399 = arith.addf %397, %398 : vector<8x128xf32>
    %400 = math.tanh %399 : vector<8x128xf32>
    %401 = arith.mulf %394, %400 : vector<8x128xf32>
    %c8_i32_164 = arith.constant 8 : i32
    %402 = arith.muli %c3_i32_156, %c8_i32_164 : i32
    %c0_i32_165 = arith.constant 0 : i32
    %403 = arith.addi %c0_i32_165, %402 : i32
    %404 = tpu.assume_multiple %403, 8 : i32
    %c0_166 = arith.constant 0 : index
    %405 = arith.index_cast %404 : i32 to index
    %c0_167 = arith.constant 0 : index
    %406 = vector.load %arg10[%c0_166, %405, %c0_167] : memref<1x64x128xf32, #tpu.memory_space<vmem>>, vector<1x8x128xf32>
    %407 = vector.shape_cast %406 : vector<1x8x128xf32> to vector<8x128xf32>
    %408 = vector.shape_cast %401 : vector<8x128xf32> to vector<1x8x128xf32>
    tpu.vector_store %arg10[%c0_166, %405, %c0_167], %408 {strides = array<i32>} : memref<1x64x128xf32, #tpu.memory_space<vmem>>, vector<1x8x128xf32>,
    %c4_i32_168 = arith.constant 4 : i32
    %c8_i32_169 = arith.constant 8 : i32
    %409 = arith.muli %c4_i32_168, %c8_i32_169 : i32
    %410 = tpu.assume_multiple %409, 8 : i32
    %c0_170 = arith.constant 0 : index
    %411 = arith.index_cast %410 : i32 to index
    %c0_171 = arith.constant 0 : index
    %412 = vector.load %arg13[%c0_170, %411, %c0_171] : memref<1x64x512xf32, #tpu.memory_space<vmem>>, vector<1x8x512xf32>
    %413 = vector.shape_cast %412 : vector<1x8x512xf32> to vector<8x512xf32>
    %c0_172 = arith.constant 0 : index
    %c0_173 = arith.constant 0 : index
    %414 = vector.load %arg6[%c0_172, %c0_173] : memref<128x512xf32, #tpu.memory_space<vmem>>, vector<128x512xf32>
    %cst_174 = arith.constant dense<0.000000e+00> : vector<8x512xf32>
    %415 = tpu.matmul %401, %414, %cst_174 {dimension_numbers = #tpu.dot_dimension_numbers<[1], [0], [0], [1], [0, 0, 1, 1], [], []>} : vector<8x128xf32>, vector<128x512xf32>, vector<8x512xf32> -> vector<8x512xf32>
    %416 = arith.addf %413, %415 : vector<8x512xf32>
    %417 = vector.extract_strided_slice %416 {offsets = [0, 0], sizes = [8, 384], strides = [1, 1]} : vector<8x512xf32> to vector<8x384xf32>
    %418 = arith.negf %417 : vector<8x384xf32>
    %419 = math.exp %418 : vector<8x384xf32>
    %cst_175 = arith.constant 1.000000e+00 : f32
    %420 = vector.broadcast %cst_175 : f32 to vector<8x384xf32>
    %421 = arith.addf %420, %419 : vector<8x384xf32>
    %422 = arith.divf %420, %421 : vector<8x384xf32>
    %423 = vector.extract_strided_slice %422 {offsets = [0, 0], sizes = [8, 128], strides = [1, 1]} : vector<8x384xf32> to vector<8x128xf32>
    %424 = vector.extract_strided_slice %422 {offsets = [0, 128], sizes = [8, 128], strides = [1, 1]} : vector<8x384xf32> to vector<8x128xf32>
    %425 = vector.extract_strided_slice %422 {offsets = [0, 256], sizes = [8, 128], strides = [1, 1]} : vector<8x384xf32> to vector<8x128xf32>
    %426 = vector.extract_strided_slice %416 {offsets = [0, 384], sizes = [8, 128], strides = [1, 1]} : vector<8x512xf32> to vector<8x128xf32>
    %427 = math.tanh %426 : vector<8x128xf32>
    %428 = arith.mulf %424, %399 : vector<8x128xf32>
    %429 = arith.mulf %423, %427 : vector<8x128xf32>
    %430 = arith.addf %428, %429 : vector<8x128xf32>
    %431 = math.tanh %430 : vector<8x128xf32>
    %432 = arith.mulf %425, %431 : vector<8x128xf32>
    %c8_i32_176 = arith.constant 8 : i32
    %433 = arith.muli %c4_i32_168, %c8_i32_176 : i32
    %c0_i32_177 = arith.constant 0 : i32
    %434 = arith.addi %c0_i32_177, %433 : i32
    %435 = tpu.assume_multiple %434, 8 : i32
    %c0_178 = arith.constant 0 : index
    %436 = arith.index_cast %435 : i32 to index
    %c0_179 = arith.constant 0 : index
    %437 = vector.load %arg10[%c0_178, %436, %c0_179] : memref<1x64x128xf32, #tpu.memory_space<vmem>>, vector<1x8x128xf32>
    %438 = vector.shape_cast %437 : vector<1x8x128xf32> to vector<8x128xf32>
    %439 = vector.shape_cast %432 : vector<8x128xf32> to vector<1x8x128xf32>
    tpu.vector_store %arg10[%c0_178, %436, %c0_179], %439 {strides = array<i32>} : memref<1x64x128xf32, #tpu.memory_space<vmem>>, vector<1x8x128xf32>,
    %c5_i32_180 = arith.constant 5 : i32
    %c8_i32_181 = arith.constant 8 : i32
    %440 = arith.muli %c5_i32_180, %c8_i32_181 : i32
    %441 = tpu.assume_multiple %440, 8 : i32
    %c0_182 = arith.constant 0 : index
    %442 = arith.index_cast %441 : i32 to index
    %c0_183 = arith.constant 0 : index
    %443 = vector.load %arg13[%c0_182, %442, %c0_183] : memref<1x64x512xf32, #tpu.memory_space<vmem>>, vector<1x8x512xf32>
    %444 = vector.shape_cast %443 : vector<1x8x512xf32> to vector<8x512xf32>
    %c0_184 = arith.constant 0 : index
    %c0_185 = arith.constant 0 : index
    %445 = vector.load %arg6[%c0_184, %c0_185] : memref<128x512xf32, #tpu.memory_space<vmem>>, vector<128x512xf32>
    %cst_186 = arith.constant dense<0.000000e+00> : vector<8x512xf32>
    %446 = tpu.matmul %432, %445, %cst_186 {dimension_numbers = #tpu.dot_dimension_numbers<[1], [0], [0], [1], [0, 0, 1, 1], [], []>} : vector<8x128xf32>, vector<128x512xf32>, vector<8x512xf32> -> vector<8x512xf32>
    %447 = arith.addf %444, %446 : vector<8x512xf32>
    %448 = vector.extract_strided_slice %447 {offsets = [0, 0], sizes = [8, 384], strides = [1, 1]} : vector<8x512xf32> to vector<8x384xf32>
    %449 = arith.negf %448 : vector<8x384xf32>
    %450 = math.exp %449 : vector<8x384xf32>
    %cst_187 = arith.constant 1.000000e+00 : f32
    %451 = vector.broadcast %cst_187 : f32 to vector<8x384xf32>
    %452 = arith.addf %451, %450 : vector<8x384xf32>
    %453 = arith.divf %451, %452 : vector<8x384xf32>
    %454 = vector.extract_strided_slice %453 {offsets = [0, 0], sizes = [8, 128], strides = [1, 1]} : vector<8x384xf32> to vector<8x128xf32>
    %455 = vector.extract_strided_slice %453 {offsets = [0, 128], sizes = [8, 128], strides = [1, 1]} : vector<8x384xf32> to vector<8x128xf32>
    %456 = vector.extract_strided_slice %453 {offsets = [0, 256], sizes = [8, 128], strides = [1, 1]} : vector<8x384xf32> to vector<8x128xf32>
    %457 = vector.extract_strided_slice %447 {offsets = [0, 384], sizes = [8, 128], strides = [1, 1]} : vector<8x512xf32> to vector<8x128xf32>
    %458 = math.tanh %457 : vector<8x128xf32>
    %459 = arith.mulf %455, %430 : vector<8x128xf32>
    %460 = arith.mulf %454, %458 : vector<8x128xf32>
    %461 = arith.addf %459, %460 : vector<8x128xf32>
    %462 = math.tanh %461 : vector<8x128xf32>
    %463 = arith.mulf %456, %462 : vector<8x128xf32>
    %c8_i32_188 = arith.constant 8 : i32
    %464 = arith.muli %c5_i32_180, %c8_i32_188 : i32
    %c0_i32_189 = arith.constant 0 : i32
    %465 = arith.addi %c0_i32_189, %464 : i32
    %466 = tpu.assume_multiple %465, 8 : i32
    %c0_190 = arith.constant 0 : index
    %467 = arith.index_cast %466 : i32 to index
    %c0_191 = arith.constant 0 : index
    %468 = vector.load %arg10[%c0_190, %467, %c0_191] : memref<1x64x128xf32, #tpu.memory_space<vmem>>, vector<1x8x128xf32>
    %469 = vector.shape_cast %468 : vector<1x8x128xf32> to vector<8x128xf32>
    %470 = vector.shape_cast %463 : vector<8x128xf32> to vector<1x8x128xf32>
    tpu.vector_store %arg10[%c0_190, %467, %c0_191], %470 {strides = array<i32>} : memref<1x64x128xf32, #tpu.memory_space<vmem>>, vector<1x8x128xf32>,
    %c6_i32_192 = arith.constant 6 : i32
    %c8_i32_193 = arith.constant 8 : i32
    %471 = arith.muli %c6_i32_192, %c8_i32_193 : i32
    %472 = tpu.assume_multiple %471, 8 : i32
    %c0_194 = arith.constant 0 : index
    %473 = arith.index_cast %472 : i32 to index
    %c0_195 = arith.constant 0 : index
    %474 = vector.load %arg13[%c0_194, %473, %c0_195] : memref<1x64x512xf32, #tpu.memory_space<vmem>>, vector<1x8x512xf32>
    %475 = vector.shape_cast %474 : vector<1x8x512xf32> to vector<8x512xf32>
    %c0_196 = arith.constant 0 : index
    %c0_197 = arith.constant 0 : index
    %476 = vector.load %arg6[%c0_196, %c0_197] : memref<128x512xf32, #tpu.memory_space<vmem>>, vector<128x512xf32>
    %cst_198 = arith.constant dense<0.000000e+00> : vector<8x512xf32>
    %477 = tpu.matmul %463, %476, %cst_198 {dimension_numbers = #tpu.dot_dimension_numbers<[1], [0], [0], [1], [0, 0, 1, 1], [], []>} : vector<8x128xf32>, vector<128x512xf32>, vector<8x512xf32> -> vector<8x512xf32>
    %478 = arith.addf %475, %477 : vector<8x512xf32>
    %479 = vector.extract_strided_slice %478 {offsets = [0, 0], sizes = [8, 384], strides = [1, 1]} : vector<8x512xf32> to vector<8x384xf32>
    %480 = arith.negf %479 : vector<8x384xf32>
    %481 = math.exp %480 : vector<8x384xf32>
    %cst_199 = arith.constant 1.000000e+00 : f32
    %482 = vector.broadcast %cst_199 : f32 to vector<8x384xf32>
    %483 = arith.addf %482, %481 : vector<8x384xf32>
    %484 = arith.divf %482, %483 : vector<8x384xf32>
    %485 = vector.extract_strided_slice %484 {offsets = [0, 0], sizes = [8, 128], strides = [1, 1]} : vector<8x384xf32> to vector<8x128xf32>
    %486 = vector.extract_strided_slice %484 {offsets = [0, 128], sizes = [8, 128], strides = [1, 1]} : vector<8x384xf32> to vector<8x128xf32>
    %487 = vector.extract_strided_slice %484 {offsets = [0, 256], sizes = [8, 128], strides = [1, 1]} : vector<8x384xf32> to vector<8x128xf32>
    %488 = vector.extract_strided_slice %478 {offsets = [0, 384], sizes = [8, 128], strides = [1, 1]} : vector<8x512xf32> to vector<8x128xf32>
    %489 = math.tanh %488 : vector<8x128xf32>
    %490 = arith.mulf %486, %461 : vector<8x128xf32>
    %491 = arith.mulf %485, %489 : vector<8x128xf32>
    %492 = arith.addf %490, %491 : vector<8x128xf32>
    %493 = math.tanh %492 : vector<8x128xf32>
    %494 = arith.mulf %487, %493 : vector<8x128xf32>
    %c8_i32_200 = arith.constant 8 : i32
    %495 = arith.muli %c6_i32_192, %c8_i32_200 : i32
    %c0_i32_201 = arith.constant 0 : i32
    %496 = arith.addi %c0_i32_201, %495 : i32
    %497 = tpu.assume_multiple %496, 8 : i32
    %c0_202 = arith.constant 0 : index
    %498 = arith.index_cast %497 : i32 to index
    %c0_203 = arith.constant 0 : index
    %499 = vector.load %arg10[%c0_202, %498, %c0_203] : memref<1x64x128xf32, #tpu.memory_space<vmem>>, vector<1x8x128xf32>
    %500 = vector.shape_cast %499 : vector<1x8x128xf32> to vector<8x128xf32>
    %501 = vector.shape_cast %494 : vector<8x128xf32> to vector<1x8x128xf32>
    tpu.vector_store %arg10[%c0_202, %498, %c0_203], %501 {strides = array<i32>} : memref<1x64x128xf32, #tpu.memory_space<vmem>>, vector<1x8x128xf32>,
    %c7_i32_204 = arith.constant 7 : i32
    %c8_i32_205 = arith.constant 8 : i32
    %502 = arith.muli %c7_i32_204, %c8_i32_205 : i32
    %503 = tpu.assume_multiple %502, 8 : i32
    %c0_206 = arith.constant 0 : index
    %504 = arith.index_cast %503 : i32 to index
    %c0_207 = arith.constant 0 : index
    %505 = vector.load %arg13[%c0_206, %504, %c0_207] : memref<1x64x512xf32, #tpu.memory_space<vmem>>, vector<1x8x512xf32>
    %506 = vector.shape_cast %505 : vector<1x8x512xf32> to vector<8x512xf32>
    %c0_208 = arith.constant 0 : index
    %c0_209 = arith.constant 0 : index
    %507 = vector.load %arg6[%c0_208, %c0_209] : memref<128x512xf32, #tpu.memory_space<vmem>>, vector<128x512xf32>
    %cst_210 = arith.constant dense<0.000000e+00> : vector<8x512xf32>
    %508 = tpu.matmul %494, %507, %cst_210 {dimension_numbers = #tpu.dot_dimension_numbers<[1], [0], [0], [1], [0, 0, 1, 1], [], []>} : vector<8x128xf32>, vector<128x512xf32>, vector<8x512xf32> -> vector<8x512xf32>
    %509 = arith.addf %506, %508 : vector<8x512xf32>
    %510 = vector.extract_strided_slice %509 {offsets = [0, 0], sizes = [8, 384], strides = [1, 1]} : vector<8x512xf32> to vector<8x384xf32>
    %511 = arith.negf %510 : vector<8x384xf32>
    %512 = math.exp %511 : vector<8x384xf32>
    %cst_211 = arith.constant 1.000000e+00 : f32
    %513 = vector.broadcast %cst_211 : f32 to vector<8x384xf32>
    %514 = arith.addf %513, %512 : vector<8x384xf32>
    %515 = arith.divf %513, %514 : vector<8x384xf32>
    %516 = vector.extract_strided_slice %515 {offsets = [0, 0], sizes = [8, 128], strides = [1, 1]} : vector<8x384xf32> to vector<8x128xf32>
    %517 = vector.extract_strided_slice %515 {offsets = [0, 128], sizes = [8, 128], strides = [1, 1]} : vector<8x384xf32> to vector<8x128xf32>
    %518 = vector.extract_strided_slice %515 {offsets = [0, 256], sizes = [8, 128], strides = [1, 1]} : vector<8x384xf32> to vector<8x128xf32>
    %519 = vector.extract_strided_slice %509 {offsets = [0, 384], sizes = [8, 128], strides = [1, 1]} : vector<8x512xf32> to vector<8x128xf32>
    %520 = math.tanh %519 : vector<8x128xf32>
    %521 = arith.mulf %517, %492 : vector<8x128xf32>
    %522 = arith.mulf %516, %520 : vector<8x128xf32>
    %523 = arith.addf %521, %522 : vector<8x128xf32>
    %524 = math.tanh %523 : vector<8x128xf32>
    %525 = arith.mulf %518, %524 : vector<8x128xf32>
    %c8_i32_212 = arith.constant 8 : i32
    %526 = arith.muli %c7_i32_204, %c8_i32_212 : i32
    %c0_i32_213 = arith.constant 0 : i32
    %527 = arith.addi %c0_i32_213, %526 : i32
    %528 = tpu.assume_multiple %527, 8 : i32
    %c0_214 = arith.constant 0 : index
    %529 = arith.index_cast %528 : i32 to index
    %c0_215 = arith.constant 0 : index
    %530 = vector.load %arg10[%c0_214, %529, %c0_215] : memref<1x64x128xf32, #tpu.memory_space<vmem>>, vector<1x8x128xf32>
    %531 = vector.shape_cast %530 : vector<1x8x128xf32> to vector<8x128xf32>
    %532 = vector.shape_cast %525 : vector<8x128xf32> to vector<1x8x128xf32>
    tpu.vector_store %arg10[%c0_214, %529, %c0_215], %532 {strides = array<i32>} : memref<1x64x128xf32, #tpu.memory_space<vmem>>, vector<1x8x128xf32>,
    %c8_i32_216 = arith.constant 8 : i32
    %c0_217 = arith.constant 0 : index
    %c1 = arith.constant 1 : index
    %c0_218 = arith.constant 0 : index
    %c0_219 = arith.constant 0 : index
    %533 = vector.load %arg12[%c0_217, %c1, %c0_218, %c0_219] : memref<1x2x8x128xf32, #tpu.memory_space<vmem>>, vector<1x1x8x128xf32>
    %534 = vector.shape_cast %533 : vector<1x1x8x128xf32> to vector<8x128xf32>
    %535 = vector.shape_cast %523 : vector<8x128xf32> to vector<1x1x8x128xf32>
    tpu.vector_store %arg12[%c0_217, %c1, %c0_218, %c0_219], %535 {strides = array<i32>} : memref<1x2x8x128xf32, #tpu.memory_space<vmem>>, vector<1x1x8x128xf32>,
    %cst_220 = arith.constant dense<0.000000e+00> : vector<8xf32>
    %536 = vector.multi_reduction <add>, %525, %cst_220 [1] : vector<8x128xf32> to vector<8xf32>
    %537 = vector.shape_cast %536 : vector<8xf32> to vector<8x1xf32>
    %cst_221 = arith.constant 3.125000e-02 : f32
    %538 = vector.broadcast %cst_221 : f32 to vector<8x1xf32>
    %539 = arith.mulf %537, %538 : vector<8x1xf32>
    %540 = arith.mulf %525, %525 : vector<8x128xf32>
    %cst_222 = arith.constant dense<0.000000e+00> : vector<8xf32>
    %541 = vector.multi_reduction <add>, %540, %cst_222 [1] : vector<8x128xf32> to vector<8xf32>
    %542 = vector.shape_cast %541 : vector<8xf32> to vector<8x1xf32>
    %cst_223 = arith.constant 3.125000e-02 : f32
    %543 = vector.broadcast %cst_223 : f32 to vector<8x1xf32>
    %544 = arith.mulf %542, %543 : vector<8x1xf32>
    %545 = arith.mulf %539, %539 : vector<8x1xf32>
    %546 = arith.subf %544, %545 : vector<8x1xf32>
    %547 = vector.broadcast %539 : vector<8x1xf32> to vector<8x128xf32>
    %548 = arith.subf %525, %547 : vector<8x128xf32>
    %cst_224 = arith.constant 9.99999974E-6 : f32
    %549 = vector.broadcast %cst_224 : f32 to vector<8x1xf32>
    %550 = arith.addf %546, %549 : vector<8x1xf32>
    %551 = math.rsqrt %550 : vector<8x1xf32>
    %552 = vector.broadcast %551 : vector<8x1xf32> to vector<8x128xf32>
    %553 = arith.mulf %548, %552 : vector<8x128xf32>
    %c0_225 = arith.constant 0 : index
    %c0_226 = arith.constant 0 : index
    %554 = vector.load %arg8[%c0_225, %c0_226] : memref<1x128xf32, #tpu.memory_space<vmem>>, vector<1x128xf32>
    %555 = vector.broadcast %554 : vector<1x128xf32> to vector<8x128xf32>
    %556 = arith.mulf %553, %555 : vector<8x128xf32>
    %c0_227 = arith.constant 0 : index
    %c0_228 = arith.constant 0 : index
    %557 = vector.load %arg9[%c0_227, %c0_228] : memref<1x128xf32, #tpu.memory_space<vmem>>, vector<1x128xf32>
    %558 = vector.broadcast %557 : vector<1x128xf32> to vector<8x128xf32>
    %559 = arith.addf %556, %558 : vector<8x128xf32>
    %c0_229 = arith.constant 0 : index
    %c1_230 = arith.constant 1 : index
    %c0_231 = arith.constant 0 : index
    %c0_232 = arith.constant 0 : index
    %560 = vector.load %arg11[%c0_229, %c1_230, %c0_231, %c0_232] : memref<1x2x8x128xf32, #tpu.memory_space<vmem>>, vector<1x1x8x128xf32>
    %561 = vector.shape_cast %560 : vector<1x1x8x128xf32> to vector<8x128xf32>
    %562 = vector.shape_cast %559 : vector<8x128xf32> to vector<1x1x8x128xf32>
    tpu.vector_store %arg11[%c0_229, %c1_230, %c0_231, %c0_232], %562 {strides = array<i32>} : memref<1x2x8x128xf32, #tpu.memory_space<vmem>>, vector<1x1x8x128xf32>,
    return
  }
  func.func @transform_0(%arg0: i32) -> (i32, i32, i32) {
    %c0_i32 = arith.constant 0 : i32
    %c0_i32_0 = arith.constant 0 : i32
    %c0_i32_1 = arith.constant 0 : i32
    return %arg0, %c0_i32, %c0_i32_0 : i32, i32, i32
  }
  func.func @transform_1(%arg0: i32) -> (i32, i32) {
    %c0_i32 = arith.constant 0 : i32
    %c0_i32_0 = arith.constant 0 : i32
    %c0_i32_1 = arith.constant 0 : i32
    return %c0_i32, %c0_i32_0 : i32, i32
  }
  func.func @transform_2(%arg0: i32) -> (i32, i32) {
    %c0_i32 = arith.constant 0 : i32
    %c0_i32_0 = arith.constant 0 : i32
    %c0_i32_1 = arith.constant 0 : i32
    return %c0_i32, %c0_i32_0 : i32, i32
  }
  func.func @transform_3(%arg0: i32) -> (i32, i32) {
    %c0_i32 = arith.constant 0 : i32
    %c0_i32_0 = arith.constant 0 : i32
    %c0_i32_1 = arith.constant 0 : i32
    return %c0_i32, %c0_i32_0 : i32, i32
  }
  func.func @transform_4(%arg0: i32) -> (i32, i32) {
    %c0_i32 = arith.constant 0 : i32
    %c0_i32_0 = arith.constant 0 : i32
    %c0_i32_1 = arith.constant 0 : i32
    return %c0_i32, %c0_i32_0 : i32, i32
  }
  func.func @transform_5(%arg0: i32) -> (i32, i32) {
    %c0_i32 = arith.constant 0 : i32
    %c0_i32_0 = arith.constant 0 : i32
    %c0_i32_1 = arith.constant 0 : i32
    return %c0_i32, %c0_i32_0 : i32, i32
  }
  func.func @transform_6(%arg0: i32) -> (i32, i32) {
    %c0_i32 = arith.constant 0 : i32
    %c0_i32_0 = arith.constant 0 : i32
    %c0_i32_1 = arith.constant 0 : i32
    return %c0_i32, %c0_i32_0 : i32, i32
  }
  func.func @transform_7(%arg0: i32) -> (i32, i32) {
    %c0_i32 = arith.constant 0 : i32
    %c0_i32_0 = arith.constant 0 : i32
    %c0_i32_1 = arith.constant 0 : i32
    return %c0_i32, %c0_i32_0 : i32, i32
  }
  func.func @transform_8(%arg0: i32) -> (i32, i32) {
    %c0_i32 = arith.constant 0 : i32
    %c0_i32_0 = arith.constant 0 : i32
    %c0_i32_1 = arith.constant 0 : i32
    return %c0_i32, %c0_i32_0 : i32, i32
  }
  func.func @transform_9(%arg0: i32) -> (i32, i32, i32) {
    %c0_i32 = arith.constant 0 : i32
    %c0_i32_0 = arith.constant 0 : i32
    %c0_i32_1 = arith.constant 0 : i32
    return %arg0, %c0_i32, %c0_i32_0 : i32, i32, i32
  }
  func.func @transform_10(%arg0: i32) -> (i32, i32, i32, i32) {
    %c0_i32 = arith.constant 0 : i32
    %c0_i32_0 = arith.constant 0 : i32
    %c0_i32_1 = arith.constant 0 : i32
    %c0_i32_2 = arith.constant 0 : i32
    return %arg0, %c0_i32, %c0_i32_0, %c0_i32_1 : i32, i32, i32, i32
  }
  func.func @transform_11(%arg0: i32) -> (i32, i32, i32, i32) {
    %c0_i32 = arith.constant 0 : i32
    %c0_i32_0 = arith.constant 0 : i32
    %c0_i32_1 = arith.constant 0 : i32
    %c0_i32_2 = arith.constant 0 : i32
    return %arg0, %c0_i32, %c0_i32_0, %c0_i32_1 : i32, i32, i32, i32
  }
}

</mosaic_0001>

<bundles_post_ra>
// kernel: tpu_custom_call.1
= control target key start
LH: loop header
LB: loop body
LE: loop exit
PB: predicated region body
PF: predicated region fallthrough
CT: control target
= control target key end

     0   :  { %17 = vsyncpa [#allocation5], 0  ;;  %s7719_s0 = inlined_call_operand.vmem [shape: f32[1,64,16], index: 0, kind: input, shape index: {}]   ;;  %s7720_s1 = inlined_call_operand.vmem [shape: f32[16,512], index: 1, kind: input, shape index: {}]   ;;  %s7721_s2 = inlined_call_operand.hbm [shape: f32[128,512], index: 2, kind: input, shape index: {}]   ;;  %s7722_s3 = inlined_call_operand.vmem [shape: f32[1,512], index: 3, kind: input, shape index: {}]   ;;  %s7723_s4 = inlined_call_operand.hbm [shape: f32[128,512], index: 4, kind: input, shape index: {}]   ;;  %s7724_s5 = inlined_call_operand.hbm [shape: f32[128,512], index: 5, kind: input, shape index: {}]   ;;  %s7725_s6 = inlined_call_operand.vmem [shape: f32[1,512], index: 6, kind: input, shape index: {}]   ;;  %s7726_s7 = inlined_call_operand.vmem [shape: f32[1,128], index: 7, kind: input, shape index: {}]   ;;  %s7727_s8 = inlined_call_operand.vmem [shape: f32[1,128], index: 8, kind: input, shape index: {}]   ;;  %s7728_s9 = inlined_call_operand.hbm [shape: f32[1,64,128], index: 9, kind: output, shape index: {0}]   ;;  %s7729_s10 = inlined_call_operand.hbm [shape: f32[1,2,8,128], index: 10, kind: output, shape index: {1}]   ;;  %s7730_s11 = inlined_call_operand.hbm [shape: f32[1,2,8,128], index: 11, kind: output, shape index: {2}]  }
   0x1   :  { %18 = vsyncpa [#allocation8], 0 }
   0x2   :  { %19 = vsyncpa [#allocation6], 0 }
   0x3   :  { %20 = vsyncpa [#allocation12], 0  ;;  %s6438_s17 = smov [#allocation7]   ;;  %s6439_s19 = smov [#allocation4]  }
   0x4   :  { %s44_s18 = sshll.u32 %s6438_s17, 4  ;;  %s30_s20 = sshll.u32 %s6439_s19, 4  ;;  %s45_s18 = int_to_ptr.vmem [resolvable:$true] %s44_s18  ;;  %s6509_s20 = int_to_ptr.vmem [resolvable:$true] %s30_s20 }
   0x5   :  { %s6298_s23 = scalar_lea.hbm %s7723_s4, 8192 }
   0x6   :  { %p6299_p0 = scmp.ne.s32.totalorder %s7723_s4, %s6298_s23  ;;  %p6302_p1 = scmp.lt.u32.totalorder %s6298_s23, %s7723_s4 }
   0x8   :  { %p6304_p2 = pnand %p6302_p1, %p6299_p0 }
   0xa   :  { %6307 = shalt.err (!%p6304_p2)
}
   0xb   :  { %s6308_s28 = scalar_lea.vmem %s45_s18, 8192  ;;  %p6313_p4 = scmp.lt.s32.totalorder %s45_s18, %s45_s18 }
   0xc   :  { %p6309_p3 = scmp.ne.s32.totalorder %s45_s18, %s6308_s28  ;;  %p6314_p5 = scmp.lt.s32.totalorder %s6308_s28, %s6308_s28 }
   0xe   :  { %p6315_p6 = por %p6314_p5, %p6313_p4 }
  0x10   :  { %p6316_p7 = pnand %p6315_p6, %p6309_p3 }
  0x12   :  { %6319 = shalt.err (!%p6316_p7)
}
  0x13   :  { %s6440_s29 = smov 512   ;;  %s6441_s30 = smov 32  }
  0x14   :  { %50 = dma.hbm_to_vmem [thread:$0]  %s7723_s4, 8192, %s45_s18, [#allocation8], %s6440_s29, %s6440_s29, %s6441_s30  }
  0x15   :  { %s6320_s16 = scalar_lea.hbm %s7721_s2, 8192 }
  0x16   :  { %p6321_p8 = scmp.ne.s32.totalorder %s7721_s2, %s6320_s16  ;;  %p6324_p9 = scmp.lt.u32.totalorder %s6320_s16, %s7721_s2 }
  0x18   :  { %p6326_p10 = pnand %p6324_p9, %p6321_p8 }
  0x1a   :  { %6329 = shalt.err (!%p6326_p10)
}
  0x1b   :  { %s6330_s23 = scalar_lea.vmem %s6509_s20, 8192  ;;  %p6335_p12 = scmp.lt.s32.totalorder %s6509_s20, %s6509_s20 }
  0x1c   :  { %p6331_p11 = scmp.ne.s32.totalorder %s6509_s20, %s6330_s23  ;;  %p6336_p13 = scmp.lt.s32.totalorder %s6330_s23, %s6330_s23 }
  0x1e   :  { %p6337_p0 = por %p6336_p13, %p6335_p12 }
  0x20   :  { %p6338_p1 = pnand %p6337_p0, %p6331_p11 }
  0x22   :  { %6341 = shalt.err (!%p6338_p1)
}
  0x23   :  { %36 = dma.hbm_to_vmem [thread:$0]  %s7721_s2, 8192, %s6509_s20, [#allocation5], %s6440_s29, %s6440_s29, %s6441_s30  }
  0x24   :  { %s6442_s24 = smov [#allocation9]   ;;  %s6342_s28 = scalar_lea.hbm %s7724_s5, 8192 }
  0x25   :  { %s56_s25 = sshll.u32 %s6442_s24, 4  ;;  %p6343_p2 = scmp.ne.s32.totalorder %s7724_s5, %s6342_s28  ;;  %s57_s25 = int_to_ptr.vmem [resolvable:$true] %s56_s25 }
  0x26   :  { %p6346_p3 = scmp.lt.u32.totalorder %s6342_s28, %s7724_s5 }
  0x28   :  { %p6348_p4 = pnand %p6346_p3, %p6343_p2 }
  0x2a   :  { %6351 = shalt.err (!%p6348_p4)
}
  0x2b   :  { %s6352_s16 = scalar_lea.vmem %s57_s25, 8192  ;;  %p6357_p6 = scmp.lt.s32.totalorder %s57_s25, %s57_s25 }
  0x2c   :  { %p6353_p5 = scmp.ne.s32.totalorder %s57_s25, %s6352_s16  ;;  %p6358_p7 = scmp.lt.s32.totalorder %s6352_s16, %s6352_s16 }
  0x2e   :  { %p6359_p8 = por %p6358_p7, %p6357_p6 }
  0x30   :  { %p6360_p9 = pnand %p6359_p8, %p6353_p5 }
  0x32   :  { %6363 = shalt.err (!%p6360_p9)
}
  0x33   :  { %62 = dma.hbm_to_vmem [thread:$0]  %s7724_s5, 8192, %s57_s25, [#allocation8], %s6440_s29, %s6440_s29, %s6441_s30  }
  0x34   :  { %6430 = dma.done.wait [#allocation5], 8192  }
  0x35   :  { %6431 = vsyncadd [#allocation5], 4294959104 }
  0x36   :  { %6432 = dma.done.wait [#allocation8], 16384  }
  0x37   :  { %6433 = vsyncadd [#allocation8], 4294950912  ;;  %v6443_v0 = vmov 0.0   ;;  %v87_v1 = vld [vmem:[%s7720_s1 + $0x8] sm:$0xff]  ;;  %v89_v3 = vld [vmem:[%s7720_s1 + $0x18] sm:$0xff]  ;;  %vm116_vm0 = vcmask 130048  }
  0x38   :  { %205 = vmatprep.mubr.f32.mxu0 %v6443_v0  ;;  %318 = vmatprep.mubr.f32.mxu1 %v6443_v0  ;;  %v91_v2 = vld [vmem:[%s7720_s1 + $0x28] sm:$0xff]  ;;  %v93_v5 = vld [vmem:[%s7720_s1 + $0x38] sm:$0xff]  ;;  %v86_v6 = vld [vmem:[%s7720_s1] sm:$0xff] }
  0x39   :  { %v4801_v4 = vpack.c.bf16 %v91_v2, %v87_v1  ;;  %v90_v7 = vld [vmem:[%s7720_s1 + $0x20] sm:$0xff]  ;;  %v4805_v8 = vpack.c.bf16 %v93_v5, %v89_v3  ;;  %v88_v10 = vld [vmem:[%s7720_s1 + $0x10] sm:$0xff]  ;;  %v407_v14 = vld [vmem:[#allocation4 + $0x8] sm:$0xff] }
  0x3a   :  { %v4803_v9 = vpack.c.bf16 %v90_v7, %v86_v6  ;;  %v92_v11 = vld [vmem:[%s7720_s1 + $0x30] sm:$0xff]  ;;  %v78_v12 = vld [vmem:[%s7719_s0] sm:$0xff]  ;;  %v411_v15 = vld [vmem:[#allocation4 + $0x28] sm:$0xff] }
  0x3b   :  { %4802 = vmatprep.subr.bf16.mxu0 %v4801_v4  ;;  %v4807_v13 = vpack.c.bf16 %v92_v11, %v88_v10  ;;  %v409_v16 = vld [vmem:[#allocation4 + $0x18] sm:$0xff]  ;;  %4806 = vmatprep.subr.bf16.mxu1 %v4805_v8  ;;  %v6590_v17 = vpack.c.bf16 %v411_v15, %v407_v14  ;;  %v406_v19 = vld [vmem:[#allocation4] sm:$0xff]  ;;  %v408_v23 = vld [vmem:[#allocation4 + $0x10] sm:$0xff] }
  0x3c   :  { %4804 = vmatpush1.bf16.msra.mxu0 %v4803_v9  ;;  %v413_v18 = vld [vmem:[#allocation4 + $0x38] sm:$0xff]  ;;  %v410_v20 = vld [vmem:[#allocation4 + $0x20] sm:$0xff]  ;;  %v412_v24 = vld [vmem:[#allocation4 + $0x30] sm:$0xff] }
  0x3d   :  { %4808 = vmatpush1.bf16.msra.mxu1 %v4807_v13  ;;  %v6592_v21 = vpack.c.bf16 %v413_v18, %v409_v16  ;;  %v6594_v22 = vpack.c.bf16 %v410_v20, %v406_v19  ;;  %4810 = vmatprep.subr.bf16.mxu0 %v6590_v17  ;;  %v6597_v25 = vpack.c.bf16 %v412_v24, %v408_v23  ;;  %v415_v26 = vld [vmem:[#allocation4 + $0x48] sm:$0xff]  ;;  %v417_v28 = vld [vmem:[#allocation4 + $0x58] sm:$0xff]  ;;  %v414_v31 = vld [vmem:[#allocation4 + $0x40] sm:$0xff] }
  0x3e   :  { %v419_v27 = vld [vmem:[#allocation4 + $0x68] sm:$0xff]  ;;  %v421_v30 = vld [vmem:[#allocation4 + $0x78] sm:$0xff]  ;;  %v418_v32 = vld [vmem:[#allocation4 + $0x60] sm:$0xff] }
  0x3f   :  { %4733 = vmatmul.mubr.msk.f32.vlgmr.msra.gmra.mrb[0].mxu0 %vm116_vm0, %v78_v12  ;;  %4842 = vmatprep.subr.bf16.mxu1 %v6592_v21  ;;  %v6601_v29 = vpack.c.bf16 %v419_v27, %v415_v26  ;;  %v79_v33 = vld [vmem:[%s7719_s0 + $0x8] sm:$0xff]  ;;  %v6608_v34 = vpack.c.bf16 %v421_v30, %v417_v28  ;;  %v6610_v35 = vpack.c.bf16 %v418_v32, %v414_v31  ;;  %v416_v36 = vld [vmem:[#allocation4 + $0x50] sm:$0xff]  ;;  %v425_v41 = vld [vmem:[#allocation4 + $0x98] sm:$0xff] }
  0x40   :  { %4741 = vmatmul.mubr.msk.f32.vlgmr.msra.gmra.mrb[0].mxu1 %vm116_vm0, %v78_v12  ;;  %4812 = vmatpush1.bf16.msra.mxu0 %v6594_v22  ;;  %v420_v37 = vld [vmem:[#allocation4 + $0x70] sm:$0xff]  ;;  %v423_v39 = vld [vmem:[#allocation4 + $0x88] sm:$0xff]  ;;  %v429_v43 = vld [vmem:[#allocation4 + $0xb8] sm:$0xff] }
  0x41   :  { %4844 = vmatpush1.bf16.msra.mxu1 %v6597_v25  ;;  %211 = vmatprep.mubr.f32.mxu0 %v6443_v0  ;;  %v6614_v38 = vpack.c.bf16 %v420_v37, %v416_v36  ;;  %v427_v40 = vld [vmem:[#allocation4 + $0xa8] sm:$0xff]  ;;  %v422_v44 = vld [vmem:[#allocation4 + $0x80] sm:$0xff]  ;;  %v80_v46 = vld [vmem:[%s7719_s0 + $0x10] sm:$0xff]  ;;  %v6625_v47 = vpack.c.bf16 %v429_v43, %v425_v41 }
  0x42   :  { %324 = vmatprep.mubr.f32.mxu1 %v6443_v0  ;;  %4814 = vmatprep.subr.bf16.mxu0 %v6601_v29  ;;  %v6618_v42 = vpack.c.bf16 %v427_v40, %v423_v39  ;;  %v426_v45 = vld [vmem:[#allocation4 + $0xa0] sm:$0xff]  ;;  %v424_v48 = vld [vmem:[#allocation4 + $0x90] sm:$0xff]  ;;  %v431_v51 = vld [vmem:[#allocation4 + $0xc8] sm:$0xff] }
  0x43   :  { %4734 = vmatmul.mubr.msk.f32.gmra.mrb[2].mxu0 %vm116_vm0, %v79_v33  ;;  %4846 = vmatprep.subr.bf16.mxu1 %v6608_v34  ;;  %v428_v49 = vld [vmem:[#allocation4 + $0xb0] sm:$0xff]  ;;  %v6629_v50 = vpack.c.bf16 %v426_v45, %v422_v44  ;;  %v435_v52 = vld [vmem:[#allocation4 + $0xe8] sm:$0xff]  ;;  %v433_v53 = vld [vmem:[#allocation4 + $0xd8] sm:$0xff] }
  0x44   :  { %4742 = vmatmul.mubr.msk.f32.gmra.mrb[2].mxu1 %vm116_vm0, %v79_v33  ;;  %4816 = vmatpush1.bf16.msra.mxu0 %v6610_v35  ;;  %v6633_v54 = vpack.c.bf16 %v428_v49, %v424_v48  ;;  %v437_v55 = vld [vmem:[#allocation4 + $0xf8] sm:$0xff]  ;;  %v430_v56 = vld [vmem:[#allocation4 + $0xc0] sm:$0xff]  ;;  %v6637_v58 = vpack.c.bf16 %v435_v52, %v431_v51  ;;  %v432_v59 = vld [vmem:[#allocation4 + $0xd0] sm:$0xff] }
  0x45   :  { %4848 = vmatpush1.bf16.msra.mxu1 %v6614_v38  ;;  %217 = vmatprep.mubr.f32.mxu0 %v6443_v0  ;;  %v434_v57 = vld [vmem:[#allocation4 + $0xe0] sm:$0xff]  ;;  %v436_v60 = vld [vmem:[#allocation4 + $0xf0] sm:$0xff]  ;;  %v6641_v61 = vpack.c.bf16 %v437_v55, %v433_v53  ;;  %v439_v62 = vld [vmem:[#allocation4 + $0x108] sm:$0xff] }
  0x46   :  { %330 = vmatprep.mubr.f32.mxu1 %v6443_v0  ;;  %4818 = vmatprep.subr.bf16.mxu0 %v6618_v42  ;;  %v443_v63 = vld [vmem:[#allocation4 + $0x128] sm:$0xff]  ;;  %v81_v1 = vld [vmem:[%s7719_s0 + $0x18] sm:$0xff]  ;;  %v6648_v2 = vpack.c.bf16 %v434_v57, %v430_v56  ;;  %v6652_v5 = vpack.c.bf16 %v436_v60, %v432_v59  ;;  %v438_v6 = vld [vmem:[#allocation4 + $0x100] sm:$0xff] }
  0x47   :  { %4735 = vmatmul.mubr.msk.f32.gmra.mrb[4].mxu0 %vm116_vm0, %v80_v46  ;;  %4850 = vmatprep.subr.bf16.mxu1 %v6625_v47  ;;  %v441_v3 = vld [vmem:[#allocation4 + $0x118] sm:$0xff]  ;;  %v442_v7 = vld [vmem:[#allocation4 + $0x120] sm:$0xff]  ;;  %v6656_v8 = vpack.c.bf16 %v443_v63, %v439_v62  ;;  %v440_v9 = vld [vmem:[#allocation4 + $0x110] sm:$0xff] }
  0x48   :  { %4743 = vmatmul.mubr.msk.f32.gmra.mrb[4].mxu1 %vm116_vm0, %v80_v46  ;;  %4820 = vmatpush1.bf16.msra.mxu0 %v6629_v50  ;;  %v445_v4 = vld [vmem:[#allocation4 + $0x138] sm:$0xff]  ;;  %v444_v10 = vld [vmem:[#allocation4 + $0x130] sm:$0xff]  ;;  %v447_v12 = vld [vmem:[#allocation4 + $0x148] sm:$0xff]  ;;  %v6667_v15 = vpack.c.bf16 %v442_v7, %v438_v6  ;;  %v96_v7 = vlaneseq }
  0x49   :  { %4852 = vmatpush1.bf16.msra.mxu1 %v6633_v54  ;;  %223 = vmatprep.mubr.f32.mxu0 %v6443_v0  ;;  %v6660_v11 = vpack.c.bf16 %v445_v4, %v441_v3  ;;  %v451_v13 = vld [vmem:[#allocation4 + $0x168] sm:$0xff]  ;;  %v82_v14 = vld [vmem:[%s7719_s0 + $0x20] sm:$0xff]  ;;  %v449_v16 = vld [vmem:[#allocation4 + $0x158] sm:$0xff]  ;;  %v6671_v19 = vpack.c.bf16 %v444_v10, %v440_v9 }
  0x4a   :  { %336 = vmatprep.mubr.f32.mxu1 %v6443_v0  ;;  %4822 = vmatprep.subr.bf16.mxu0 %v6637_v58  ;;  %v453_v18 = vld [vmem:[#allocation4 + $0x178] sm:$0xff]  ;;  %v446_v20 = vld [vmem:[#allocation4 + $0x140] sm:$0xff]  ;;  %v6675_v24 = vpack.c.bf16 %v451_v13, %v447_v12  ;;  %v448_v26 = vld [vmem:[#allocation4 + $0x150] sm:$0xff]  ;;  %v6777_v9 = vshrl.u32 %v96_v7, 7 }
  0x4b   :  { %4736 = vmatmul.mubr.msk.f32.gmra.mrb[6].mxu0 %vm116_vm0, %v81_v1  ;;  %4854 = vmatprep.subr.bf16.mxu1 %v6641_v61  ;;  %v450_v23 = vld [vmem:[#allocation4 + $0x160] sm:$0xff]  ;;  %v452_v27 = vld [vmem:[#allocation4 + $0x170] sm:$0xff]  ;;  %v6679_v28 = vpack.c.bf16 %v453_v18, %v449_v16  ;;  %v455_v30 = vld [vmem:[#allocation4 + $0x188] sm:$0xff] }
  0x4c   :  { %4744 = vmatmul.mubr.msk.f32.gmra.mrb[6].mxu1 %vm116_vm0, %v81_v1  ;;  %4824 = vmatpush1.bf16.msra.mxu0 %v6648_v2  ;;  %v459_v31 = vld [vmem:[#allocation4 + $0x1a8] sm:$0xff]  ;;  %v6686_v33 = vpack.c.bf16 %v450_v23, %v446_v20  ;;  %v457_v36 = vld [vmem:[#allocation4 + $0x198] sm:$0xff]  ;;  %v6690_v39 = vpack.c.bf16 %v452_v27, %v448_v26  ;;  %v454_v40 = vld [vmem:[#allocation4 + $0x180] sm:$0xff]  ;;  %v98_v10 = vsub.s32 0, %v6777_v9  ;;  %v102_v13 = vsub.s32 1, %v6777_v9 }
  0x4d   :  { %4856 = vmatpush1.bf16.msra.mxu1 %v6652_v5  ;;  %229 = vmatprep.mubr.f32.mxu0 %v6443_v0  ;;  %v83_v32 = vld [vmem:[%s7719_s0 + $0x28] sm:$0xff]  ;;  %v461_v37 = vld [vmem:[#allocation4 + $0x1b8] sm:$0xff]  ;;  %v458_v41 = vld [vmem:[#allocation4 + $0x1a0] sm:$0xff]  ;;  %v6694_v43 = vpack.c.bf16 %v459_v31, %v455_v30  ;;  %v106_v16 = vsub.s32 2, %v6777_v9 }
  0x4e   :  { %342 = vmatprep.mubr.f32.mxu1 %v6443_v0  ;;  %4826 = vmatprep.subr.bf16.mxu0 %v6656_v8  ;;  %v456_v44 = vld [vmem:[#allocation4 + $0x190] sm:$0xff]  ;;  %v6698_v46 = vpack.c.bf16 %v461_v37, %v457_v36  ;;  %v463_v48 = vld [vmem:[#allocation4 + $0x1c8] sm:$0xff]  ;;  %v6705_v52 = vpack.c.bf16 %v458_v41, %v454_v40  ;;  %v465_v53 = vld [vmem:[#allocation4 + $0x1d8] sm:$0xff]  ;;  %v110_v36 = vsub.s32 3, %v6777_v9 }
  0x4f   :  { %4737 = vmatmul.mubr.msk.f32.gmra.mrb[8].mxu0 %vm116_vm0, %v82_v14  ;;  %4858 = vmatprep.subr.bf16.mxu1 %v6660_v11  ;;  %v460_v45 = vld [vmem:[#allocation4 + $0x1b0] sm:$0xff]  ;;  %v467_v49 = vld [vmem:[#allocation4 + $0x1e8] sm:$0xff]  ;;  %v469_v55 = vld [vmem:[#allocation4 + $0x1f8] sm:$0xff] }
  0x50   :  { %4745 = vmatmul.mubr.msk.f32.gmra.mrb[8].mxu1 %vm116_vm0, %v82_v14  ;;  %4828 = vmatpush1.bf16.msra.mxu0 %v6667_v15  ;;  %v84_v51 = vld [vmem:[%s7719_s0 + $0x30] sm:$0xff]  ;;  %v6709_v56 = vpack.c.bf16 %v460_v45, %v456_v44  ;;  %v462_v57 = vld [vmem:[#allocation4 + $0x1c0] sm:$0xff]  ;;  %v6713_v60 = vpack.c.bf16 %v467_v49, %v463_v48  ;;  %v6717_v1 = vpack.c.bf16 %v469_v55, %v465_v53  ;;  %v85_v3 = vld [vmem:[%s7719_s0 + $0x38] sm:$0xff] }
  0x51   :  { %4860 = vmatpush1.bf16.msra.mxu1 %v6671_v19  ;;  %235 = vmatprep.mubr.f32.mxu0 %v6443_v0  ;;  %v466_v59 = vld [vmem:[#allocation4 + $0x1e0] sm:$0xff]  ;;  %v464_v62 = vld [vmem:[#allocation4 + $0x1d0] sm:$0xff] }
  0x52   :  { %348 = vmatprep.mubr.f32.mxu1 %v6443_v0  ;;  %4830 = vmatprep.subr.bf16.mxu0 %v6675_v24  ;;  %v468_v63 = vld [vmem:[#allocation4 + $0x1f0] sm:$0xff]  ;;  %v6724_v4 = vpack.c.bf16 %v466_v59, %v462_v57  ;;  %v94_v12 = vld [vmem:[%s7722_s3] sm:$0xf] }
  0x53   :  { %4738 = vmatmul.mubr.msk.f32.gmra.mrb[10].mxu0 %vm116_vm0, %v83_v32  ;;  %4862 = vmatprep.subr.bf16.mxu1 %v6679_v28  ;;  %v6728_v6 = vpack.c.bf16 %v468_v63, %v464_v62  ;;  %v6786_v14 = vrot.slane %v94_v12, %v98_v10  ;;  %v6797_v31 = vrot.slane %v94_v12, %v106_v16 }
  0x54   :  { %4746 = vmatmul.mubr.msk.f32.gmra.mrb[10].mxu1 %vm116_vm0, %v83_v32  ;;  %4832 = vmatpush1.bf16.msra.mxu0 %v6686_v33  ;;  %v6803_v40 = vrot.slane %v94_v12, %v110_v36 }
  0x55   :  { %4864 = vmatpush1.bf16.msra.mxu1 %v6690_v39  ;;  %241 = vmatprep.mubr.f32.mxu0 %v6443_v0 }
  0x56   :  { %354 = vmatprep.mubr.f32.mxu1 %v6443_v0  ;;  %4834 = vmatprep.subr.bf16.mxu0 %v6694_v43 }
  0x57   :  { %4739 = vmatmul.mubr.msk.f32.gmra.mrb[12].mxu0 %vm116_vm0, %v84_v51  ;;  %4866 = vmatprep.subr.bf16.mxu1 %v6698_v46 }
  0x58   :  { %4747 = vmatmul.mubr.msk.f32.gmra.mrb[12].mxu1 %vm116_vm0, %v84_v51  ;;  %4836 = vmatpush1.bf16.msra.mxu0 %v6705_v52 }
  0x59   :  { %4868 = vmatpush1.bf16.msra.mxu1 %v6709_v56  ;;  %247 = vmatprep.mubr.f32.mxu0 %v6443_v0 }
  0x5a   :  { %360 = vmatprep.mubr.f32.mxu1 %v6443_v0  ;;  %4838 = vmatprep.subr.bf16.mxu0 %v6713_v60 }
  0x5b   :  { %4740 = vmatmul.mubr.msk.f32.gmra.mrb[14].mxu0 %vm116_vm0, %v85_v3  ;;  %4870 = vmatprep.subr.bf16.mxu1 %v6717_v1 }
  0x5c   :  { %4748 = vmatmul.mubr.msk.f32.gmra.mrb[14].mxu1 %vm116_vm0, %v85_v3  ;;  %4840 = vmatpush1.bf16.msra.mxu0 %v6724_v4 }
  0x5d   :  { %4872 = vmatpush1.bf16.msra.mxu1 %v6728_v6  ;;  %534 = vmatprep.mubr.f32.mxu0 %v6443_v0 }
  0x5e   :  { %605 = vmatprep.mubr.f32.mxu1 %v6443_v0  ;;  %4874 = vmatprep.subr.bf16.mxu0 %v6590_v17 }
  0x5f   :  { %535 = vmatmul.mubr.f32.vlgmr.msra.gmra.mrb[0].mxu0 %v6443_v0  ;;  %4906 = vmatprep.subr.bf16.mxu1 %v6592_v21 }
  0x60   :  { %606 = vmatmul.mubr.f32.vlgmr.msra.gmra.mrb[0].mxu1 %v6443_v0  ;;  %4876 = vmatpush1.bf16.msra.mxu0 %v6594_v22 }
  0x61   :  { %4908 = vmatpush1.bf16.msra.mxu1 %v6597_v25  ;;  %4878 = vmatprep.subr.bf16.mxu0 %v6601_v29 }
  0x62   :  { %4910 = vmatprep.subr.bf16.mxu1 %v6608_v34  ;;  %776 = vmatprep.mubr.f32.mxu0 %v6443_v0 }
  0x63   :  { %847 = vmatprep.mubr.f32.mxu1 %v6443_v0 }
  0x64   :  { %4880 = vmatpush1.bf16.msra.mxu0 %v6610_v35 }
  0x65   :  { %4912 = vmatpush1.bf16.msra.mxu1 %v6614_v38  ;;  %4882 = vmatprep.subr.bf16.mxu0 %v6618_v42 }
  0x66   :  { %4914 = vmatprep.subr.bf16.mxu1 %v6625_v47 }
  0x68   :  { %4884 = vmatpush1.bf16.msra.mxu0 %v6629_v50 }
  0x69   :  { %4916 = vmatpush1.bf16.msra.mxu1 %v6633_v54  ;;  %4886 = vmatprep.subr.bf16.mxu0 %v6637_v58 }
  0x6a   :  { %4918 = vmatprep.subr.bf16.mxu1 %v6641_v61 }
  0x6c   :  { %4888 = vmatpush1.bf16.msra.mxu0 %v6648_v2 }
  0x6d   :  { %4920 = vmatpush1.bf16.msra.mxu1 %v6652_v5  ;;  %4890 = vmatprep.subr.bf16.mxu0 %v6656_v8 }
  0x6e   :  { %4922 = vmatprep.subr.bf16.mxu1 %v6660_v11 }
  0x70   :  { %4892 = vmatpush1.bf16.msra.mxu0 %v6667_v15 }
  0x71   :  { %4924 = vmatpush1.bf16.msra.mxu1 %v6671_v19  ;;  %4894 = vmatprep.subr.bf16.mxu0 %v6675_v24 }
  0x72   :  { %4926 = vmatprep.subr.bf16.mxu1 %v6679_v28 }
  0x74   :  { %4896 = vmatpush1.bf16.msra.mxu0 %v6686_v33 }
  0x75   :  { %4928 = vmatpush1.bf16.msra.mxu1 %v6690_v39  ;;  %4898 = vmatprep.subr.bf16.mxu0 %v6694_v43 }
  0x76   :  { %4930 = vmatprep.subr.bf16.mxu1 %v6698_v46 }
  0x78   :  { %4900 = vmatpush1.bf16.msra.mxu0 %v6705_v52 }
  0x79   :  { %4932 = vmatpush1.bf16.msra.mxu1 %v6709_v56  ;;  %4902 = vmatprep.subr.bf16.mxu0 %v6713_v60 }
  0x7a   :  { %4934 = vmatprep.subr.bf16.mxu1 %v6717_v1 }
  0x7c   :  { %4904 = vmatpush1.bf16.msra.mxu0 %v6724_v4 }
  0x7d   :  { %4936 = vmatpush1.bf16.msra.mxu1 %v6728_v6  ;;  %4938 = vmatprep.subr.bf16.mxu0 %v6590_v17  ;;  %v6790_v17 = vrot.slane %v94_v12, %v102_v13 }
  0x7e   :  { %4970 = vmatprep.subr.bf16.mxu1 %v6592_v21 }
 0x132   :  { %v536_v21 = vpop.f32.mrb[0].mxu0 }
 0x133   :  { %v5897_v18 = vadd.f32 %v536_v21, %v6786_v14  ;;  %v607_v20 = vpop.f32.mrb[0].mxu1  ;;  %v538_v23 = vpop.f32.mrb[1].mxu0 }
 0x134   :  { %v5898_v26 = vadd.f32 %v538_v23, %v6790_v17  ;;  %v609_v27 = vpop.f32.mrb[1].mxu1  ;;  %v5913_v37 = vadd.f32 %v607_v20, %v6797_v31 }
 0x135   :  { %v4749_v30 = vmul.f32 -1.442695, %v5897_v18  ;;  %v5914_v44 = vadd.f32 %v609_v27, %v6803_v40 }
 0x136   :  { %v4750_v32 = vmul.f32 -1.442695, %v5898_v26  ;;  %v4751_v41 = vmul.f32 -1.442695, %v5913_v37 }
 0x137   :  { %6036 = vpow2.f32 %v4749_v30 }
 0x138   :  { %6038 = vpow2.f32 %v4750_v32 }
 0x139   :  { %6040 = vpow2.f32 %v4751_v41 }
 0x13a   :  { %6042 = vtanh.f32 %v5914_v44 }
 0x141   :  { %v6037_v45 = vpop.eup %6036 }
 0x142   :  { %v625_v48 = vadd.f32 1.0, %v6037_v45  ;;  %v6039_v49 = vpop.eup %6038 }
 0x143   :  { %v626_v51 = vadd.f32 1.0, %v6039_v49  ;;  %v6041_v53 = vpop.eup %6040 }
 0x144   :  { %6044 = vrcp.f32 %v625_v48  ;;  %v6043_v55 = vpop.eup %6042  ;;  %v627_v63 = vadd.f32 1.0, %v6041_v53 }
 0x145   :  { %6046 = vrcp.f32 %v626_v51 }
 0x146   :  { %6048 = vrcp.f32 %v627_v63 }
 0x14e   :  { %v6045_v57 = vpop.eup %6044 }
 0x14f   :  { %v636_v59 = vmul.f32 %v6045_v57, %v6043_v55  ;;  %v6047_v62 = vpop.eup %6046 }
 0x150   :  { %v635_v3 = vmul.f32 0.0, %v6047_v62  ;;  %v6049_v12 = vpop.eup %6048 }
 0x152   :  { %v6806_v7 = vadd.f32 %v636_v59, %v635_v3 }
 0x154   :  { %6050 = vtanh.f32 %v6806_v7 }
 0x15e   :  { %v6051_v21 = vpop.eup %6050 }
 0x15f   :  { %v6809_v18 = vmul.f32 %v6051_v21, %v6049_v12  ;;  %v1135_v12 = vld [vmem:[#allocation4 + $0x8] sm:$0xff] }
 0x160   :  { %v1139_v21 = vld [vmem:[#allocation4 + $0x28] sm:$0xff] }
 0x161   :  { %777 = vmatmul.mubr.f32.vlgmr.msra.gmra.mrb[2].mxu0 %v6809_v18  ;;  %848 = vmatmul.mubr.f32.vlgmr.msra.gmra.mrb[2].mxu1 %v6809_v18 }
 0x162   :  { %4940 = vmatpush1.bf16.msra.mxu0 %v6594_v22  ;;  %4972 = vmatpush1.bf16.msra.mxu1 %v6597_v25 }
 0x163   :  { %4942 = vmatprep.subr.bf16.mxu0 %v6601_v29  ;;  %4974 = vmatprep.subr.bf16.mxu1 %v6608_v34 }
 0x164   :  { %1019 = vmatprep.mubr.f32.mxu0 %v6443_v0  ;;  %1090 = vmatprep.mubr.f32.mxu1 %v6443_v0 }
 0x166   :  { %4944 = vmatpush1.bf16.msra.mxu0 %v6610_v35  ;;  %4976 = vmatpush1.bf16.msra.mxu1 %v6614_v38 }
 0x167   :  { %4946 = vmatprep.subr.bf16.mxu0 %v6618_v42  ;;  %4978 = vmatprep.subr.bf16.mxu1 %v6625_v47 }
 0x16a   :  { %4948 = vmatpush1.bf16.msra.mxu0 %v6629_v50  ;;  %4980 = vmatpush1.bf16.msra.mxu1 %v6633_v54 }
 0x16b   :  { %4950 = vmatprep.subr.bf16.mxu0 %v6637_v58  ;;  %4982 = vmatprep.subr.bf16.mxu1 %v6641_v61 }
 0x16e   :  { %4952 = vmatpush1.bf16.msra.mxu0 %v6648_v2  ;;  %4984 = vmatpush1.bf16.msra.mxu1 %v6652_v5 }
 0x16f   :  { %4954 = vmatprep.subr.bf16.mxu0 %v6656_v8  ;;  %4986 = vmatprep.subr.bf16.mxu1 %v6660_v11 }
 0x172   :  { %4956 = vmatpush1.bf16.msra.mxu0 %v6667_v15  ;;  %4988 = vmatpush1.bf16.msra.mxu1 %v6671_v19 }
 0x173   :  { %4958 = vmatprep.subr.bf16.mxu0 %v6675_v24  ;;  %4990 = vmatprep.subr.bf16.mxu1 %v6679_v28 }
 0x176   :  { %4960 = vmatpush1.bf16.msra.mxu0 %v6686_v33  ;;  %4992 = vmatpush1.bf16.msra.mxu1 %v6690_v39 }
 0x177   :  { %4962 = vmatprep.subr.bf16.mxu0 %v6694_v43  ;;  %4994 = vmatprep.subr.bf16.mxu1 %v6698_v46 }
 0x17a   :  { %4964 = vmatpush1.bf16.msra.mxu0 %v6705_v52  ;;  %4996 = vmatpush1.bf16.msra.mxu1 %v6709_v56 }
 0x17b   :  { %4966 = vmatprep.subr.bf16.mxu0 %v6713_v60  ;;  %4998 = vmatprep.subr.bf16.mxu1 %v6717_v1 }
 0x17e   :  { %4968 = vmatpush1.bf16.msra.mxu0 %v6724_v4  ;;  %5000 = vmatpush1.bf16.msra.mxu1 %v6728_v6 }
 0x234   :  { %v778_v22 = vpop.f32.mrb[2].mxu0  ;;  %v849_v25 = vpop.f32.mrb[2].mxu1 }
 0x235   :  { %v5899_v29 = vadd.f32 %v778_v22, %v6786_v14  ;;  %v780_v34 = vpop.f32.mrb[3].mxu0  ;;  %v851_v35 = vpop.f32.mrb[3].mxu1  ;;  %v5915_v26 = vadd.f32 %v849_v25, %v6797_v31  ;;  %v6859_v22 = vpack.c.bf16 %v1139_v21, %v1135_v12  ;;  %v1141_v25 = vld [vmem:[#allocation4 + $0x38] sm:$0xff] }
 0x236   :  { %v5900_v38 = vadd.f32 %v780_v34, %v6790_v17  ;;  %v5916_v27 = vadd.f32 %v851_v35, %v6803_v40  ;;  %v1138_v34 = vld [vmem:[#allocation4 + $0x20] sm:$0xff]  ;;  %v1396_v12 = vld [vmem:[#allocation4 + $0x98] sm:$0xff] }
 0x237   :  { %v4752_v20 = vmul.f32 -1.442695, %v5899_v29  ;;  %v4754_v30 = vmul.f32 -1.442695, %v5915_v26  ;;  %v1134_v29 = vld [vmem:[#allocation4] sm:$0xff]  ;;  %5002 = vmatprep.subr.bf16.mxu0 %v6859_v22 }
 0x238   :  { %v4753_v23 = vmul.f32 -1.442695, %v5900_v38  ;;  %v6863_v38 = vpack.c.bf16 %v1138_v34, %v1134_v29  ;;  %v1397_v29 = vld [vmem:[#allocation4 + $0xa0] sm:$0xff] }
 0x239   :  { %6052 = vpow2.f32 %v4752_v20  ;;  %v1136_v20 = vld [vmem:[#allocation4 + $0x10] sm:$0xff] }
 0x23a   :  { %6054 = vpow2.f32 %v4753_v23  ;;  %v1140_v23 = vld [vmem:[#allocation4 + $0x30] sm:$0xff] }
 0x23b   :  { %6056 = vtanh.f32 %v5916_v27  ;;  %v6866_v26 = vpack.c.bf16 %v1140_v23, %v1136_v20  ;;  %v1143_v27 = vld [vmem:[#allocation4 + $0x48] sm:$0xff]  ;;  %v1395_v23 = vld [vmem:[#allocation4 + $0x90] sm:$0xff] }
 0x23c   :  { %6058 = vpow2.f32 %v4754_v30  ;;  %v1147_v30 = vld [vmem:[#allocation4 + $0x68] sm:$0xff] }
 0x243   :  { %v6053_v32 = vpop.eup %6052 }
 0x244   :  { %v867_v37 = vadd.f32 1.0, %v6053_v32  ;;  %v6055_v41 = vpop.eup %6054  ;;  %v1145_v32 = vld [vmem:[#allocation4 + $0x58] sm:$0xff] }
 0x245   :  { %v868_v44 = vadd.f32 1.0, %v6055_v41  ;;  %v6057_v45 = vpop.eup %6056  ;;  %v1149_v41 = vld [vmem:[#allocation4 + $0x78] sm:$0xff] }
 0x246   :  { %6060 = vrcp.f32 %v867_v37  ;;  %v6059_v48 = vpop.eup %6058  ;;  %v6871_v37 = vpack.c.bf16 %v1147_v30, %v1143_v27  ;;  %v1399_v27 = vld [vmem:[#allocation4 + $0xb0] sm:$0xff] }
 0x247   :  { %6062 = vrcp.f32 %v868_v44  ;;  %v869_v55 = vadd.f32 1.0, %v6059_v48  ;;  %v1142_v44 = vld [vmem:[#allocation4 + $0x40] sm:$0xff]  ;;  %v6873_v48 = vpack.c.bf16 %v1149_v41, %v1145_v32  ;;  %v6936_v30 = vpack.c.bf16 %v1399_v27, %v1395_v23  ;;  %v1402_v32 = vld [vmem:[#allocation4 + $0xc8] sm:$0xff] }
 0x248   :  { %v1406_v41 = vld [vmem:[#allocation4 + $0xe8] sm:$0xff] }
 0x249   :  { %6064 = vrcp.f32 %v869_v55  ;;  %v1430_v27 = vld [vmem:[#allocation4 + $0x1a8] sm:$0xff] }
 0x250   :  { %v6061_v49 = vpop.eup %6060 }
 0x251   :  { %v878_v51 = vmul.f32 %v6061_v49, %v6057_v45  ;;  %v6063_v53 = vpop.eup %6062  ;;  %v1146_v45 = vld [vmem:[#allocation4 + $0x60] sm:$0xff] }
 0x252   :  { %v877_v57 = vmul.f32 %v6063_v53, %v6806_v7  ;;  %v1137_v7 = vld [vmem:[#allocation4 + $0x18] sm:$0xff]  ;;  %v6875_v49 = vpack.c.bf16 %v1146_v45, %v1142_v44  ;;  %v1148_v53 = vld [vmem:[#allocation4 + $0x70] sm:$0xff]  ;;  %v6941_v45 = vpack.c.bf16 %v1406_v41, %v1402_v32 }
 0x253   :  { %v6065_v62 = vpop.eup %6064  ;;  %v6861_v35 = vpack.c.bf16 %v1141_v25, %v1137_v7  ;;  %v1400_v7 = vld [vmem:[#allocation4 + $0xb8] sm:$0xff]  ;;  %v1393_v25 = vld [vmem:[#allocation4 + $0x80] sm:$0xff] }
 0x254   :  { %v6850_v59 = vadd.f32 %v878_v51, %v877_v57  ;;  %v1144_v51 = vld [vmem:[#allocation4 + $0x50] sm:$0xff]  ;;  %v6931_v34 = vpack.c.bf16 %v1400_v7, %v1396_v12  ;;  %v6933_v20 = vpack.c.bf16 %v1397_v29, %v1393_v25  ;;  %v1404_v44 = vld [vmem:[#allocation4 + $0xd8] sm:$0xff]  ;;  %v1426_v29 = vld [vmem:[#allocation4 + $0x188] sm:$0xff] }
 0x255   :  { %5034 = vmatprep.subr.bf16.mxu1 %v6861_v35  ;;  %v6878_v55 = vpack.c.bf16 %v1148_v53, %v1144_v51  ;;  %v1408_v51 = vld [vmem:[#allocation4 + $0xf8] sm:$0xff]  ;;  %v1401_v53 = vld [vmem:[#allocation4 + $0xc0] sm:$0xff]  ;;  %v1419_v7 = vld [vmem:[#allocation4 + $0x150] sm:$0xff] }
 0x256   :  { %6066 = vtanh.f32 %v6850_v59  ;;  %v1423_v25 = vld [vmem:[#allocation4 + $0x170] sm:$0xff]  ;;  %v1428_v32 = vld [vmem:[#allocation4 + $0x198] sm:$0xff] }
 0x257   :  { %v6972_v23 = vpack.c.bf16 %v1423_v25, %v1419_v7  ;;  %v1432_v41 = vld [vmem:[#allocation4 + $0x1b8] sm:$0xff] }
 0x260   :  { %v6067_v63 = vpop.eup %6066 }
 0x261   :  { %v6853_v3 = vmul.f32 %v6067_v63, %v6065_v62  ;;  %v1398_v63 = vld [vmem:[#allocation4 + $0xa8] sm:$0xff] }
 0x263   :  { %1020 = vmatmul.mubr.f32.vlgmr.msra.gmra.mrb[4].mxu0 %v6853_v3  ;;  %1091 = vmatmul.mubr.f32.vlgmr.msra.gmra.mrb[4].mxu1 %v6853_v3 }
 0x264   :  { %1262 = vmatprep.mubr.f32.mxu0 %v6443_v0  ;;  %1333 = vmatprep.mubr.f32.mxu1 %v6443_v0 }
 0x265   :  { %5004 = vmatpush1.bf16.msra.mxu0 %v6863_v38  ;;  %5036 = vmatpush1.bf16.msra.mxu1 %v6866_v26 }
 0x266   :  { %5006 = vmatprep.subr.bf16.mxu0 %v6871_v37  ;;  %5038 = vmatprep.subr.bf16.mxu1 %v6873_v48 }
 0x269   :  { %5008 = vmatpush1.bf16.msra.mxu0 %v6875_v49  ;;  %5040 = vmatpush1.bf16.msra.mxu1 %v6878_v55 }
 0x26a   :  { %5010 = vmatprep.subr.bf16.mxu0 %v6618_v42  ;;  %5042 = vmatprep.subr.bf16.mxu1 %v6625_v47 }
 0x26d   :  { %5012 = vmatpush1.bf16.msra.mxu0 %v6629_v50  ;;  %5044 = vmatpush1.bf16.msra.mxu1 %v6633_v54 }
 0x26e   :  { %5014 = vmatprep.subr.bf16.mxu0 %v6637_v58  ;;  %5046 = vmatprep.subr.bf16.mxu1 %v6641_v61 }
 0x271   :  { %5016 = vmatpush1.bf16.msra.mxu0 %v6648_v2  ;;  %5048 = vmatpush1.bf16.msra.mxu1 %v6652_v5 }
 0x272   :  { %5018 = vmatprep.subr.bf16.mxu0 %v6656_v8  ;;  %5050 = vmatprep.subr.bf16.mxu1 %v6660_v11 }
 0x275   :  { %5020 = vmatpush1.bf16.msra.mxu0 %v6667_v15  ;;  %5052 = vmatpush1.bf16.msra.mxu1 %v6671_v19 }
 0x276   :  { %5022 = vmatprep.subr.bf16.mxu0 %v6675_v24  ;;  %5054 = vmatprep.subr.bf16.mxu1 %v6679_v28 }
 0x279   :  { %5024 = vmatpush1.bf16.msra.mxu0 %v6686_v33  ;;  %5056 = vmatpush1.bf16.msra.mxu1 %v6690_v39 }
 0x27a   :  { %5026 = vmatprep.subr.bf16.mxu0 %v6694_v43  ;;  %5058 = vmatprep.subr.bf16.mxu1 %v6698_v46 }
 0x27d   :  { %5028 = vmatpush1.bf16.msra.mxu0 %v6705_v52  ;;  %5060 = vmatpush1.bf16.msra.mxu1 %v6709_v56 }
 0x27e   :  { %5030 = vmatprep.subr.bf16.mxu0 %v6713_v60  ;;  %5062 = vmatprep.subr.bf16.mxu1 %v6717_v1 }
 0x281   :  { %5032 = vmatpush1.bf16.msra.mxu0 %v6724_v4  ;;  %5064 = vmatpush1.bf16.msra.mxu1 %v6728_v6 }
 0x282   :  { %5066 = vmatprep.subr.bf16.mxu0 %v6859_v22  ;;  %5098 = vmatprep.subr.bf16.mxu1 %v6861_v35 }
 0x336   :  { %v1021_v42 = vpop.f32.mrb[4].mxu0  ;;  %v1092_v47 = vpop.f32.mrb[4].mxu1 }
 0x337   :  { %v5901_v50 = vadd.f32 %v1021_v42, %v6786_v14  ;;  %v1023_v54 = vpop.f32.mrb[5].mxu0  ;;  %v1094_v58 = vpop.f32.mrb[5].mxu1  ;;  %v5917_v8 = vadd.f32 %v1092_v47, %v6797_v31  ;;  %v1405_v42 = vld [vmem:[#allocation4 + $0xe0] sm:$0xff]  ;;  %v6943_v47 = vpack.c.bf16 %v1408_v51, %v1404_v44  ;;  %v6976_v44 = vpack.c.bf16 %v1430_v27, %v1426_v29 }
 0x338   :  { %v5902_v61 = vadd.f32 %v1023_v54, %v6790_v17  ;;  %v5918_v11 = vadd.f32 %v1094_v58, %v6803_v40  ;;  %v1403_v54 = vld [vmem:[#allocation4 + $0xd0] sm:$0xff]  ;;  %v6978_v51 = vpack.c.bf16 %v1432_v41, %v1428_v32 }
 0x339   :  { %v4755_v2 = vmul.f32 -1.442695, %v5901_v50  ;;  %v4757_v15 = vmul.f32 -1.442695, %v5917_v8  ;;  %v6945_v50 = vpack.c.bf16 %v1405_v42, %v1401_v53  ;;  %v1407_v58 = vld [vmem:[#allocation4 + $0xf0] sm:$0xff]  ;;  %v1412_v8 = vld [vmem:[#allocation4 + $0x118] sm:$0xff] }
 0x33a   :  { %v4756_v5 = vmul.f32 -1.442695, %v5902_v61  ;;  %v6948_v61 = vpack.c.bf16 %v1407_v58, %v1403_v54  ;;  %v1425_v53 = vld [vmem:[#allocation4 + $0x180] sm:$0xff]  ;;  %v1427_v54 = vld [vmem:[#allocation4 + $0x190] sm:$0xff] }
 0x33b   :  { %6068 = vpow2.f32 %v4755_v2  ;;  %v1410_v2 = vld [vmem:[#allocation4 + $0x108] sm:$0xff]  ;;  %v1429_v42 = vld [vmem:[#allocation4 + $0x1a0] sm:$0xff] }
 0x33c   :  { %6070 = vpow2.f32 %v4756_v5  ;;  %v1414_v5 = vld [vmem:[#allocation4 + $0x128] sm:$0xff]  ;;  %v6981_v58 = vpack.c.bf16 %v1429_v42, %v1425_v53 }
 0x33d   :  { %6072 = vtanh.f32 %v5918_v11  ;;  %v6953_v11 = vpack.c.bf16 %v1414_v5, %v1410_v2  ;;  %v1431_v2 = vld [vmem:[#allocation4 + $0x1b0] sm:$0xff]  ;;  %v1434_v5 = vld [vmem:[#allocation4 + $0x1c8] sm:$0xff] }
 0x33e   :  { %6074 = vpow2.f32 %v4757_v15  ;;  %v1416_v15 = vld [vmem:[#allocation4 + $0x138] sm:$0xff] }
 0x345   :  { %v6069_v19 = vpop.eup %6068 }
 0x346   :  { %v1110_v24 = vadd.f32 1.0, %v6069_v19  ;;  %v6071_v28 = vpop.eup %6070  ;;  %v1409_v19 = vld [vmem:[#allocation4 + $0x100] sm:$0xff] }
 0x347   :  { %v1111_v33 = vadd.f32 1.0, %v6071_v28  ;;  %v6073_v39 = vpop.eup %6072  ;;  %v6955_v28 = vpack.c.bf16 %v1416_v15, %v1412_v8  ;;  %v1438_v8 = vld [vmem:[#allocation4 + $0x1e8] sm:$0xff]  ;;  %v6985_v15 = vpack.c.bf16 %v1431_v2, %v1427_v54 }
 0x348   :  { %6076 = vrcp.f32 %v1110_v24  ;;  %v6075_v43 = vpop.eup %6074  ;;  %v1413_v24 = vld [vmem:[#allocation4 + $0x120] sm:$0xff] }
 0x349   :  { %6078 = vrcp.f32 %v1111_v33  ;;  %v1112_v60 = vadd.f32 1.0, %v6075_v43  ;;  %v6957_v33 = vpack.c.bf16 %v1413_v24, %v1409_v19  ;;  %v1415_v43 = vld [vmem:[#allocation4 + $0x130] sm:$0xff]  ;;  %v6987_v19 = vpack.c.bf16 %v1438_v8, %v1434_v5  ;;  %v1436_v24 = vld [vmem:[#allocation4 + $0x1d8] sm:$0xff] }
 0x34b   :  { %6080 = vrcp.f32 %v1112_v60  ;;  %v1420_v60 = vld [vmem:[#allocation4 + $0x158] sm:$0xff] }
 0x352   :  { %v6077_v46 = vpop.eup %6076 }
 0x353   :  { %v1121_v52 = vmul.f32 %v6077_v46, %v6073_v39  ;;  %v6079_v56 = vpop.eup %6078  ;;  %v1411_v39 = vld [vmem:[#allocation4 + $0x110] sm:$0xff] }
 0x354   :  { %v1120_v1 = vmul.f32 %v6079_v56, %v6850_v59  ;;  %v1394_v59 = vld [vmem:[#allocation4 + $0x88] sm:$0xff]  ;;  %v6960_v46 = vpack.c.bf16 %v1415_v43, %v1411_v39  ;;  %v1440_v39 = vld [vmem:[#allocation4 + $0x1f8] sm:$0xff]  ;;  %v1433_v43 = vld [vmem:[#allocation4 + $0x1c0] sm:$0xff] }
 0x355   :  { %v6081_v6 = vpop.eup %6080  ;;  %v6929_v21 = vpack.c.bf16 %v1398_v63, %v1394_v59  ;;  %v1422_v56 = vld [vmem:[#allocation4 + $0x168] sm:$0xff]  ;;  %v1421_v59 = vld [vmem:[#allocation4 + $0x160] sm:$0xff] }
 0x356   :  { %v6914_v4 = vadd.f32 %v1121_v52, %v1120_v1  ;;  %v1418_v52 = vld [vmem:[#allocation4 + $0x148] sm:$0xff] }
 0x357   :  { %v6965_v1 = vpack.c.bf16 %v1422_v56, %v1418_v52  ;;  %v6989_v52 = vpack.c.bf16 %v1440_v39, %v1436_v24  ;;  %v1437_v56 = vld [vmem:[#allocation4 + $0x1e0] sm:$0xff] }
 0x358   :  { %6082 = vtanh.f32 %v6914_v4 }
 0x362   :  { %v6083_v57 = vpop.eup %6082 }
 0x363   :  { %v6917_v62 = vmul.f32 %v6083_v57, %v6081_v6  ;;  %v1424_v6 = vld [vmem:[#allocation4 + $0x178] sm:$0xff]  ;;  %v1417_v57 = vld [vmem:[#allocation4 + $0x140] sm:$0xff] }
 0x364   :  { %v6967_v63 = vpack.c.bf16 %v1424_v6, %v1420_v60  ;;  %v6969_v12 = vpack.c.bf16 %v1421_v59, %v1417_v57  ;;  %v1435_v60 = vld [vmem:[#allocation4 + $0x1d0] sm:$0xff]  ;;  %v6992_v57 = vpack.c.bf16 %v1437_v56, %v1433_v43 }
 0x365   :  { %1263 = vmatmul.mubr.f32.vlgmr.msra.gmra.mrb[6].mxu0 %v6917_v62  ;;  %1334 = vmatmul.mubr.f32.vlgmr.msra.gmra.mrb[6].mxu1 %v6917_v62  ;;  %v1439_v6 = vld [vmem:[#allocation4 + $0x1f0] sm:$0xff] }
 0x366   :  { %5068 = vmatpush1.bf16.msra.mxu0 %v6863_v38  ;;  %5100 = vmatpush1.bf16.msra.mxu1 %v6866_v26  ;;  %v6996_v59 = vpack.c.bf16 %v1439_v6, %v1435_v60 }
 0x367   :  { %5070 = vmatprep.subr.bf16.mxu0 %v6871_v37  ;;  %5102 = vmatprep.subr.bf16.mxu1 %v6873_v48 }
 0x368   :  { %1505 = vmatprep.mubr.f32.mxu0 %v6443_v0  ;;  %1576 = vmatprep.mubr.f32.mxu1 %v6443_v0 }
 0x36a   :  { %5072 = vmatpush1.bf16.msra.mxu0 %v6875_v49  ;;  %5104 = vmatpush1.bf16.msra.mxu1 %v6878_v55 }
 0x36b   :  { %5074 = vmatprep.subr.bf16.mxu0 %v6929_v21  ;;  %5106 = vmatprep.subr.bf16.mxu1 %v6931_v34 }
 0x36e   :  { %5076 = vmatpush1.bf16.msra.mxu0 %v6933_v20  ;;  %5108 = vmatpush1.bf16.msra.mxu1 %v6936_v30 }
 0x36f   :  { %5078 = vmatprep.subr.bf16.mxu0 %v6941_v45  ;;  %5110 = vmatprep.subr.bf16.mxu1 %v6943_v47 }
 0x372   :  { %5080 = vmatpush1.bf16.msra.mxu0 %v6945_v50  ;;  %5112 = vmatpush1.bf16.msra.mxu1 %v6948_v61 }
 0x373   :  { %5082 = vmatprep.subr.bf16.mxu0 %v6953_v11  ;;  %5114 = vmatprep.subr.bf16.mxu1 %v6955_v28 }
 0x376   :  { %5084 = vmatpush1.bf16.msra.mxu0 %v6957_v33  ;;  %5116 = vmatpush1.bf16.msra.mxu1 %v6960_v46 }
 0x377   :  { %5086 = vmatprep.subr.bf16.mxu0 %v6965_v1  ;;  %5118 = vmatprep.subr.bf16.mxu1 %v6967_v63 }
 0x37a   :  { %5088 = vmatpush1.bf16.msra.mxu0 %v6969_v12  ;;  %5120 = vmatpush1.bf16.msra.mxu1 %v6972_v23 }
 0x37b   :  { %5090 = vmatprep.subr.bf16.mxu0 %v6976_v44  ;;  %5122 = vmatprep.subr.bf16.mxu1 %v6978_v51 }
 0x37e   :  { %5092 = vmatpush1.bf16.msra.mxu0 %v6981_v58  ;;  %5124 = vmatpush1.bf16.msra.mxu1 %v6985_v15 }
 0x37f   :  { %5094 = vmatprep.subr.bf16.mxu0 %v6987_v19  ;;  %5126 = vmatprep.subr.bf16.mxu1 %v6989_v52 }
 0x382   :  { %5096 = vmatpush1.bf16.msra.mxu0 %v6992_v57  ;;  %5128 = vmatpush1.bf16.msra.mxu1 %v6996_v59 }
 0x383   :  { %5130 = vmatprep.subr.bf16.mxu0 %v6859_v22  ;;  %5162 = vmatprep.subr.bf16.mxu1 %v6861_v35 }
 0x438   :  { %v1264_v7 = vpop.f32.mrb[6].mxu0  ;;  %v1335_v25 = vpop.f32.mrb[6].mxu1 }
 0x439   :  { %v5903_v29 = vadd.f32 %v1264_v7, %v6786_v14  ;;  %v1266_v27 = vpop.f32.mrb[7].mxu0  ;;  %v1337_v32 = vpop.f32.mrb[7].mxu1  ;;  %v5919_v54 = vadd.f32 %v1335_v25, %v6797_v31 }
 0x43a   :  { %v5904_v41 = vadd.f32 %v1266_v27, %v6790_v17  ;;  %v5920_v2 = vadd.f32 %v1337_v32, %v6803_v40 }
 0x43b   :  { %v4758_v53 = vmul.f32 -1.442695, %v5903_v29  ;;  %v4760_v5 = vmul.f32 -1.442695, %v5919_v54 }
 0x43c   :  { %v4759_v42 = vmul.f32 -1.442695, %v5904_v41 }
 0x43d   :  { %6084 = vpow2.f32 %v4758_v53 }
 0x43e   :  { %6086 = vpow2.f32 %v4759_v42 }
 0x43f   :  { %6088 = vtanh.f32 %v5920_v2 }
 0x440   :  { %6090 = vpow2.f32 %v4760_v5 }
 0x447   :  { %v6085_v8 = vpop.eup %6084 }
 0x448   :  { %v1353_v24 = vadd.f32 1.0, %v6085_v8  ;;  %v6087_v39 = vpop.eup %6086 }
 0x449   :  { %v1354_v43 = vadd.f32 1.0, %v6087_v39  ;;  %v6089_v56 = vpop.eup %6088 }
 0x44a   :  { %6092 = vrcp.f32 %v1353_v24  ;;  %v6091_v60 = vpop.eup %6090 }
 0x44b   :  { %6094 = vrcp.f32 %v1354_v43  ;;  %v1355_v27 = vadd.f32 1.0, %v6091_v60 }
 0x44d   :  { %6096 = vrcp.f32 %v1355_v27 }
 0x454   :  { %v6093_v6 = vpop.eup %6092 }
 0x455   :  { %v1364_v7 = vmul.f32 %v6093_v6, %v6089_v56  ;;  %v6095_v29 = vpop.eup %6094 }
 0x456   :  { %v1363_v41 = vmul.f32 %v6095_v29, %v6914_v4 }
 0x457   :  { %v6097_v32 = vpop.eup %6096 }
 0x458   :  { %v7008_v25 = vadd.f32 %v1364_v7, %v1363_v41 }
 0x45a   :  { %6098 = vtanh.f32 %v7008_v25 }
 0x464   :  { %v6099_v53 = vpop.eup %6098 }
 0x465   :  { %v7011_v42 = vmul.f32 %v6099_v53, %v6097_v32 }
 0x467   :  { %1506 = vmatmul.mubr.f32.vlgmr.msra.gmra.mrb[8].mxu0 %v7011_v42  ;;  %1577 = vmatmul.mubr.f32.vlgmr.msra.gmra.mrb[8].mxu1 %v7011_v42 }
 0x468   :  { %5132 = vmatpush1.bf16.msra.mxu0 %v6863_v38  ;;  %5164 = vmatpush1.bf16.msra.mxu1 %v6866_v26 }
 0x469   :  { %5134 = vmatprep.subr.bf16.mxu0 %v6871_v37  ;;  %5166 = vmatprep.subr.bf16.mxu1 %v6873_v48 }
 0x46a   :  { %1748 = vmatprep.mubr.f32.mxu0 %v6443_v0  ;;  %1819 = vmatprep.mubr.f32.mxu1 %v6443_v0 }
 0x46c   :  { %5136 = vmatpush1.bf16.msra.mxu0 %v6875_v49  ;;  %5168 = vmatpush1.bf16.msra.mxu1 %v6878_v55 }
 0x46d   :  { %5138 = vmatprep.subr.bf16.mxu0 %v6929_v21  ;;  %5170 = vmatprep.subr.bf16.mxu1 %v6931_v34 }
 0x470   :  { %5140 = vmatpush1.bf16.msra.mxu0 %v6933_v20  ;;  %5172 = vmatpush1.bf16.msra.mxu1 %v6936_v30 }
 0x471   :  { %5142 = vmatprep.subr.bf16.mxu0 %v6941_v45  ;;  %5174 = vmatprep.subr.bf16.mxu1 %v6943_v47 }
 0x474   :  { %5144 = vmatpush1.bf16.msra.mxu0 %v6945_v50  ;;  %5176 = vmatpush1.bf16.msra.mxu1 %v6948_v61 }
 0x475   :  { %5146 = vmatprep.subr.bf16.mxu0 %v6953_v11  ;;  %5178 = vmatprep.subr.bf16.mxu1 %v6955_v28 }
 0x478   :  { %5148 = vmatpush1.bf16.msra.mxu0 %v6957_v33  ;;  %5180 = vmatpush1.bf16.msra.mxu1 %v6960_v46 }
 0x479   :  { %5150 = vmatprep.subr.bf16.mxu0 %v6965_v1  ;;  %5182 = vmatprep.subr.bf16.mxu1 %v6967_v63 }
 0x47c   :  { %5152 = vmatpush1.bf16.msra.mxu0 %v6969_v12  ;;  %5184 = vmatpush1.bf16.msra.mxu1 %v6972_v23 }
 0x47d   :  { %5154 = vmatprep.subr.bf16.mxu0 %v6976_v44  ;;  %5186 = vmatprep.subr.bf16.mxu1 %v6978_v51 }
 0x480   :  { %5156 = vmatpush1.bf16.msra.mxu0 %v6981_v58  ;;  %5188 = vmatpush1.bf16.msra.mxu1 %v6985_v15 }
 0x481   :  { %5158 = vmatprep.subr.bf16.mxu0 %v6987_v19  ;;  %5190 = vmatprep.subr.bf16.mxu1 %v6989_v52 }
 0x484   :  { %5160 = vmatpush1.bf16.msra.mxu0 %v6992_v57  ;;  %5192 = vmatpush1.bf16.msra.mxu1 %v6996_v59 }
 0x485   :  { %5194 = vmatprep.subr.bf16.mxu0 %v6859_v22  ;;  %5226 = vmatprep.subr.bf16.mxu1 %v6861_v35 }
 0x53a   :  { %v1507_v4 = vpop.f32.mrb[8].mxu0  ;;  %v1578_v54 = vpop.f32.mrb[8].mxu1 }
 0x53b   :  { %v5905_v2 = vadd.f32 %v1507_v4, %v6786_v14  ;;  %v1509_v5 = vpop.f32.mrb[9].mxu0  ;;  %v1580_v8 = vpop.f32.mrb[9].mxu1  ;;  %v5921_v56 = vadd.f32 %v1578_v54, %v6797_v31 }
 0x53c   :  { %v5906_v24 = vadd.f32 %v1509_v5, %v6790_v17  ;;  %v5922_v60 = vadd.f32 %v1580_v8, %v6803_v40 }
 0x53d   :  { %v4761_v39 = vmul.f32 -1.442695, %v5905_v2  ;;  %v4763_v6 = vmul.f32 -1.442695, %v5921_v56 }
 0x53e   :  { %v4762_v43 = vmul.f32 -1.442695, %v5906_v24 }
 0x53f   :  { %6100 = vpow2.f32 %v4761_v39 }
 0x540   :  { %6102 = vpow2.f32 %v4762_v43 }
 0x541   :  { %6104 = vtanh.f32 %v5922_v60 }
 0x542   :  { %6106 = vpow2.f32 %v4763_v6 }
 0x549   :  { %v6101_v22 = vpop.eup %6100 }
 0x54a   :  { %v1596_v7 = vadd.f32 1.0, %v6101_v22  ;;  %v6103_v35 = vpop.eup %6102 }
 0x54b   :  { %v1597_v29 = vadd.f32 1.0, %v6103_v35  ;;  %v6105_v27 = vpop.eup %6104 }
 0x54c   :  { %6108 = vrcp.f32 %v1596_v7  ;;  %v6107_v41 = vpop.eup %6106 }
 0x54d   :  { %6110 = vrcp.f32 %v1597_v29  ;;  %v1598_v2 = vadd.f32 1.0, %v6107_v41 }
 0x54f   :  { %6112 = vrcp.f32 %v1598_v2 }
 0x556   :  { %v6109_v32 = vpop.eup %6108 }
 0x557   :  { %v1607_v53 = vmul.f32 %v6109_v32, %v6105_v27  ;;  %v6111_v4 = vpop.eup %6110 }
 0x558   :  { %v1606_v5 = vmul.f32 %v6111_v4, %v7008_v25 }
 0x559   :  { %v6113_v8 = vpop.eup %6112 }
 0x55a   :  { %v7054_v54 = vadd.f32 %v1607_v53, %v1606_v5 }
 0x55c   :  { %6114 = vtanh.f32 %v7054_v54 }
 0x566   :  { %v6115_v24 = vpop.eup %6114 }
 0x567   :  { %v7057_v39 = vmul.f32 %v6115_v24, %v6113_v8 }
 0x569   :  { %1749 = vmatmul.mubr.f32.vlgmr.msra.gmra.mrb[10].mxu0 %v7057_v39  ;;  %1820 = vmatmul.mubr.f32.vlgmr.msra.gmra.mrb[10].mxu1 %v7057_v39 }
 0x56a   :  { %5196 = vmatpush1.bf16.msra.mxu0 %v6863_v38  ;;  %5228 = vmatpush1.bf16.msra.mxu1 %v6866_v26 }
 0x56b   :  { %5198 = vmatprep.subr.bf16.mxu0 %v6871_v37  ;;  %5230 = vmatprep.subr.bf16.mxu1 %v6873_v48 }
 0x56c   :  { %1991 = vmatprep.mubr.f32.mxu0 %v6443_v0  ;;  %2062 = vmatprep.mubr.f32.mxu1 %v6443_v0 }
 0x56e   :  { %5200 = vmatpush1.bf16.msra.mxu0 %v6875_v49  ;;  %5232 = vmatpush1.bf16.msra.mxu1 %v6878_v55 }
 0x56f   :  { %5202 = vmatprep.subr.bf16.mxu0 %v6929_v21  ;;  %5234 = vmatprep.subr.bf16.mxu1 %v6931_v34 }
 0x572   :  { %5204 = vmatpush1.bf16.msra.mxu0 %v6933_v20  ;;  %5236 = vmatpush1.bf16.msra.mxu1 %v6936_v30 }
 0x573   :  { %5206 = vmatprep.subr.bf16.mxu0 %v6941_v45  ;;  %5238 = vmatprep.subr.bf16.mxu1 %v6943_v47 }
 0x576   :  { %5208 = vmatpush1.bf16.msra.mxu0 %v6945_v50  ;;  %5240 = vmatpush1.bf16.msra.mxu1 %v6948_v61 }
 0x577   :  { %5210 = vmatprep.subr.bf16.mxu0 %v6953_v11  ;;  %5242 = vmatprep.subr.bf16.mxu1 %v6955_v28 }
 0x57a   :  { %5212 = vmatpush1.bf16.msra.mxu0 %v6957_v33  ;;  %5244 = vmatpush1.bf16.msra.mxu1 %v6960_v46 }
 0x57b   :  { %5214 = vmatprep.subr.bf16.mxu0 %v6965_v1  ;;  %5246 = vmatprep.subr.bf16.mxu1 %v6967_v63 }
 0x57e   :  { %5216 = vmatpush1.bf16.msra.mxu0 %v6969_v12  ;;  %5248 = vmatpush1.bf16.msra.mxu1 %v6972_v23 }
 0x57f   :  { %5218 = vmatprep.subr.bf16.mxu0 %v6976_v44  ;;  %5250 = vmatprep.subr.bf16.mxu1 %v6978_v51 }
 0x582   :  { %5220 = vmatpush1.bf16.msra.mxu0 %v6981_v58  ;;  %5252 = vmatpush1.bf16.msra.mxu1 %v6985_v15 }
 0x583   :  { %5222 = vmatprep.subr.bf16.mxu0 %v6987_v19  ;;  %5254 = vmatprep.subr.bf16.mxu1 %v6989_v52 }
 0x586   :  { %5224 = vmatpush1.bf16.msra.mxu0 %v6992_v57  ;;  %5256 = vmatpush1.bf16.msra.mxu1 %v6996_v59 }
 0x63c   :  { %v1750_v38 = vpop.f32.mrb[10].mxu0  ;;  %v1821_v26 = vpop.f32.mrb[10].mxu1 }
 0x63d   :  { %v5907_v37 = vadd.f32 %v1750_v38, %v6786_v14  ;;  %v1752_v48 = vpop.f32.mrb[11].mxu0  ;;  %v1823_v49 = vpop.f32.mrb[11].mxu1  ;;  %v5923_v56 = vadd.f32 %v1821_v26, %v6797_v31 }
 0x63e   :  { %v5908_v55 = vadd.f32 %v1752_v48, %v6790_v17  ;;  %v5924_v60 = vadd.f32 %v1823_v49, %v6803_v40  ;;  %v2111_v48 = vld [vmem:[#allocation4 + $0x28] sm:$0xff] }
 0x63f   :  { %v4764_v25 = vmul.f32 -1.442695, %v5907_v37  ;;  %v4766_v6 = vmul.f32 -1.442695, %v5923_v56  ;;  %v2107_v37 = vld [vmem:[#allocation4 + $0x8] sm:$0xff] }
 0x640   :  { %v4765_v43 = vmul.f32 -1.442695, %v5908_v55  ;;  %v5257_v49 = vpack.c.bf16 %v2111_v48, %v2107_v37  ;;  %v2113_v55 = vld [vmem:[#allocation4 + $0x38] sm:$0xff] }
 0x641   :  { %6116 = vpow2.f32 %v4764_v25  ;;  %v2106_v25 = vld [vmem:[#allocation4] sm:$0xff] }
 0x642   :  { %6118 = vpow2.f32 %v4765_v43  ;;  %v2110_v43 = vld [vmem:[#allocation4 + $0x20] sm:$0xff]  ;;  %5258 = vmatprep.subr.bf16.mxu0 %v5257_v49 }
 0x643   :  { %6120 = vtanh.f32 %v5924_v60  ;;  %v5259_v60 = vpack.c.bf16 %v2110_v43, %v2106_v25  ;;  %v2381_v43 = vld [vmem:[#allocation7] sm:$0xff] }
 0x644   :  { %6122 = vpow2.f32 %v4766_v6  ;;  %v2108_v6 = vld [vmem:[#allocation4 + $0x10] sm:$0xff] }
 0x64b   :  { %v6117_v22 = vpop.eup %6116 }
 0x64c   :  { %v1839_v7 = vadd.f32 1.0, %v6117_v22  ;;  %v6119_v35 = vpop.eup %6118  ;;  %v2112_v22 = vld [vmem:[#allocation4 + $0x30] sm:$0xff] }
 0x64d   :  { %v1840_v29 = vadd.f32 1.0, %v6119_v35  ;;  %v6121_v27 = vpop.eup %6120  ;;  %v2115_v35 = vld [vmem:[#allocation4 + $0x48] sm:$0xff] }
 0x64e   :  { %6124 = vrcp.f32 %v1839_v7  ;;  %v6123_v41 = vpop.eup %6122  ;;  %v5291_v7 = vpack.c.bf16 %v2112_v22, %v2108_v6  ;;  %v2387_v6 = vld [vmem:[#allocation7 + $0x30] sm:$0xff]  ;;  %v2390_v22 = vld [vmem:[#allocation7 + $0x48] sm:$0xff] }
 0x64f   :  { %6126 = vrcp.f32 %v1840_v29  ;;  %v1841_v2 = vadd.f32 1.0, %v6123_v41  ;;  %v2119_v29 = vld [vmem:[#allocation4 + $0x68] sm:$0xff] }
 0x650   :  { %v5261_v41 = vpack.c.bf16 %v2119_v29, %v2115_v35  ;;  %v2392_v35 = vld [vmem:[#allocation7 + $0x58] sm:$0xff] }
 0x651   :  { %6128 = vrcp.f32 %v1841_v2  ;;  %v2396_v29 = vld [vmem:[#allocation7 + $0x78] sm:$0xff] }
 0x658   :  { %v6125_v32 = vpop.eup %6124 }
 0x659   :  { %v1850_v53 = vmul.f32 %v6125_v32, %v6121_v27  ;;  %v6127_v4 = vpop.eup %6126  ;;  %v2117_v27 = vld [vmem:[#allocation4 + $0x58] sm:$0xff] }
 0x65a   :  { %v1849_v5 = vmul.f32 %v6127_v4, %v7054_v54  ;;  %v2109_v54 = vld [vmem:[#allocation4 + $0x18] sm:$0xff]  ;;  %v2118_v4 = vld [vmem:[#allocation4 + $0x60] sm:$0xff] }
 0x65b   :  { %v6129_v24 = vpop.eup %6128  ;;  %v5289_v56 = vpack.c.bf16 %v2113_v55, %v2109_v54  ;;  %v2121_v32 = vld [vmem:[#allocation4 + $0x78] sm:$0xff] }
 0x65c   :  { %v7098_v8 = vadd.f32 %v1850_v53, %v1849_v5  ;;  %v2114_v53 = vld [vmem:[#allocation4 + $0x40] sm:$0xff]  ;;  %v5293_v2 = vpack.c.bf16 %v2121_v32, %v2117_v27 }
 0x65d   :  { %5290 = vmatprep.subr.bf16.mxu1 %v5289_v56  ;;  %v5263_v5 = vpack.c.bf16 %v2118_v4, %v2114_v53  ;;  %v2385_v56 = vld [vmem:[#allocation7 + $0x20] sm:$0xff] }
 0x65e   :  { %6130 = vtanh.f32 %v7098_v8  ;;  %v5323_v32 = vpack.c.bf16 %v2385_v56, %v2381_v43  ;;  %v2389_v4 = vld [vmem:[#allocation7 + $0x40] sm:$0xff] }
 0x668   :  { %v6131_v38 = vpop.eup %6130 }
 0x669   :  { %v7101_v26 = vmul.f32 %v6131_v38, %v6129_v24  ;;  %v2116_v24 = vld [vmem:[#allocation4 + $0x50] sm:$0xff] }
 0x66a   :  { %v2120_v38 = vld [vmem:[#allocation4 + $0x70] sm:$0xff] }
 0x66b   :  { %1992 = vmatmul.mubr.f32.vlgmr.msra.gmra.mrb[12].mxu0 %v7101_v26  ;;  %2063 = vmatmul.mubr.f32.vlgmr.msra.gmra.mrb[12].mxu1 %v7101_v26  ;;  %v5295_v37 = vpack.c.bf16 %v2120_v38, %v2116_v24  ;;  %v5357_v24 = vpack.c.bf16 %v2396_v29, %v2392_v35  ;;  %v2391_v38 = vld [vmem:[#allocation7 + $0x50] sm:$0xff] }
 0x66c   :  { %2234 = vmatprep.mubr.f32.mxu0 %v6443_v0  ;;  %2305 = vmatprep.mubr.f32.mxu1 %v6443_v0  ;;  %v2415_v35 = vld [vmem:[#allocation7 + $0x110] sm:$0xff] }
 0x66d   :  { %5260 = vmatpush1.bf16.msra.mxu0 %v5259_v60  ;;  %5292 = vmatpush1.bf16.msra.mxu1 %v5291_v7  ;;  %v2383_v60 = vld [vmem:[#allocation7 + $0x10] sm:$0xff]  ;;  %v2394_v7 = vld [vmem:[#allocation7 + $0x68] sm:$0xff] }
 0x66e   :  { %5262 = vmatprep.subr.bf16.mxu0 %v5261_v41  ;;  %5294 = vmatprep.subr.bf16.mxu1 %v5293_v2  ;;  %v5355_v53 = vpack.c.bf16 %v2387_v6, %v2383_v60  ;;  %v2393_v2 = vld [vmem:[#allocation7 + $0x60] sm:$0xff]  ;;  %v2419_v29 = vld [vmem:[#allocation7 + $0x130] sm:$0xff] }
 0x66f   :  { %v2413_v60 = vld [vmem:[#allocation7 + $0x100] sm:$0xff] }
 0x670   :  { %v2417_v6 = vld [vmem:[#allocation7 + $0x120] sm:$0xff] }
 0x671   :  { %5264 = vmatpush1.bf16.msra.mxu0 %v5263_v5  ;;  %5296 = vmatpush1.bf16.msra.mxu1 %v5295_v37  ;;  %v5325_v5 = vpack.c.bf16 %v2394_v7, %v2390_v22  ;;  %v2395_v37 = vld [vmem:[#allocation7 + $0x70] sm:$0xff] }
 0x672   :  { %5266 = vmatprep.subr.bf16.mxu0 %v6929_v21  ;;  %5298 = vmatprep.subr.bf16.mxu1 %v6931_v34  ;;  %v2382_v21 = vld [vmem:[#allocation7 + $0x8] sm:$0xff] }
 0x673   :  { %v2386_v34 = vld [vmem:[#allocation7 + $0x28] sm:$0xff] }
 0x675   :  { %5268 = vmatpush1.bf16.msra.mxu0 %v6933_v20  ;;  %5300 = vmatpush1.bf16.msra.mxu1 %v6936_v30  ;;  %v2384_v20 = vld [vmem:[#allocation7 + $0x18] sm:$0xff] }
 0x676   :  { %5270 = vmatprep.subr.bf16.mxu0 %v6941_v45  ;;  %5302 = vmatprep.subr.bf16.mxu1 %v6943_v47  ;;  %v2388_v30 = vld [vmem:[#allocation7 + $0x38] sm:$0xff]  ;;  %v5321_v45 = vpack.c.bf16 %v2386_v34, %v2382_v21  ;;  %v2398_v21 = vld [vmem:[#allocation7 + $0x88] sm:$0xff] }
 0x677   :  { %v5353_v47 = vpack.c.bf16 %v2388_v30, %v2384_v20  ;;  %v2402_v34 = vld [vmem:[#allocation7 + $0xa8] sm:$0xff]  ;;  %v2400_v20 = vld [vmem:[#allocation7 + $0x98] sm:$0xff] }
 0x678   :  { %v2404_v30 = vld [vmem:[#allocation7 + $0xb8] sm:$0xff] }
 0x679   :  { %5272 = vmatpush1.bf16.msra.mxu0 %v6945_v50  ;;  %5304 = vmatpush1.bf16.msra.mxu1 %v6948_v61 }
 0x67a   :  { %5274 = vmatprep.subr.bf16.mxu0 %v6953_v11  ;;  %5306 = vmatprep.subr.bf16.mxu1 %v6955_v28 }
 0x67d   :  { %5276 = vmatpush1.bf16.msra.mxu0 %v6957_v33  ;;  %5308 = vmatpush1.bf16.msra.mxu1 %v6960_v46 }
 0x67e   :  { %5278 = vmatprep.subr.bf16.mxu0 %v6965_v1  ;;  %5310 = vmatprep.subr.bf16.mxu1 %v6967_v63 }
 0x681   :  { %5280 = vmatpush1.bf16.msra.mxu0 %v6969_v12  ;;  %5312 = vmatpush1.bf16.msra.mxu1 %v6972_v23 }
 0x682   :  { %5282 = vmatprep.subr.bf16.mxu0 %v6976_v44  ;;  %5314 = vmatprep.subr.bf16.mxu1 %v6978_v51 }
 0x685   :  { %5284 = vmatpush1.bf16.msra.mxu0 %v6981_v58  ;;  %5316 = vmatpush1.bf16.msra.mxu1 %v6985_v15 }
 0x686   :  { %5286 = vmatprep.subr.bf16.mxu0 %v6987_v19  ;;  %5318 = vmatprep.subr.bf16.mxu1 %v6989_v52 }
 0x689   :  { %5288 = vmatpush1.bf16.msra.mxu0 %v6992_v57  ;;  %5320 = vmatpush1.bf16.msra.mxu1 %v6996_v59 }
 0x68a   :  { %5322 = vmatprep.subr.bf16.mxu0 %v5321_v45  ;;  %5354 = vmatprep.subr.bf16.mxu1 %v5353_v47  ;;  %v5327_v45 = vpack.c.bf16 %v2393_v2, %v2389_v4  ;;  %v5359_v47 = vpack.c.bf16 %v2395_v37, %v2391_v38  ;;  %v5339_v4 = vpack.c.bf16 %v2417_v6, %v2413_v60  ;;  %v2731_v6 = vld [vmem:[#allocation9 + $0x10] sm:$0xff] }
 0x68b   :  { %v5371_v2 = vpack.c.bf16 %v2419_v29, %v2415_v35  ;;  %v2742_v35 = vld [vmem:[#allocation9 + $0x68] sm:$0xff]  ;;  %v2740_v29 = vld [vmem:[#allocation9 + $0x58] sm:$0xff] }
 0x73e   :  { %v1993_v50 = vpop.f32.mrb[12].mxu0  ;;  %v2064_v61 = vpop.f32.mrb[12].mxu1 }
 0x73f   :  { %v5909_v11 = vadd.f32 %v1993_v50, %v6786_v14  ;;  %v1995_v28 = vpop.f32.mrb[13].mxu0  ;;  %v2066_v33 = vpop.f32.mrb[13].mxu1  ;;  %v5925_v12 = vadd.f32 %v2064_v61, %v6797_v31  ;;  %v2397_v50 = vld [vmem:[#allocation7 + $0x80] sm:$0xff] }
 0x740   :  { %v5910_v46 = vadd.f32 %v1995_v28, %v6790_v17  ;;  %v5926_v23 = vadd.f32 %v2066_v33, %v6803_v40  ;;  %v2401_v61 = vld [vmem:[#allocation7 + $0xa0] sm:$0xff]  ;;  %v5361_v28 = vpack.c.bf16 %v2404_v30, %v2400_v20  ;;  %v2399_v33 = vld [vmem:[#allocation7 + $0x90] sm:$0xff]  ;;  %v2430_v20 = vld [vmem:[#allocation7 + $0x188] sm:$0xff] }
 0x741   :  { %v4767_v1 = vmul.f32 -1.442695, %v5909_v11  ;;  %v4769_v44 = vmul.f32 -1.442695, %v5925_v12  ;;  %v5329_v11 = vpack.c.bf16 %v2402_v34, %v2398_v21  ;;  %v2408_v12 = vld [vmem:[#allocation7 + $0xd8] sm:$0xff]  ;;  %v2423_v21 = vld [vmem:[#allocation7 + $0x150] sm:$0xff] }
 0x742   :  { %v4768_v63 = vmul.f32 -1.442695, %v5910_v46  ;;  %v2403_v46 = vld [vmem:[#allocation7 + $0xb0] sm:$0xff]  ;;  %v2434_v30 = vld [vmem:[#allocation7 + $0x1a8] sm:$0xff] }
 0x743   :  { %6132 = vpow2.f32 %v4767_v1  ;;  %v2406_v1 = vld [vmem:[#allocation7 + $0xc8] sm:$0xff]  ;;  %v2427_v34 = vld [vmem:[#allocation7 + $0x170] sm:$0xff] }
 0x744   :  { %6134 = vpow2.f32 %v4768_v63  ;;  %v2410_v63 = vld [vmem:[#allocation7 + $0xe8] sm:$0xff] }
 0x745   :  { %6136 = vtanh.f32 %v5926_v23  ;;  %v2412_v23 = vld [vmem:[#allocation7 + $0xf8] sm:$0xff] }
 0x746   :  { %6138 = vpow2.f32 %v4769_v44  ;;  %v5331_v44 = vpack.c.bf16 %v2401_v61, %v2397_v50  ;;  %v5375_v61 = vpack.c.bf16 %v2427_v34, %v2423_v21  ;;  %v2750_v21 = vld [vmem:[#allocation9 + $0xa8] sm:$0xff]  ;;  %v2748_v34 = vld [vmem:[#allocation9 + $0x98] sm:$0xff] }
 0x74d   :  { %v6133_v51 = vpop.eup %6132 }
 0x74e   :  { %v2082_v58 = vadd.f32 1.0, %v6133_v51  ;;  %v6135_v15 = vpop.eup %6134  ;;  %v5363_v51 = vpack.c.bf16 %v2403_v46, %v2399_v33  ;;  %v5345_v33 = vpack.c.bf16 %v2434_v30, %v2430_v20  ;;  %v2752_v30 = vld [vmem:[#allocation9 + $0xb8] sm:$0xff] }
 0x74f   :  { %v2083_v19 = vadd.f32 1.0, %v6135_v15  ;;  %v6137_v52 = vpop.eup %6136  ;;  %v2409_v15 = vld [vmem:[#allocation7 + $0xe0] sm:$0xff] }
 0x750   :  { %6140 = vrcp.f32 %v2082_v58  ;;  %v6139_v57 = vpop.eup %6138  ;;  %v2405_v58 = vld [vmem:[#allocation7 + $0xc0] sm:$0xff] }
 0x751   :  { %6142 = vrcp.f32 %v2083_v19  ;;  %v2084_v49 = vadd.f32 1.0, %v6139_v57  ;;  %v5333_v19 = vpack.c.bf16 %v2410_v63, %v2406_v1  ;;  %v2407_v57 = vld [vmem:[#allocation7 + $0xd0] sm:$0xff]  ;;  %v5335_v43 = vpack.c.bf16 %v2409_v15, %v2405_v58 }
 0x752   :  { %v2431_v1 = vld [vmem:[#allocation7 + $0x190] sm:$0xff] }
 0x753   :  { %6144 = vrcp.f32 %v2084_v49  ;;  %v2416_v49 = vld [vmem:[#allocation7 + $0x118] sm:$0xff]  ;;  %v2435_v63 = vld [vmem:[#allocation7 + $0x1b0] sm:$0xff] }
 0x754   :  { %v5379_v15 = vpack.c.bf16 %v2435_v63, %v2431_v1  ;;  %v2758_v1 = vld [vmem:[#allocation9 + $0xe8] sm:$0xff]  ;;  %v2756_v63 = vld [vmem:[#allocation9 + $0xd8] sm:$0xff] }
 0x75a   :  { %v6141_v59 = vpop.eup %6140 }
 0x75b   :  { %v2093_v48 = vmul.f32 %v6141_v59, %v6137_v52  ;;  %v6143_v54 = vpop.eup %6142  ;;  %v5365_v52 = vpack.c.bf16 %v2412_v23, %v2408_v12  ;;  %v2411_v59 = vld [vmem:[#allocation7 + $0xf0] sm:$0xff]  ;;  %v2438_v12 = vld [vmem:[#allocation7 + $0x1c8] sm:$0xff] }
 0x75c   :  { %v2092_v55 = vmul.f32 %v6143_v54, %v7098_v8  ;;  %v2418_v54 = vld [vmem:[#allocation7 + $0x128] sm:$0xff]  ;;  %v5367_v56 = vpack.c.bf16 %v2411_v59, %v2407_v57  ;;  %v2441_v59 = vld [vmem:[#allocation7 + $0x1e0] sm:$0xff] }
 0x75d   :  { %v6145_v27 = vpop.eup %6144  ;;  %v2442_v23 = vld [vmem:[#allocation7 + $0x1e8] sm:$0xff] }
 0x75e   :  { %v7136_v25 = vadd.f32 %v2093_v48, %v2092_v55  ;;  %v2414_v48 = vld [vmem:[#allocation7 + $0x108] sm:$0xff]  ;;  %v2420_v55 = vld [vmem:[#allocation7 + $0x138] sm:$0xff] }
 0x75f   :  { %v5337_v22 = vpack.c.bf16 %v2418_v54, %v2414_v48  ;;  %v5369_v7 = vpack.c.bf16 %v2420_v55, %v2416_v49  ;;  %v2439_v48 = vld [vmem:[#allocation7 + $0x1d0] sm:$0xff] }
 0x760   :  { %6146 = vtanh.f32 %v7136_v25  ;;  %v2443_v54 = vld [vmem:[#allocation7 + $0x1f0] sm:$0xff] }
 0x761   :  { %v5383_v55 = vpack.c.bf16 %v2443_v54, %v2439_v48  ;;  %v2766_v48 = vld [vmem:[#allocation9 + $0x128] sm:$0xff]  ;;  %v2764_v54 = vld [vmem:[#allocation9 + $0x118] sm:$0xff] }
 0x76a   :  { %v6147_v41 = vpop.eup %6146 }
 0x76b   :  { %v7139_v8 = vmul.f32 %v6147_v41, %v6145_v27  ;;  %v2422_v27 = vld [vmem:[#allocation7 + $0x148] sm:$0xff] }
 0x76c   :  { %v2426_v41 = vld [vmem:[#allocation7 + $0x168] sm:$0xff] }
 0x76d   :  { %2235 = vmatmul.mubr.f32.vlgmr.msra.gmra.mrb[14].mxu0 %v7139_v8  ;;  %2306 = vmatmul.mubr.f32.vlgmr.msra.gmra.mrb[14].mxu1 %v7139_v8  ;;  %v5341_v38 = vpack.c.bf16 %v2426_v41, %v2422_v27  ;;  %v2744_v41 = vld [vmem:[#allocation9 + $0x78] sm:$0xff] }
 0x76e   :  { %5324 = vmatpush1.bf16.msra.mxu0 %v5323_v32  ;;  %5356 = vmatpush1.bf16.msra.mxu1 %v5355_v53  ;;  %v2424_v32 = vld [vmem:[#allocation7 + $0x158] sm:$0xff] }
 0x76f   :  { %5326 = vmatprep.subr.bf16.mxu0 %v5325_v5  ;;  %5358 = vmatprep.subr.bf16.mxu1 %v5357_v24  ;;  %v2428_v53 = vld [vmem:[#allocation7 + $0x178] sm:$0xff]  ;;  %v2421_v5 = vld [vmem:[#allocation7 + $0x140] sm:$0xff] }
 0x770   :  { %2531 = vmatprep.mubr.f32.mxu0 %v6443_v0  ;;  %2644 = vmatprep.mubr.f32.mxu1 %v6443_v0  ;;  %v2425_v24 = vld [vmem:[#allocation7 + $0x160] sm:$0xff]  ;;  %v5373_v37 = vpack.c.bf16 %v2428_v53, %v2424_v32 }
 0x771   :  { %v5343_v50 = vpack.c.bf16 %v2425_v24, %v2421_v5  ;;  %v2737_v32 = vld [vmem:[#allocation9 + $0x40] sm:$0xff]  ;;  %v2739_v5 = vld [vmem:[#allocation9 + $0x50] sm:$0xff] }
 0x772   :  { %5328 = vmatpush1.bf16.msra.mxu0 %v5327_v45  ;;  %5360 = vmatpush1.bf16.msra.mxu1 %v5359_v47  ;;  %v2432_v45 = vld [vmem:[#allocation7 + $0x198] sm:$0xff]  ;;  %v2741_v53 = vld [vmem:[#allocation9 + $0x60] sm:$0xff]  ;;  %v2743_v24 = vld [vmem:[#allocation9 + $0x70] sm:$0xff] }
 0x773   :  { %5330 = vmatprep.subr.bf16.mxu0 %v5329_v11  ;;  %5362 = vmatprep.subr.bf16.mxu1 %v5361_v28  ;;  %v2436_v47 = vld [vmem:[#allocation7 + $0x1b8] sm:$0xff]  ;;  %v2429_v11 = vld [vmem:[#allocation7 + $0x180] sm:$0xff] }
 0x774   :  { %v2433_v28 = vld [vmem:[#allocation7 + $0x1a0] sm:$0xff]  ;;  %v5377_v46 = vpack.c.bf16 %v2436_v47, %v2432_v45 }
 0x775   :  { %v5347_v58 = vpack.c.bf16 %v2433_v28, %v2429_v11  ;;  %v2745_v45 = vld [vmem:[#allocation9 + $0x80] sm:$0xff]  ;;  %v2747_v11 = vld [vmem:[#allocation9 + $0x90] sm:$0xff] }
 0x776   :  { %5332 = vmatpush1.bf16.msra.mxu0 %v5331_v44  ;;  %5364 = vmatpush1.bf16.msra.mxu1 %v5363_v51  ;;  %v2440_v44 = vld [vmem:[#allocation7 + $0x1d8] sm:$0xff]  ;;  %v2749_v47 = vld [vmem:[#allocation9 + $0xa0] sm:$0xff]  ;;  %v2751_v28 = vld [vmem:[#allocation9 + $0xb0] sm:$0xff] }
 0x777   :  { %5334 = vmatprep.subr.bf16.mxu0 %v5333_v19  ;;  %5366 = vmatprep.subr.bf16.mxu1 %v5365_v52  ;;  %v2444_v51 = vld [vmem:[#allocation7 + $0x1f8] sm:$0xff]  ;;  %v2437_v19 = vld [vmem:[#allocation7 + $0x1c0] sm:$0xff]  ;;  %v5349_v52 = vpack.c.bf16 %v2442_v23, %v2438_v12 }
 0x778   :  { %v5381_v57 = vpack.c.bf16 %v2444_v51, %v2440_v44  ;;  %v5351_v49 = vpack.c.bf16 %v2441_v59, %v2437_v19  ;;  %v2760_v23 = vld [vmem:[#allocation9 + $0xf8] sm:$0xff]  ;;  %v2753_v44 = vld [vmem:[#allocation9 + $0xc0] sm:$0xff]  ;;  %v2755_v19 = vld [vmem:[#allocation9 + $0xd0] sm:$0xff] }
 0x779   :  { %v2757_v51 = vld [vmem:[#allocation9 + $0xe0] sm:$0xff]  ;;  %v2762_v59 = vld [vmem:[#allocation9 + $0x108] sm:$0xff] }
 0x77a   :  { %5336 = vmatpush1.bf16.msra.mxu0 %v5335_v43  ;;  %5368 = vmatpush1.bf16.msra.mxu1 %v5367_v56  ;;  %v2729_v43 = vld [vmem:[#allocation9] sm:$0xff] }
 0x77b   :  { %5338 = vmatprep.subr.bf16.mxu0 %v5337_v22  ;;  %5370 = vmatprep.subr.bf16.mxu1 %v5369_v7  ;;  %v2735_v22 = vld [vmem:[#allocation9 + $0x30] sm:$0xff]  ;;  %v2738_v7 = vld [vmem:[#allocation9 + $0x48] sm:$0xff] }
 0x77c   :  { %v7185_v27 = vpack.c.bf16 %v2742_v35, %v2738_v7  ;;  %v2774_v7 = vld [vmem:[#allocation9 + $0x168] sm:$0xff]  ;;  %v2772_v35 = vld [vmem:[#allocation9 + $0x158] sm:$0xff] }
 0x77e   :  { %5340 = vmatpush1.bf16.msra.mxu0 %v5339_v4  ;;  %5372 = vmatpush1.bf16.msra.mxu1 %v5371_v2  ;;  %v7187_v4 = vpack.c.bf16 %v2744_v41, %v2740_v29  ;;  %v7189_v2 = vpack.c.bf16 %v2741_v53, %v2737_v32  ;;  %v2776_v29 = vld [vmem:[#allocation9 + $0x178] sm:$0xff]  ;;  %v2769_v53 = vld [vmem:[#allocation9 + $0x140] sm:$0xff] }
 0x77f   :  { %5342 = vmatprep.subr.bf16.mxu0 %v5341_v38  ;;  %5374 = vmatprep.subr.bf16.mxu1 %v5373_v37  ;;  %v7192_v38 = vpack.c.bf16 %v2743_v24, %v2739_v5  ;;  %v2746_v37 = vld [vmem:[#allocation9 + $0x88] sm:$0xff]  ;;  %v7234_v32 = vpack.c.bf16 %v2776_v29, %v2772_v35  ;;  %v2773_v5 = vld [vmem:[#allocation9 + $0x160] sm:$0xff]  ;;  %v2771_v24 = vld [vmem:[#allocation9 + $0x150] sm:$0xff] }
 0x780   :  { %v7197_v20 = vpack.c.bf16 %v2750_v21, %v2746_v37  ;;  %v7237_v37 = vpack.c.bf16 %v2773_v5, %v2769_v53  ;;  %v2775_v21 = vld [vmem:[#allocation9 + $0x170] sm:$0xff] }
 0x782   :  { %5344 = vmatpush1.bf16.msra.mxu0 %v5343_v50  ;;  %5376 = vmatpush1.bf16.msra.mxu1 %v5375_v61  ;;  %v7199_v50 = vpack.c.bf16 %v2752_v30, %v2748_v34  ;;  %v7201_v61 = vpack.c.bf16 %v2749_v47, %v2745_v45  ;;  %v2778_v34 = vld [vmem:[#allocation9 + $0x188] sm:$0xff]  ;;  %v7241_v45 = vpack.c.bf16 %v2775_v21, %v2771_v24 }
 0x783   :  { %5346 = vmatprep.subr.bf16.mxu0 %v5345_v33  ;;  %5378 = vmatprep.subr.bf16.mxu1 %v5377_v46  ;;  %v7204_v33 = vpack.c.bf16 %v2751_v28, %v2747_v11  ;;  %v2754_v46 = vld [vmem:[#allocation9 + $0xc8] sm:$0xff]  ;;  %v2780_v11 = vld [vmem:[#allocation9 + $0x198] sm:$0xff] }
 0x784   :  { %v7209_v12 = vpack.c.bf16 %v2758_v1, %v2754_v46  ;;  %v2782_v30 = vld [vmem:[#allocation9 + $0x1a8] sm:$0xff]  ;;  %v2784_v28 = vld [vmem:[#allocation9 + $0x1b8] sm:$0xff]  ;;  %v2777_v46 = vld [vmem:[#allocation9 + $0x180] sm:$0xff] }
 0x785   :  { %v7243_v47 = vpack.c.bf16 %v2782_v30, %v2778_v34  ;;  %v7245_v1 = vpack.c.bf16 %v2784_v28, %v2780_v11 }
 0x786   :  { %5348 = vmatpush1.bf16.msra.mxu0 %v5347_v58  ;;  %5380 = vmatpush1.bf16.msra.mxu1 %v5379_v15  ;;  %v7211_v58 = vpack.c.bf16 %v2760_v23, %v2756_v63  ;;  %v7213_v15 = vpack.c.bf16 %v2757_v51, %v2753_v44  ;;  %v2781_v63 = vld [vmem:[#allocation9 + $0x1a0] sm:$0xff]  ;;  %v2779_v23 = vld [vmem:[#allocation9 + $0x190] sm:$0xff] }
 0x787   :  { %5350 = vmatprep.subr.bf16.mxu0 %v5349_v52  ;;  %5382 = vmatprep.subr.bf16.mxu1 %v5381_v57  ;;  %v2759_v52 = vld [vmem:[#allocation9 + $0xf0] sm:$0xff]  ;;  %v7248_v51 = vpack.c.bf16 %v2781_v63, %v2777_v46 }
 0x788   :  { %v7216_v57 = vpack.c.bf16 %v2759_v52, %v2755_v19  ;;  %v2783_v44 = vld [vmem:[#allocation9 + $0x1b0] sm:$0xff]  ;;  %v2786_v19 = vld [vmem:[#allocation9 + $0x1c8] sm:$0xff] }
 0x789   :  { %v2790_v52 = vld [vmem:[#allocation9 + $0x1e8] sm:$0xff] }
 0x78a   :  { %5352 = vmatpush1.bf16.msra.mxu0 %v5351_v49  ;;  %5384 = vmatpush1.bf16.msra.mxu1 %v5383_v55  ;;  %v7221_v49 = vpack.c.bf16 %v2766_v48, %v2762_v59  ;;  %v2768_v55 = vld [vmem:[#allocation9 + $0x138] sm:$0xff]  ;;  %v7252_v48 = vpack.c.bf16 %v2783_v44, %v2779_v23 }
 0x78b   :  { %v2788_v59 = vld [vmem:[#allocation9 + $0x1d8] sm:$0xff] }
 0x78d   :  { %2532 = vmatmul.mubr.f32.vlgmr.msra.gmra.mrb[16].mxu0 %v6809_v18  ;;  %2645 = vmatmul.mubr.f32.vlgmr.msra.gmra.mrb[16].mxu1 %v6809_v18  ;;  %v2730_v18 = vld [vmem:[#allocation9 + $0x8] sm:$0xff] }
 0x78e   :  { %2537 = vmatprep.mubr.f32.mxu0 %v6443_v0  ;;  %2650 = vmatprep.mubr.f32.mxu1 %v6443_v0 }
 0x791   :  { %2538 = vmatmul.mubr.f32.gmra.mrb[18].mxu0 %v6853_v3  ;;  %2651 = vmatmul.mubr.f32.gmra.mrb[18].mxu1 %v6853_v3  ;;  %v2734_v3 = vld [vmem:[#allocation9 + $0x28] sm:$0xff] }
 0x792   :  { %2543 = vmatprep.mubr.f32.mxu0 %v6443_v0  ;;  %2656 = vmatprep.mubr.f32.mxu1 %v6443_v0 }
 0x795   :  { %2544 = vmatmul.mubr.f32.gmra.mrb[20].mxu0 %v6917_v62  ;;  %2657 = vmatmul.mubr.f32.gmra.mrb[20].mxu1 %v6917_v62  ;;  %v2732_v62 = vld [vmem:[#allocation9 + $0x18] sm:$0xff] }
 0x796   :  { %2549 = vmatprep.mubr.f32.mxu0 %v6443_v0  ;;  %2662 = vmatprep.mubr.f32.mxu1 %v6443_v0 }
 0x799   :  { %2550 = vmatmul.mubr.f32.gmra.mrb[22].mxu0 %v7011_v42  ;;  %2663 = vmatmul.mubr.f32.gmra.mrb[22].mxu1 %v7011_v42  ;;  %v7173_v42 = vpack.c.bf16 %v2734_v3, %v2730_v18  ;;  %v2761_v18 = vld [vmem:[#allocation9 + $0x100] sm:$0xff] }
 0x79a   :  { %2555 = vmatprep.mubr.f32.mxu0 %v6443_v0  ;;  %2668 = vmatprep.mubr.f32.mxu1 %v6443_v0  ;;  %v2765_v3 = vld [vmem:[#allocation9 + $0x120] sm:$0xff] }
 0x79b   :  { %5386 = vmatprep.subr.bf16.mxu0 %v7173_v42 }
 0x79d   :  { %2556 = vmatmul.mubr.f32.gmra.mrb[24].mxu0 %v7057_v39  ;;  %2669 = vmatmul.mubr.f32.gmra.mrb[24].mxu1 %v7057_v39  ;;  %v2736_v39 = vld [vmem:[#allocation9 + $0x38] sm:$0xff] }
 0x79e   :  { %2561 = vmatprep.mubr.f32.mxu0 %v6443_v0  ;;  %2674 = vmatprep.mubr.f32.mxu1 %v6443_v0  ;;  %v7175_v56 = vpack.c.bf16 %v2736_v39, %v2732_v62  ;;  %v7223_v62 = vpack.c.bf16 %v2768_v55, %v2764_v54  ;;  %v7225_v39 = vpack.c.bf16 %v2765_v3, %v2761_v18  ;;  %v2792_v55 = vld [vmem:[#allocation9 + $0x1f8] sm:$0xff]  ;;  %v2785_v3 = vld [vmem:[#allocation9 + $0x1c0] sm:$0xff] }
 0x79f   :  { %v7254_v54 = vpack.c.bf16 %v2790_v52, %v2786_v19  ;;  %v7257_v18 = vpack.c.bf16 %v2792_v55, %v2788_v59 }
 0x7a0   :  { %5418 = vmatprep.subr.bf16.mxu1 %v7175_v56 }
 0x7a1   :  { %2562 = vmatmul.mubr.f32.gmra.mrb[26].mxu0 %v7101_v26  ;;  %2675 = vmatmul.mubr.f32.gmra.mrb[26].mxu1 %v7101_v26  ;;  %v2733_v26 = vld [vmem:[#allocation9 + $0x20] sm:$0xff] }
 0x7a2   :  { %2567 = vmatprep.mubr.f32.mxu0 %v6443_v0  ;;  %2680 = vmatprep.mubr.f32.mxu1 %v6443_v0  ;;  %v7177_v60 = vpack.c.bf16 %v2733_v26, %v2729_v43  ;;  %v2763_v43 = vld [vmem:[#allocation9 + $0x110] sm:$0xff] }
 0x7a3   :  { %v2767_v26 = vld [vmem:[#allocation9 + $0x130] sm:$0xff] }
 0x7a4   :  { %5388 = vmatpush1.bf16.msra.mxu0 %v7177_v60 }
 0x7a5   :  { %2568 = vmatmul.mubr.f32.gmra.mrb[28].mxu0 %v7139_v8  ;;  %2681 = vmatmul.mubr.f32.gmra.mrb[28].mxu1 %v7139_v8  ;;  %v7180_v8 = vpack.c.bf16 %v2735_v22, %v2731_v6  ;;  %v2770_v6 = vld [vmem:[#allocation9 + $0x148] sm:$0xff]  ;;  %v7228_v22 = vpack.c.bf16 %v2767_v26, %v2763_v43  ;;  %v2789_v43 = vld [vmem:[#allocation9 + $0x1e0] sm:$0xff]  ;;  %v2787_v26 = vld [vmem:[#allocation9 + $0x1d0] sm:$0xff] }
 0x7a6   :  { %2573 = vmatprep.mubr.f32.mxu0 %v6443_v0  ;;  %2686 = vmatprep.mubr.f32.mxu1 %v6443_v0  ;;  %v7232_v41 = vpack.c.bf16 %v2774_v7, %v2770_v6  ;;  %v7263_v6 = vpack.c.bf16 %v2789_v43, %v2785_v3  ;;  %v2791_v7 = vld [vmem:[#allocation9 + $0x1f0] sm:$0xff] }
 0x7a7   :  { %5420 = vmatpush1.bf16.msra.mxu1 %v7180_v8  ;;  %5390 = vmatprep.subr.bf16.mxu0 %v7185_v27  ;;  %v7265_v35 = vpack.c.bf16 %v2791_v7, %v2787_v26 }
 0x7a8   :  { %5422 = vmatprep.subr.bf16.mxu1 %v7187_v4  ;;  %5392 = vmatpush1.bf16.msra.mxu0 %v7189_v2 }
 0x7a9   :  { %5394 = vmatprep.subr.bf16.mxu0 %v7197_v20 }
 0x7ab   :  { %5424 = vmatpush1.bf16.msra.mxu1 %v7192_v38 }
 0x7ac   :  { %5426 = vmatprep.subr.bf16.mxu1 %v7199_v50  ;;  %5396 = vmatpush1.bf16.msra.mxu0 %v7201_v61 }
 0x7ad   :  { %5398 = vmatprep.subr.bf16.mxu0 %v7209_v12 }
 0x7af   :  { %5428 = vmatpush1.bf16.msra.mxu1 %v7204_v33 }
 0x7b0   :  { %5430 = vmatprep.subr.bf16.mxu1 %v7211_v58  ;;  %5400 = vmatpush1.bf16.msra.mxu0 %v7213_v15 }
 0x7b1   :  { %5402 = vmatprep.subr.bf16.mxu0 %v7221_v49 }
 0x7b3   :  { %5432 = vmatpush1.bf16.msra.mxu1 %v7216_v57 }
 0x7b4   :  { %5434 = vmatprep.subr.bf16.mxu1 %v7223_v62  ;;  %5404 = vmatpush1.bf16.msra.mxu0 %v7225_v39 }
 0x7b5   :  { %5406 = vmatprep.subr.bf16.mxu0 %v7232_v41 }
 0x7b7   :  { %5436 = vmatpush1.bf16.msra.mxu1 %v7228_v22 }
 0x7b8   :  { %5438 = vmatprep.subr.bf16.mxu1 %v7234_v32  ;;  %5408 = vmatpush1.bf16.msra.mxu0 %v7237_v37 }
 0x7b9   :  { %5410 = vmatprep.subr.bf16.mxu0 %v7243_v47 }
 0x7bb   :  { %5440 = vmatpush1.bf16.msra.mxu1 %v7241_v45 }
 0x7bc   :  { %5442 = vmatprep.subr.bf16.mxu1 %v7245_v1  ;;  %5412 = vmatpush1.bf16.msra.mxu0 %v7248_v51 }
 0x7bd   :  { %5414 = vmatprep.subr.bf16.mxu0 %v7254_v54 }
 0x7bf   :  { %5444 = vmatpush1.bf16.msra.mxu1 %v7252_v48 }
 0x7c0   :  { %5446 = vmatprep.subr.bf16.mxu1 %v7257_v18  ;;  %5416 = vmatpush1.bf16.msra.mxu0 %v7263_v6 }
 0x7c1   :  { %5450 = vmatprep.subr.bf16.mxu0 %v7173_v42 }
 0x7c3   :  { %5448 = vmatpush1.bf16.msra.mxu1 %v7265_v35 }
 0x7c4   :  { %5482 = vmatprep.subr.bf16.mxu1 %v7175_v56 }
 0x840   :  { %v2236_v29 = vpop.f32.mrb[14].mxu0  ;;  %v2307_v53 = vpop.f32.mrb[14].mxu1 }
 0x841   :  { %v5911_v5 = vadd.f32 %v2236_v29, %v6786_v14  ;;  %v2238_v24 = vpop.f32.mrb[15].mxu0  ;;  %v2309_v21 = vpop.f32.mrb[15].mxu1  ;;  %v5927_v28 = vadd.f32 %v2307_v53, %v6797_v31 }
 0x842   :  { %v5912_v34 = vadd.f32 %v2238_v24, %v6790_v17  ;;  %v5928_v46 = vadd.f32 %v2309_v21, %v6803_v40 }
 0x843   :  { %v4770_v30 = vmul.f32 -1.442695, %v5911_v5  ;;  %v4772_v63 = vmul.f32 -1.442695, %v5927_v28 }
 0x844   :  { %v4771_v11 = vmul.f32 -1.442695, %v5912_v34 }
 0x845   :  { %6148 = vpow2.f32 %v4770_v30 }
 0x846   :  { %6150 = vpow2.f32 %v4771_v11 }
 0x847   :  { %6152 = vtanh.f32 %v5928_v46 }
 0x848   :  { %6154 = vpow2.f32 %v4772_v63  ;;  %v4773_v63 = vld [vmem:[%s7726_s7] ss:$0 sm:$0xff] }
 0x84f   :  { %v6149_v23 = vpop.eup %6148 }
 0x850   :  { %v2325_v44 = vadd.f32 1.0, %v6149_v23  ;;  %v6151_v19 = vpop.eup %6150 }
 0x851   :  { %v2326_v14 = vadd.f32 1.0, %v6151_v19  ;;  %v6153_v52 = vpop.eup %6152 }
 0x852   :  { %6156 = vrcp.f32 %v2325_v44  ;;  %v6155_v59 = vpop.eup %6154  ;;  %v4774_v44 = vld [vmem:[%s7727_s8] ss:$0 sm:$0xff] }
 0x853   :  { %6158 = vrcp.f32 %v2326_v14  ;;  %v2327_v43 = vadd.f32 1.0, %v6155_v59 }
 0x855   :  { %6160 = vrcp.f32 %v2327_v43 }
 0x85c   :  { %v6157_v17 = vpop.eup %6156 }
 0x85d   :  { %v2336_v55 = vmul.f32 %v6157_v17, %v6153_v52  ;;  %v6159_v3 = vpop.eup %6158  ;;  %v2445_v52 = vld [vmem:[%s7725_s6] sm:$0xf]  ;;  %s6444_s6 = smov [#allocation10]  }
 0x85e   :  { %v2335_v26 = vmul.f32 %v6159_v3, %v7136_v25  ;;  %v7325_v59 = vrot.slane %v2445_v52, %v98_v10  ;;  %v7329_v17 = vrot.slane %v2445_v52, %v102_v13  ;;  %v7340_v13 = vrot.slane %v2445_v52, %v110_v36  ;;  %s4682_s12 = sshll.u32 %s6444_s6, 4  ;;  %s4683_s12 = int_to_ptr.vmem [resolvable:$true] %s4682_s12 }
 0x85f   :  { %v6161_v40 = vpop.eup %6160  ;;  %s6364_s13 = scalar_lea.vmem %s4683_s12, 1024  ;;  %p6369_p11 = scmp.lt.s32.totalorder %s4683_s12, %s4683_s12 }
 0x860   :  { %v2337_v31 = vadd.f32 %v2336_v55, %v2335_v26  ;;  %p6365_p10 = scmp.ne.s32.totalorder %s4683_s12, %s6364_s13  ;;  %p6370_p12 = scmp.lt.s32.totalorder %s6364_s13, %s6364_s13 }
 0x862   :  { %6162 = vtanh.f32 %v2337_v31  ;;  %2342 = vst [vmem:[#allocation13] sm:$0xff] %v2337_v31  ;;  %p6371_p13 = por %p6370_p12, %p6369_p11 }
 0x864   :  { %p6372_p0 = pnand %p6371_p13, %p6365_p10 }
 0x86c   :  { %v6163_v7 = vpop.eup %6162 }
 0x86d   :  { %v2339_v29 = vmul.f32 %v6163_v7, %v6161_v40 }
 0x86f   :  { %2343 = vadd.xlane.f32.xlu0 %v2339_v29  ;;  %2574 = vmatmul.mubr.f32.gmra.mrb[30].mxu0 %v2339_v29  ;;  %v2346_v53 = vmul.f32 %v2339_v29, %v2339_v29 }
 0x870   :  { %2687 = vmatmul.mubr.f32.gmra.mrb[30].mxu1 %v2339_v29  ;;  %2857 = vmatprep.mubr.f32.mxu0 %v6443_v0 }
 0x871   :  { %2347 = vadd.xlane.f32.xlu1 %v2346_v53  ;;  %2928 = vmatprep.mubr.f32.mxu1 %v6443_v0 }
 0x873   :  { %2858 = vmatmul.mubr.f32.vlgmr.msra.gmra.mrb[16].mxu0 %v6443_v0 }
 0x874   :  { %2929 = vmatmul.mubr.f32.vlgmr.msra.gmra.mrb[16].mxu1 %v6443_v0  ;;  %5452 = vmatpush1.bf16.msra.mxu0 %v7177_v60 }
 0x875   :  { %5484 = vmatpush1.bf16.msra.mxu1 %v7180_v8  ;;  %5454 = vmatprep.subr.bf16.mxu0 %v7185_v27 }
 0x876   :  { %5486 = vmatprep.subr.bf16.mxu1 %v7187_v4  ;;  %3096 = vmatprep.mubr.f32.mxu0 %v6443_v0 }
 0x877   :  { %3167 = vmatprep.mubr.f32.mxu1 %v6443_v0 }
 0x878   :  { %5456 = vmatpush1.bf16.msra.mxu0 %v7189_v2 }
 0x879   :  { %5488 = vmatpush1.bf16.msra.mxu1 %v7192_v38  ;;  %5458 = vmatprep.subr.bf16.mxu0 %v7197_v20 }
 0x87a   :  { %5490 = vmatprep.subr.bf16.mxu1 %v7199_v50 }
 0x87c   :  { %5460 = vmatpush1.bf16.msra.mxu0 %v7201_v61 }
 0x87d   :  { %5492 = vmatpush1.bf16.msra.mxu1 %v7204_v33  ;;  %5462 = vmatprep.subr.bf16.mxu0 %v7209_v12 }
 0x87e   :  { %5494 = vmatprep.subr.bf16.mxu1 %v7211_v58 }
 0x880   :  { %5464 = vmatpush1.bf16.msra.mxu0 %v7213_v15 }
 0x881   :  { %5496 = vmatpush1.bf16.msra.mxu1 %v7216_v57  ;;  %5466 = vmatprep.subr.bf16.mxu0 %v7221_v49 }
 0x882   :  { %5498 = vmatprep.subr.bf16.mxu1 %v7223_v62 }
 0x884   :  { %5468 = vmatpush1.bf16.msra.mxu0 %v7225_v39 }
 0x885   :  { %5500 = vmatpush1.bf16.msra.mxu1 %v7228_v22  ;;  %5470 = vmatprep.subr.bf16.mxu0 %v7232_v41 }
 0x886   :  { %5502 = vmatprep.subr.bf16.mxu1 %v7234_v32 }
 0x888   :  { %5472 = vmatpush1.bf16.msra.mxu0 %v7237_v37 }
 0x889   :  { %5504 = vmatpush1.bf16.msra.mxu1 %v7241_v45  ;;  %5474 = vmatprep.subr.bf16.mxu0 %v7243_v47 }
 0x88a   :  { %5506 = vmatprep.subr.bf16.mxu1 %v7245_v1 }
 0x88c   :  { %5476 = vmatpush1.bf16.msra.mxu0 %v7248_v51 }
 0x88d   :  { %5508 = vmatpush1.bf16.msra.mxu1 %v7252_v48  ;;  %5478 = vmatprep.subr.bf16.mxu0 %v7254_v54 }
 0x88e   :  { %5510 = vmatprep.subr.bf16.mxu1 %v7257_v18 }
 0x890   :  { %5480 = vmatpush1.bf16.msra.mxu0 %v7263_v6 }
 0x891   :  { %5512 = vmatpush1.bf16.msra.mxu1 %v7265_v35  ;;  %5514 = vmatprep.subr.bf16.mxu0 %v7173_v42 }
 0x892   :  { %5546 = vmatprep.subr.bf16.mxu1 %v7175_v56 }
 0x8fc   :  { %v2344_v25 = vpop.xlane.xlu0 %2343 }
 0x8fd   :  { %v2345_v5 = vmul.f32 0.03125, %v2344_v25 }
 0x8fe   :  { %v2348_v24 = vpop.xlane.xlu1 %2347 }
 0x8ff   :  { %v2350_v21 = vmul.f32 %v2345_v5, %v2345_v5  ;;  %v2349_v34 = vmul.f32 0.03125, %v2348_v24  ;;  %v2352_v28 = vsub.f32 %v2339_v29, %v2345_v5  ;;  %v7335_v29 = vrot.slane %v2445_v52, %v106_v16 }
 0x901   :  { %v2351_v30 = vsub.f32 %v2349_v34, %v2350_v21 }
 0x903   :  { %v2353_v11 = vadd.f32 1e-05, %v2351_v30 }
 0x905   :  { %6164 = vrsqrt.f32 %v2353_v11 }
 0x90f   :  { %v6165_v46 = vpop.eup %6164 }
 0x910   :  { %v2355_v23 = vmul.f32 %v6165_v46, %v2352_v28 }
 0x912   :  { %v2363_v19 = vmul.f32 %v4773_v63, %v2355_v23 }
 0x914   :  { %v2371_v14 = vadd.f32 %v4774_v44, %v2363_v19 }
 0x916   :  { %2372 = vst [vmem:[#allocation11] sm:$0xff] %v2371_v14 }
 0x946   :  { %v2859_v55 = vpop.f32.mrb[16].mxu0 }
 0x947   :  { %v5929_v3 = vadd.f32 %v2859_v55, %v7325_v59  ;;  %v2930_v43 = vpop.f32.mrb[16].mxu1  ;;  %v2861_v26 = vpop.f32.mrb[17].mxu0 }
 0x948   :  { %v5930_v31 = vadd.f32 %v2861_v26, %v7329_v17  ;;  %v2932_v40 = vpop.f32.mrb[17].mxu1  ;;  %v5945_v10 = vadd.f32 %v2930_v43, %v7335_v29 }
 0x949   :  { %v4775_v7 = vmul.f32 -1.442695, %v5929_v3  ;;  %v5946_v5 = vadd.f32 %v2932_v40, %v7340_v13 }
 0x94a   :  { %v4776_v53 = vmul.f32 -1.442695, %v5930_v31  ;;  %v4777_v25 = vmul.f32 -1.442695, %v5945_v10 }
 0x94b   :  { %6166 = vpow2.f32 %v4775_v7 }
 0x94c   :  { %6168 = vpow2.f32 %v4776_v53 }
 0x94d   :  { %6170 = vpow2.f32 %v4777_v25 }
 0x94e   :  { %6172 = vtanh.f32 %v5946_v5 }
 0x955   :  { %v6167_v24 = vpop.eup %6166 }
 0x956   :  { %v2948_v21 = vadd.f32 1.0, %v6167_v24  ;;  %v6169_v34 = vpop.eup %6168 }
 0x957   :  { %v2949_v16 = vadd.f32 1.0, %v6169_v34  ;;  %v6171_v30 = vpop.eup %6170 }
 0x958   :  { %6174 = vrcp.f32 %v2948_v21  ;;  %v6173_v11 = vpop.eup %6172  ;;  %v2950_v23 = vadd.f32 1.0, %v6171_v30 }
 0x959   :  { %6176 = vrcp.f32 %v2949_v16 }
 0x95a   :  { %6178 = vrcp.f32 %v2950_v23 }
 0x962   :  { %v6175_v28 = vpop.eup %6174 }
 0x963   :  { %v2959_v46 = vmul.f32 %v6175_v28, %v6173_v11  ;;  %v6177_v63 = vpop.eup %6176 }
 0x964   :  { %v2958_v9 = vmul.f32 0.0, %v6177_v63  ;;  %v6179_v44 = vpop.eup %6178 }
 0x966   :  { %v7343_v36 = vadd.f32 %v2959_v46, %v2958_v9 }
 0x968   :  { %6180 = vtanh.f32 %v7343_v36 }
 0x972   :  { %v6181_v19 = vpop.eup %6180 }
 0x973   :  { %v2962_v14 = vmul.f32 %v6181_v19, %v6179_v44  ;;  %v3688_v19 = vld [vmem:[#allocation9] sm:$0xff] }
 0x975   :  { %2963 = vst [vmem:[#allocation10] sm:$0xff] %v2962_v14  ;;  %3097 = vmatmul.mubr.f32.vlgmr.msra.gmra.mrb[18].mxu0 %v2962_v14  ;;  %3168 = vmatmul.mubr.f32.vlgmr.msra.gmra.mrb[18].mxu1 %v2962_v14  ;;  %v3692_v14 = vld [vmem:[#allocation9 + $0x20] sm:$0xff] }
 0x976   :  { %5516 = vmatpush1.bf16.msra.mxu0 %v7177_v60  ;;  %5548 = vmatpush1.bf16.msra.mxu1 %v7180_v8 }
 0x977   :  { %5518 = vmatprep.subr.bf16.mxu0 %v7185_v27  ;;  %5550 = vmatprep.subr.bf16.mxu1 %v7187_v4 }
 0x978   :  { %3336 = vmatprep.mubr.f32.mxu0 %v6443_v0  ;;  %3407 = vmatprep.mubr.f32.mxu1 %v6443_v0 }
 0x97a   :  { %5520 = vmatpush1.bf16.msra.mxu0 %v7189_v2  ;;  %5552 = vmatpush1.bf16.msra.mxu1 %v7192_v38 }
 0x97b   :  { %5522 = vmatprep.subr.bf16.mxu0 %v7197_v20  ;;  %5554 = vmatprep.subr.bf16.mxu1 %v7199_v50 }
 0x97e   :  { %5524 = vmatpush1.bf16.msra.mxu0 %v7201_v61  ;;  %5556 = vmatpush1.bf16.msra.mxu1 %v7204_v33 }
 0x97f   :  { %5526 = vmatprep.subr.bf16.mxu0 %v7209_v12  ;;  %5558 = vmatprep.subr.bf16.mxu1 %v7211_v58 }
 0x982   :  { %5528 = vmatpush1.bf16.msra.mxu0 %v7213_v15  ;;  %5560 = vmatpush1.bf16.msra.mxu1 %v7216_v57 }
 0x983   :  { %5530 = vmatprep.subr.bf16.mxu0 %v7221_v49  ;;  %5562 = vmatprep.subr.bf16.mxu1 %v7223_v62 }
 0x986   :  { %5532 = vmatpush1.bf16.msra.mxu0 %v7225_v39  ;;  %5564 = vmatpush1.bf16.msra.mxu1 %v7228_v22 }
 0x987   :  { %5534 = vmatprep.subr.bf16.mxu0 %v7232_v41  ;;  %5566 = vmatprep.subr.bf16.mxu1 %v7234_v32 }
 0x98a   :  { %5536 = vmatpush1.bf16.msra.mxu0 %v7237_v37  ;;  %5568 = vmatpush1.bf16.msra.mxu1 %v7241_v45 }
 0x98b   :  { %5538 = vmatprep.subr.bf16.mxu0 %v7243_v47  ;;  %5570 = vmatprep.subr.bf16.mxu1 %v7245_v1 }
 0x98e   :  { %5540 = vmatpush1.bf16.msra.mxu0 %v7248_v51  ;;  %5572 = vmatpush1.bf16.msra.mxu1 %v7252_v48 }
 0x98f   :  { %5542 = vmatprep.subr.bf16.mxu0 %v7254_v54  ;;  %5574 = vmatprep.subr.bf16.mxu1 %v7257_v18 }
 0x992   :  { %5544 = vmatpush1.bf16.msra.mxu0 %v7263_v6  ;;  %5576 = vmatpush1.bf16.msra.mxu1 %v7265_v35 }
 0x993   :  { %5578 = vmatprep.subr.bf16.mxu0 %v7173_v42  ;;  %5610 = vmatprep.subr.bf16.mxu1 %v7175_v56 }
 0xa48   :  { %v3098_v52 = vpop.f32.mrb[18].mxu0  ;;  %v3169_v55 = vpop.f32.mrb[18].mxu1 }
 0xa49   :  { %v5931_v3 = vadd.f32 %v3098_v52, %v7325_v59  ;;  %v3100_v43 = vpop.f32.mrb[19].mxu0  ;;  %v3171_v26 = vpop.f32.mrb[19].mxu1  ;;  %v5947_v53 = vadd.f32 %v3169_v55, %v7335_v29  ;;  %v7434_v55 = vpack.c.bf16 %v3692_v14, %v3688_v19  ;;  %v3731_v19 = vld [vmem:[#allocation9 + $0x158] sm:$0xff] }
 0xa4a   :  { %v5932_v31 = vadd.f32 %v3100_v43, %v7329_v17  ;;  %v5948_v10 = vadd.f32 %v3171_v26, %v7340_v13  ;;  %v3694_v43 = vld [vmem:[#allocation9 + $0x30] sm:$0xff] }
 0xa4b   :  { %v4778_v40 = vmul.f32 -1.442695, %v5931_v3  ;;  %v4780_v25 = vmul.f32 -1.442695, %v5947_v53  ;;  %v3690_v3 = vld [vmem:[#allocation9 + $0x10] sm:$0xff] }
 0xa4c   :  { %v4779_v7 = vmul.f32 -1.442695, %v5932_v31  ;;  %v7437_v26 = vpack.c.bf16 %v3694_v43, %v3690_v3  ;;  %v3697_v31 = vld [vmem:[#allocation9 + $0x48] sm:$0xff]  ;;  %v3735_v3 = vld [vmem:[#allocation9 + $0x178] sm:$0xff]  ;;  %v3728_v43 = vld [vmem:[#allocation9 + $0x140] sm:$0xff] }
 0xa4d   :  { %6182 = vpow2.f32 %v4778_v40  ;;  %v3701_v40 = vld [vmem:[#allocation9 + $0x68] sm:$0xff] }
 0xa4e   :  { %6184 = vpow2.f32 %v4779_v7  ;;  %v3699_v7 = vld [vmem:[#allocation9 + $0x58] sm:$0xff]  ;;  %v7442_v53 = vpack.c.bf16 %v3701_v40, %v3697_v31  ;;  %v3732_v31 = vld [vmem:[#allocation9 + $0x160] sm:$0xff]  ;;  %v7492_v40 = vpack.c.bf16 %v3735_v3, %v3731_v19 }
 0xa4f   :  { %6186 = vtanh.f32 %v5948_v10  ;;  %v3703_v10 = vld [vmem:[#allocation9 + $0x78] sm:$0xff] }
 0xa50   :  { %6188 = vpow2.f32 %v4780_v25  ;;  %v3696_v25 = vld [vmem:[#allocation9 + $0x40] sm:$0xff] }
 0xa57   :  { %v6183_v42 = vpop.eup %6182 }
 0xa58   :  { %v3187_v5 = vadd.f32 1.0, %v6183_v42  ;;  %v6185_v56 = vpop.eup %6184  ;;  %v3700_v42 = vld [vmem:[#allocation9 + $0x60] sm:$0xff] }
 0xa59   :  { %v3188_v24 = vadd.f32 1.0, %v6185_v56  ;;  %v6187_v21 = vpop.eup %6186  ;;  %v7446_v56 = vpack.c.bf16 %v3700_v42, %v3696_v25  ;;  %v3734_v25 = vld [vmem:[#allocation9 + $0x170] sm:$0xff]  ;;  %v3737_v42 = vld [vmem:[#allocation9 + $0x188] sm:$0xff] }
 0xa5a   :  { %6190 = vrcp.f32 %v3187_v5  ;;  %v6189_v34 = vpop.eup %6188  ;;  %v7444_v5 = vpack.c.bf16 %v3703_v10, %v3699_v7  ;;  %v7494_v7 = vpack.c.bf16 %v3732_v31, %v3728_v43  ;;  %v3730_v10 = vld [vmem:[#allocation9 + $0x150] sm:$0xff] }
 0xa5b   :  { %6192 = vrcp.f32 %v3188_v24  ;;  %v3189_v28 = vadd.f32 1.0, %v6189_v34  ;;  %v3698_v24 = vld [vmem:[#allocation9 + $0x50] sm:$0xff] }
 0xa5d   :  { %6194 = vrcp.f32 %v3189_v28 }
 0xa64   :  { %v6191_v16 = vpop.eup %6190 }
 0xa65   :  { %v3198_v30 = vmul.f32 %v6191_v16, %v6187_v21  ;;  %v6193_v11 = vpop.eup %6192  ;;  %v3702_v21 = vld [vmem:[#allocation9 + $0x70] sm:$0xff]  ;;  %v3705_v16 = vld [vmem:[#allocation9 + $0x88] sm:$0xff] }
 0xa66   :  { %v3197_v46 = vmul.f32 %v6193_v11, %v7343_v36  ;;  %v3695_v36 = vld [vmem:[#allocation9 + $0x38] sm:$0xff]  ;;  %v7449_v34 = vpack.c.bf16 %v3702_v21, %v3698_v24  ;;  %v7497_v24 = vpack.c.bf16 %v3734_v25, %v3730_v10  ;;  %v3741_v21 = vld [vmem:[#allocation9 + $0x1a8] sm:$0xff] }
 0xa67   :  { %v6195_v23 = vpop.eup %6194  ;;  %v3707_v11 = vld [vmem:[#allocation9 + $0x98] sm:$0xff] }
 0xa68   :  { %v7385_v63 = vadd.f32 %v3198_v30, %v3197_v46  ;;  %v3709_v30 = vld [vmem:[#allocation9 + $0xa8] sm:$0xff]  ;;  %v3711_v46 = vld [vmem:[#allocation9 + $0xb8] sm:$0xff] }
 0xa69   :  { %v7454_v28 = vpack.c.bf16 %v3709_v30, %v3705_v16  ;;  %v3739_v16 = vld [vmem:[#allocation9 + $0x198] sm:$0xff] }
 0xa6a   :  { %6196 = vtanh.f32 %v7385_v63  ;;  %v3743_v30 = vld [vmem:[#allocation9 + $0x1b8] sm:$0xff] }
 0xa74   :  { %v6197_v9 = vpop.eup %6196 }
 0xa75   :  { %v3201_v44 = vmul.f32 %v6197_v9, %v6195_v23  ;;  %v3708_v23 = vld [vmem:[#allocation9 + $0xa0] sm:$0xff]  ;;  %v7456_v9 = vpack.c.bf16 %v3711_v46, %v3707_v11  ;;  %v7501_v11 = vpack.c.bf16 %v3741_v21, %v3737_v42  ;;  %v7503_v46 = vpack.c.bf16 %v3743_v30, %v3739_v16 }
 0xa77   :  { %3203 = vst [vmem:[#allocation10 + $0x8] sm:$0xff] %v3201_v44  ;;  %3337 = vmatmul.mubr.f32.vlgmr.msra.gmra.mrb[20].mxu0 %v3201_v44  ;;  %3408 = vmatmul.mubr.f32.vlgmr.msra.gmra.mrb[20].mxu1 %v3201_v44 }
 0xa78   :  { %5580 = vmatpush1.bf16.msra.mxu0 %v7177_v60  ;;  %5612 = vmatpush1.bf16.msra.mxu1 %v7180_v8 }
 0xa79   :  { %5582 = vmatprep.subr.bf16.mxu0 %v7185_v27  ;;  %5614 = vmatprep.subr.bf16.mxu1 %v7187_v4 }
 0xa7a   :  { %3576 = vmatprep.mubr.f32.mxu0 %v6443_v0  ;;  %3647 = vmatprep.mubr.f32.mxu1 %v6443_v0 }
 0xa7c   :  { %5584 = vmatpush1.bf16.msra.mxu0 %v7189_v2  ;;  %5616 = vmatpush1.bf16.msra.mxu1 %v7192_v38 }
 0xa7d   :  { %5586 = vmatprep.subr.bf16.mxu0 %v7197_v20  ;;  %5618 = vmatprep.subr.bf16.mxu1 %v7199_v50 }
 0xa80   :  { %5588 = vmatpush1.bf16.msra.mxu0 %v7201_v61  ;;  %5620 = vmatpush1.bf16.msra.mxu1 %v7204_v33 }
 0xa81   :  { %5590 = vmatprep.subr.bf16.mxu0 %v7209_v12  ;;  %5622 = vmatprep.subr.bf16.mxu1 %v7211_v58 }
 0xa84   :  { %5592 = vmatpush1.bf16.msra.mxu0 %v7213_v15  ;;  %5624 = vmatpush1.bf16.msra.mxu1 %v7216_v57 }
 0xa85   :  { %5594 = vmatprep.subr.bf16.mxu0 %v7221_v49  ;;  %5626 = vmatprep.subr.bf16.mxu1 %v7223_v62 }
 0xa88   :  { %5596 = vmatpush1.bf16.msra.mxu0 %v7225_v39  ;;  %5628 = vmatpush1.bf16.msra.mxu1 %v7228_v22 }
 0xa89   :  { %5598 = vmatprep.subr.bf16.mxu0 %v7232_v41  ;;  %5630 = vmatprep.subr.bf16.mxu1 %v7234_v32 }
 0xa8c   :  { %5600 = vmatpush1.bf16.msra.mxu0 %v7237_v37  ;;  %5632 = vmatpush1.bf16.msra.mxu1 %v7241_v45 }
 0xa8d   :  { %5602 = vmatprep.subr.bf16.mxu0 %v7243_v47  ;;  %5634 = vmatprep.subr.bf16.mxu1 %v7245_v1 }
 0xa90   :  { %5604 = vmatpush1.bf16.msra.mxu0 %v7248_v51  ;;  %5636 = vmatpush1.bf16.msra.mxu1 %v7252_v48 }
 0xa91   :  { %5606 = vmatprep.subr.bf16.mxu0 %v7254_v54  ;;  %5638 = vmatprep.subr.bf16.mxu1 %v7257_v18  ;;  %v3689_v54 = vld [vmem:[#allocation9 + $0x8] sm:$0xff] }
 0xa92   :  { %v3693_v18 = vld [vmem:[#allocation9 + $0x28] sm:$0xff] }
 0xa94   :  { %5608 = vmatpush1.bf16.msra.mxu0 %v7263_v6  ;;  %5640 = vmatpush1.bf16.msra.mxu1 %v7265_v35  ;;  %v3691_v6 = vld [vmem:[#allocation9 + $0x18] sm:$0xff]  ;;  %v7430_v35 = vpack.c.bf16 %v3693_v18, %v3689_v54  ;;  %v3726_v54 = vld [vmem:[#allocation9 + $0x130] sm:$0xff] }
 0xa95   :  { %v7432_v52 = vpack.c.bf16 %v3695_v36, %v3691_v6  ;;  %v3729_v6 = vld [vmem:[#allocation9 + $0x148] sm:$0xff] }
 0xa96   :  { %5642 = vmatprep.subr.bf16.mxu0 %v7430_v35  ;;  %v3733_v36 = vld [vmem:[#allocation9 + $0x168] sm:$0xff] }
 0xa97   :  { %5674 = vmatprep.subr.bf16.mxu1 %v7432_v52  ;;  %v7490_v14 = vpack.c.bf16 %v3733_v36, %v3729_v6 }
 0xb4a   :  { %v3338_v60 = vpop.f32.mrb[20].mxu0  ;;  %v3409_v8 = vpop.f32.mrb[20].mxu1 }
 0xb4b   :  { %v5933_v27 = vadd.f32 %v3338_v60, %v7325_v59  ;;  %v3340_v4 = vpop.f32.mrb[21].mxu0  ;;  %v3411_v2 = vpop.f32.mrb[21].mxu1  ;;  %v5949_v61 = vadd.f32 %v3409_v8, %v7335_v29  ;;  %v3706_v60 = vld [vmem:[#allocation9 + $0x90] sm:$0xff] }
 0xb4c   :  { %v5934_v38 = vadd.f32 %v3340_v4, %v7329_v17  ;;  %v5950_v33 = vadd.f32 %v3411_v2, %v7340_v13  ;;  %v3710_v8 = vld [vmem:[#allocation9 + $0xb0] sm:$0xff]  ;;  %v3713_v4 = vld [vmem:[#allocation9 + $0xc8] sm:$0xff] }
 0xb4d   :  { %v4781_v20 = vmul.f32 -1.442695, %v5933_v27  ;;  %v4783_v12 = vmul.f32 -1.442695, %v5949_v61  ;;  %v7461_v27 = vpack.c.bf16 %v3710_v8, %v3706_v60  ;;  %v3717_v2 = vld [vmem:[#allocation9 + $0xe8] sm:$0xff]  ;;  %v3712_v61 = vld [vmem:[#allocation9 + $0xc0] sm:$0xff] }
 0xb4e   :  { %v4782_v50 = vmul.f32 -1.442695, %v5934_v38  ;;  %v3715_v38 = vld [vmem:[#allocation9 + $0xd8] sm:$0xff]  ;;  %v3738_v60 = vld [vmem:[#allocation9 + $0x190] sm:$0xff] }
 0xb4f   :  { %6198 = vpow2.f32 %v4781_v20  ;;  %v7466_v20 = vpack.c.bf16 %v3717_v2, %v3713_v4  ;;  %v3742_v4 = vld [vmem:[#allocation9 + $0x1b0] sm:$0xff]  ;;  %v3745_v2 = vld [vmem:[#allocation9 + $0x1c8] sm:$0xff] }
 0xb50   :  { %6200 = vpow2.f32 %v4782_v50  ;;  %v3719_v50 = vld [vmem:[#allocation9 + $0xf8] sm:$0xff] }
 0xb51   :  { %6202 = vtanh.f32 %v5950_v33  ;;  %v3716_v33 = vld [vmem:[#allocation9 + $0xe0] sm:$0xff] }
 0xb52   :  { %6204 = vpow2.f32 %v4783_v12  ;;  %v7468_v12 = vpack.c.bf16 %v3719_v50, %v3715_v38  ;;  %v3749_v38 = vld [vmem:[#allocation9 + $0x1e8] sm:$0xff]  ;;  %v7510_v50 = vpack.c.bf16 %v3742_v4, %v3738_v60 }
 0xb59   :  { %v6199_v58 = vpop.eup %6198 }
 0xb5a   :  { %v3427_v15 = vadd.f32 1.0, %v6199_v58  ;;  %v6201_v57 = vpop.eup %6200  ;;  %v7470_v58 = vpack.c.bf16 %v3716_v33, %v3712_v61  ;;  %v7512_v61 = vpack.c.bf16 %v3749_v38, %v3745_v2  ;;  %v3747_v33 = vld [vmem:[#allocation9 + $0x1d8] sm:$0xff] }
 0xb5b   :  { %v3428_v49 = vadd.f32 1.0, %v6201_v57  ;;  %v6203_v62 = vpop.eup %6202  ;;  %v3718_v57 = vld [vmem:[#allocation9 + $0xf0] sm:$0xff] }
 0xb5c   :  { %6206 = vrcp.f32 %v3427_v15  ;;  %v6205_v39 = vpop.eup %6204  ;;  %v3714_v15 = vld [vmem:[#allocation9 + $0xd0] sm:$0xff] }
 0xb5d   :  { %6208 = vrcp.f32 %v3428_v49  ;;  %v3429_v37 = vadd.f32 1.0, %v6205_v39  ;;  %v7473_v49 = vpack.c.bf16 %v3718_v57, %v3714_v15  ;;  %v3725_v39 = vld [vmem:[#allocation9 + $0x128] sm:$0xff]  ;;  %v3751_v15 = vld [vmem:[#allocation9 + $0x1f8] sm:$0xff]  ;;  %v3744_v57 = vld [vmem:[#allocation9 + $0x1c0] sm:$0xff] }
 0xb5f   :  { %6210 = vrcp.f32 %v3429_v37  ;;  %v3720_v37 = vld [vmem:[#allocation9 + $0x100] sm:$0xff] }
 0xb66   :  { %v6207_v22 = vpop.eup %6206 }
 0xb67   :  { %v3438_v41 = vmul.f32 %v6207_v22, %v6203_v62  ;;  %v6209_v32 = vpop.eup %6208  ;;  %v3721_v62 = vld [vmem:[#allocation9 + $0x108] sm:$0xff]  ;;  %v3723_v22 = vld [vmem:[#allocation9 + $0x118] sm:$0xff] }
 0xb68   :  { %v3437_v45 = vmul.f32 %v6209_v32, %v7385_v63  ;;  %v3704_v63 = vld [vmem:[#allocation9 + $0x80] sm:$0xff]  ;;  %v3727_v32 = vld [vmem:[#allocation9 + $0x138] sm:$0xff] }
 0xb69   :  { %v6211_v1 = vpop.eup %6210  ;;  %v7458_v44 = vpack.c.bf16 %v3708_v23, %v3704_v63  ;;  %v3736_v63 = vld [vmem:[#allocation9 + $0x180] sm:$0xff] }
 0xb6a   :  { %v7425_v47 = vadd.f32 %v3438_v41, %v3437_v45  ;;  %v7478_v41 = vpack.c.bf16 %v3725_v39, %v3721_v62  ;;  %v3724_v45 = vld [vmem:[#allocation9 + $0x120] sm:$0xff]  ;;  %v7514_v62 = vpack.c.bf16 %v3751_v15, %v3747_v33 }
 0xb6b   :  { %v3740_v23 = vld [vmem:[#allocation9 + $0x1a0] sm:$0xff] }
 0xb6c   :  { %6212 = vtanh.f32 %v7425_v47  ;;  %v7506_v8 = vpack.c.bf16 %v3740_v23, %v3736_v63  ;;  %v3748_v39 = vld [vmem:[#allocation9 + $0x1e0] sm:$0xff] }
 0xb76   :  { %v6213_v51 = vpop.eup %6212 }
 0xb77   :  { %v3441_v48 = vmul.f32 %v6213_v51, %v6211_v1  ;;  %v7480_v1 = vpack.c.bf16 %v3727_v32, %v3723_v22  ;;  %v7482_v51 = vpack.c.bf16 %v3724_v45, %v3720_v37  ;;  %v3746_v22 = vld [vmem:[#allocation9 + $0x1d0] sm:$0xff]  ;;  %v7517_v37 = vpack.c.bf16 %v3748_v39, %v3744_v57 }
 0xb78   :  { %v3750_v32 = vld [vmem:[#allocation9 + $0x1f0] sm:$0xff] }
 0xb79   :  { %3443 = vst [vmem:[#allocation10 + $0x10] sm:$0xff] %v3441_v48  ;;  %3577 = vmatmul.mubr.f32.vlgmr.msra.gmra.mrb[22].mxu0 %v3441_v48  ;;  %3648 = vmatmul.mubr.f32.vlgmr.msra.gmra.mrb[22].mxu1 %v3441_v48  ;;  %v3722_v48 = vld [vmem:[#allocation9 + $0x110] sm:$0xff]  ;;  %v7521_v45 = vpack.c.bf16 %v3750_v32, %v3746_v22 }
 0xb7a   :  { %3816 = vmatprep.mubr.f32.mxu0 %v6443_v0  ;;  %3887 = vmatprep.mubr.f32.mxu1 %v6443_v0  ;;  %v7485_v18 = vpack.c.bf16 %v3726_v54, %v3722_v48 }
 0xb7b   :  { %5644 = vmatpush1.bf16.msra.mxu0 %v7434_v55  ;;  %5676 = vmatpush1.bf16.msra.mxu1 %v7437_v26 }
 0xb7c   :  { %5646 = vmatprep.subr.bf16.mxu0 %v7442_v53  ;;  %5678 = vmatprep.subr.bf16.mxu1 %v7444_v5 }
 0xb7f   :  { %5648 = vmatpush1.bf16.msra.mxu0 %v7446_v56  ;;  %5680 = vmatpush1.bf16.msra.mxu1 %v7449_v34 }
 0xb80   :  { %5650 = vmatprep.subr.bf16.mxu0 %v7454_v28  ;;  %5682 = vmatprep.subr.bf16.mxu1 %v7456_v9 }
 0xb83   :  { %5652 = vmatpush1.bf16.msra.mxu0 %v7458_v44  ;;  %5684 = vmatpush1.bf16.msra.mxu1 %v7461_v27 }
 0xb84   :  { %5654 = vmatprep.subr.bf16.mxu0 %v7466_v20  ;;  %5686 = vmatprep.subr.bf16.mxu1 %v7468_v12 }
 0xb87   :  { %5656 = vmatpush1.bf16.msra.mxu0 %v7470_v58  ;;  %5688 = vmatpush1.bf16.msra.mxu1 %v7473_v49 }
 0xb88   :  { %5658 = vmatprep.subr.bf16.mxu0 %v7478_v41  ;;  %5690 = vmatprep.subr.bf16.mxu1 %v7480_v1 }
 0xb8b   :  { %5660 = vmatpush1.bf16.msra.mxu0 %v7482_v51  ;;  %5692 = vmatpush1.bf16.msra.mxu1 %v7485_v18 }
 0xb8c   :  { %5662 = vmatprep.subr.bf16.mxu0 %v7490_v14  ;;  %5694 = vmatprep.subr.bf16.mxu1 %v7492_v40 }
 0xb8f   :  { %5664 = vmatpush1.bf16.msra.mxu0 %v7494_v7  ;;  %5696 = vmatpush1.bf16.msra.mxu1 %v7497_v24 }
 0xb90   :  { %5666 = vmatprep.subr.bf16.mxu0 %v7501_v11  ;;  %5698 = vmatprep.subr.bf16.mxu1 %v7503_v46 }
 0xb93   :  { %5668 = vmatpush1.bf16.msra.mxu0 %v7506_v8  ;;  %5700 = vmatpush1.bf16.msra.mxu1 %v7510_v50 }
 0xb94   :  { %5670 = vmatprep.subr.bf16.mxu0 %v7512_v61  ;;  %5702 = vmatprep.subr.bf16.mxu1 %v7514_v62 }
 0xb97   :  { %5672 = vmatpush1.bf16.msra.mxu0 %v7517_v37  ;;  %5704 = vmatpush1.bf16.msra.mxu1 %v7521_v45 }
 0xb98   :  { %5706 = vmatprep.subr.bf16.mxu0 %v7430_v35  ;;  %5738 = vmatprep.subr.bf16.mxu1 %v7432_v52 }
 0xc4c   :  { %v3578_v48 = vpop.f32.mrb[22].mxu0  ;;  %v3649_v54 = vpop.f32.mrb[22].mxu1 }
 0xc4d   :  { %v5935_v6 = vadd.f32 %v3578_v48, %v7325_v59  ;;  %v3580_v36 = vpop.f32.mrb[23].mxu0  ;;  %v3651_v19 = vpop.f32.mrb[23].mxu1  ;;  %v5951_v10 = vadd.f32 %v3649_v54, %v7335_v29 }
 0xc4e   :  { %v5936_v3 = vadd.f32 %v3580_v36, %v7329_v17  ;;  %v5952_v25 = vadd.f32 %v3651_v19, %v7340_v13 }
 0xc4f   :  { %v4784_v43 = vmul.f32 -1.442695, %v5935_v6  ;;  %v4786_v42 = vmul.f32 -1.442695, %v5951_v10 }
 0xc50   :  { %v4785_v31 = vmul.f32 -1.442695, %v5936_v3 }
 0xc51   :  { %6214 = vpow2.f32 %v4784_v43 }
 0xc52   :  { %6216 = vpow2.f32 %v4785_v31 }
 0xc53   :  { %6218 = vtanh.f32 %v5952_v25 }
 0xc54   :  { %6220 = vpow2.f32 %v4786_v42 }
 0xc5b   :  { %v6215_v21 = vpop.eup %6214 }
 0xc5c   :  { %v3667_v16 = vadd.f32 1.0, %v6215_v21  ;;  %v6217_v30 = vpop.eup %6216 }
 0xc5d   :  { %v3668_v63 = vadd.f32 1.0, %v6217_v30  ;;  %v6219_v23 = vpop.eup %6218 }
 0xc5e   :  { %6222 = vrcp.f32 %v3667_v16  ;;  %v6221_v60 = vpop.eup %6220 }
 0xc5f   :  { %6224 = vrcp.f32 %v3668_v63  ;;  %v3669_v33 = vadd.f32 1.0, %v6221_v60 }
 0xc61   :  { %6226 = vrcp.f32 %v3669_v33 }
 0xc68   :  { %v6223_v4 = vpop.eup %6222 }
 0xc69   :  { %v3678_v2 = vmul.f32 %v6223_v4, %v6219_v23  ;;  %v6225_v38 = vpop.eup %6224 }
 0xc6a   :  { %v3677_v15 = vmul.f32 %v6225_v38, %v7425_v47 }
 0xc6b   :  { %v6227_v39 = vpop.eup %6226 }
 0xc6c   :  { %v7533_v57 = vadd.f32 %v3678_v2, %v3677_v15 }
 0xc6e   :  { %6228 = vtanh.f32 %v7533_v57 }
 0xc78   :  { %v6229_v22 = vpop.eup %6228 }
 0xc79   :  { %v3681_v32 = vmul.f32 %v6229_v22, %v6227_v39 }
 0xc7b   :  { %3683 = vst [vmem:[#allocation10 + $0x18] sm:$0xff] %v3681_v32  ;;  %3817 = vmatmul.mubr.f32.vlgmr.msra.gmra.mrb[24].mxu0 %v3681_v32  ;;  %3888 = vmatmul.mubr.f32.vlgmr.msra.gmra.mrb[24].mxu1 %v3681_v32 }
 0xc7c   :  { %5708 = vmatpush1.bf16.msra.mxu0 %v7434_v55  ;;  %5740 = vmatpush1.bf16.msra.mxu1 %v7437_v26 }
 0xc7d   :  { %5710 = vmatprep.subr.bf16.mxu0 %v7442_v53  ;;  %5742 = vmatprep.subr.bf16.mxu1 %v7444_v5 }
 0xc7e   :  { %4056 = vmatprep.mubr.f32.mxu0 %v6443_v0  ;;  %4127 = vmatprep.mubr.f32.mxu1 %v6443_v0 }
 0xc80   :  { %5712 = vmatpush1.bf16.msra.mxu0 %v7446_v56  ;;  %5744 = vmatpush1.bf16.msra.mxu1 %v7449_v34 }
 0xc81   :  { %5714 = vmatprep.subr.bf16.mxu0 %v7454_v28  ;;  %5746 = vmatprep.subr.bf16.mxu1 %v7456_v9 }
 0xc84   :  { %5716 = vmatpush1.bf16.msra.mxu0 %v7458_v44  ;;  %5748 = vmatpush1.bf16.msra.mxu1 %v7461_v27 }
 0xc85   :  { %5718 = vmatprep.subr.bf16.mxu0 %v7466_v20  ;;  %5750 = vmatprep.subr.bf16.mxu1 %v7468_v12 }
 0xc88   :  { %5720 = vmatpush1.bf16.msra.mxu0 %v7470_v58  ;;  %5752 = vmatpush1.bf16.msra.mxu1 %v7473_v49 }
 0xc89   :  { %5722 = vmatprep.subr.bf16.mxu0 %v7478_v41  ;;  %5754 = vmatprep.subr.bf16.mxu1 %v7480_v1 }
 0xc8c   :  { %5724 = vmatpush1.bf16.msra.mxu0 %v7482_v51  ;;  %5756 = vmatpush1.bf16.msra.mxu1 %v7485_v18 }
 0xc8d   :  { %5726 = vmatprep.subr.bf16.mxu0 %v7490_v14  ;;  %5758 = vmatprep.subr.bf16.mxu1 %v7492_v40 }
 0xc90   :  { %5728 = vmatpush1.bf16.msra.mxu0 %v7494_v7  ;;  %5760 = vmatpush1.bf16.msra.mxu1 %v7497_v24 }
 0xc91   :  { %5730 = vmatprep.subr.bf16.mxu0 %v7501_v11  ;;  %5762 = vmatprep.subr.bf16.mxu1 %v7503_v46 }
 0xc94   :  { %5732 = vmatpush1.bf16.msra.mxu0 %v7506_v8  ;;  %5764 = vmatpush1.bf16.msra.mxu1 %v7510_v50 }
 0xc95   :  { %5734 = vmatprep.subr.bf16.mxu0 %v7512_v61  ;;  %5766 = vmatprep.subr.bf16.mxu1 %v7514_v62 }
 0xc98   :  { %5736 = vmatpush1.bf16.msra.mxu0 %v7517_v37  ;;  %5768 = vmatpush1.bf16.msra.mxu1 %v7521_v45 }
 0xc99   :  { %5770 = vmatprep.subr.bf16.mxu0 %v7430_v35  ;;  %5802 = vmatprep.subr.bf16.mxu1 %v7432_v52 }
 0xd4e   :  { %v3818_v47 = vpop.f32.mrb[24].mxu0  ;;  %v3889_v48 = vpop.f32.mrb[24].mxu1 }
 0xd4f   :  { %v5937_v54 = vadd.f32 %v3818_v47, %v7325_v59  ;;  %v3820_v6 = vpop.f32.mrb[25].mxu0  ;;  %v3891_v36 = vpop.f32.mrb[25].mxu1  ;;  %v5953_v31 = vadd.f32 %v3889_v48, %v7335_v29 }
 0xd50   :  { %v5938_v19 = vadd.f32 %v3820_v6, %v7329_v17  ;;  %v5954_v10 = vadd.f32 %v3891_v36, %v7340_v13 }
 0xd51   :  { %v4787_v3 = vmul.f32 -1.442695, %v5937_v54  ;;  %v4789_v25 = vmul.f32 -1.442695, %v5953_v31 }
 0xd52   :  { %v4788_v43 = vmul.f32 -1.442695, %v5938_v19 }
 0xd53   :  { %6230 = vpow2.f32 %v4787_v3 }
 0xd54   :  { %6232 = vpow2.f32 %v4788_v43 }
 0xd55   :  { %6234 = vtanh.f32 %v5954_v10 }
 0xd56   :  { %6236 = vpow2.f32 %v4789_v25 }
 0xd5d   :  { %v6231_v42 = vpop.eup %6230 }
 0xd5e   :  { %v3907_v21 = vadd.f32 1.0, %v6231_v42  ;;  %v6233_v16 = vpop.eup %6232 }
 0xd5f   :  { %v3908_v30 = vadd.f32 1.0, %v6233_v16  ;;  %v6235_v63 = vpop.eup %6234 }
 0xd60   :  { %6238 = vrcp.f32 %v3907_v21  ;;  %v6237_v23 = vpop.eup %6236 }
 0xd61   :  { %6240 = vrcp.f32 %v3908_v30  ;;  %v3909_v38 = vadd.f32 1.0, %v6237_v23 }
 0xd63   :  { %6242 = vrcp.f32 %v3909_v38 }
 0xd6a   :  { %v6239_v60 = vpop.eup %6238 }
 0xd6b   :  { %v3918_v4 = vmul.f32 %v6239_v60, %v6235_v63  ;;  %v6241_v2 = vpop.eup %6240 }
 0xd6c   :  { %v3917_v33 = vmul.f32 %v6241_v2, %v7533_v57 }
 0xd6d   :  { %v6243_v39 = vpop.eup %6242 }
 0xd6e   :  { %v7575_v15 = vadd.f32 %v3918_v4, %v3917_v33 }
 0xd70   :  { %6244 = vtanh.f32 %v7575_v15 }
 0xd7a   :  { %v6245_v22 = vpop.eup %6244 }
 0xd7b   :  { %v3921_v32 = vmul.f32 %v6245_v22, %v6243_v39 }
 0xd7d   :  { %3923 = vst [vmem:[#allocation10 + $0x20] sm:$0xff] %v3921_v32  ;;  %4057 = vmatmul.mubr.f32.vlgmr.msra.gmra.mrb[26].mxu0 %v3921_v32  ;;  %4128 = vmatmul.mubr.f32.vlgmr.msra.gmra.mrb[26].mxu1 %v3921_v32 }
 0xd7e   :  { %5772 = vmatpush1.bf16.msra.mxu0 %v7434_v55  ;;  %5804 = vmatpush1.bf16.msra.mxu1 %v7437_v26 }
 0xd7f   :  { %5774 = vmatprep.subr.bf16.mxu0 %v7442_v53  ;;  %5806 = vmatprep.subr.bf16.mxu1 %v7444_v5 }
 0xd80   :  { %4296 = vmatprep.mubr.f32.mxu0 %v6443_v0  ;;  %4367 = vmatprep.mubr.f32.mxu1 %v6443_v0 }
 0xd82   :  { %5776 = vmatpush1.bf16.msra.mxu0 %v7446_v56  ;;  %5808 = vmatpush1.bf16.msra.mxu1 %v7449_v34 }
 0xd83   :  { %5778 = vmatprep.subr.bf16.mxu0 %v7454_v28  ;;  %5810 = vmatprep.subr.bf16.mxu1 %v7456_v9 }
 0xd86   :  { %5780 = vmatpush1.bf16.msra.mxu0 %v7458_v44  ;;  %5812 = vmatpush1.bf16.msra.mxu1 %v7461_v27 }
 0xd87   :  { %5782 = vmatprep.subr.bf16.mxu0 %v7466_v20  ;;  %5814 = vmatprep.subr.bf16.mxu1 %v7468_v12 }
 0xd8a   :  { %5784 = vmatpush1.bf16.msra.mxu0 %v7470_v58  ;;  %5816 = vmatpush1.bf16.msra.mxu1 %v7473_v49 }
 0xd8b   :  { %5786 = vmatprep.subr.bf16.mxu0 %v7478_v41  ;;  %5818 = vmatprep.subr.bf16.mxu1 %v7480_v1 }
 0xd8e   :  { %5788 = vmatpush1.bf16.msra.mxu0 %v7482_v51  ;;  %5820 = vmatpush1.bf16.msra.mxu1 %v7485_v18 }
 0xd8f   :  { %5790 = vmatprep.subr.bf16.mxu0 %v7490_v14  ;;  %5822 = vmatprep.subr.bf16.mxu1 %v7492_v40 }
 0xd92   :  { %5792 = vmatpush1.bf16.msra.mxu0 %v7494_v7  ;;  %5824 = vmatpush1.bf16.msra.mxu1 %v7497_v24 }
 0xd93   :  { %5794 = vmatprep.subr.bf16.mxu0 %v7501_v11  ;;  %5826 = vmatprep.subr.bf16.mxu1 %v7503_v46 }
 0xd96   :  { %5796 = vmatpush1.bf16.msra.mxu0 %v7506_v8  ;;  %5828 = vmatpush1.bf16.msra.mxu1 %v7510_v50 }
 0xd97   :  { %5798 = vmatprep.subr.bf16.mxu0 %v7512_v61  ;;  %5830 = vmatprep.subr.bf16.mxu1 %v7514_v62 }
 0xd9a   :  { %5800 = vmatpush1.bf16.msra.mxu0 %v7517_v37  ;;  %5832 = vmatpush1.bf16.msra.mxu1 %v7521_v45 }
 0xd9b   :  { %5834 = vmatprep.subr.bf16.mxu0 %v7430_v35  ;;  %5866 = vmatprep.subr.bf16.mxu1 %v7432_v52 }
 0xe50   :  { %v4058_v57 = vpop.f32.mrb[26].mxu0  ;;  %v4129_v47 = vpop.f32.mrb[26].mxu1 }
 0xe51   :  { %v5939_v48 = vadd.f32 %v4058_v57, %v7325_v59  ;;  %v4060_v54 = vpop.f32.mrb[27].mxu0  ;;  %v4131_v6 = vpop.f32.mrb[27].mxu1  ;;  %v5955_v43 = vadd.f32 %v4129_v47, %v7335_v29 }
 0xe52   :  { %v5940_v36 = vadd.f32 %v4060_v54, %v7329_v17  ;;  %v5956_v31 = vadd.f32 %v4131_v6, %v7340_v13 }
 0xe53   :  { %v4790_v19 = vmul.f32 -1.442695, %v5939_v48  ;;  %v4792_v10 = vmul.f32 -1.442695, %v5955_v43 }
 0xe54   :  { %v4791_v3 = vmul.f32 -1.442695, %v5940_v36 }
 0xe55   :  { %6246 = vpow2.f32 %v4790_v19 }
 0xe56   :  { %6248 = vpow2.f32 %v4791_v3 }
 0xe57   :  { %6250 = vtanh.f32 %v5956_v31 }
 0xe58   :  { %6252 = vpow2.f32 %v4792_v10 }
 0xe5f   :  { %v6247_v35 = vpop.eup %6246 }
 0xe60   :  { %v4147_v25 = vadd.f32 1.0, %v6247_v35  ;;  %v6249_v52 = vpop.eup %6248 }
 0xe61   :  { %v4148_v42 = vadd.f32 1.0, %v6249_v52  ;;  %v6251_v21 = vpop.eup %6250 }
 0xe62   :  { %6254 = vrcp.f32 %v4147_v25  ;;  %v6253_v16 = vpop.eup %6252 }
 0xe63   :  { %6256 = vrcp.f32 %v4148_v42  ;;  %v4149_v60 = vadd.f32 1.0, %v6253_v16 }
 0xe65   :  { %6258 = vrcp.f32 %v4149_v60 }
 0xe6c   :  { %v6255_v30 = vpop.eup %6254 }
 0xe6d   :  { %v4158_v63 = vmul.f32 %v6255_v30, %v6251_v21  ;;  %v6257_v23 = vpop.eup %6256 }
 0xe6e   :  { %v4157_v4 = vmul.f32 %v6257_v23, %v7575_v15 }
 0xe6f   :  { %v6259_v38 = vpop.eup %6258 }
 0xe70   :  { %v7617_v2 = vadd.f32 %v4158_v63, %v4157_v4 }
 0xe72   :  { %6260 = vtanh.f32 %v7617_v2 }
 0xe7c   :  { %v6261_v33 = vpop.eup %6260 }
 0xe7d   :  { %v4161_v39 = vmul.f32 %v6261_v33, %v6259_v38 }
 0xe7f   :  { %4163 = vst [vmem:[#allocation10 + $0x28] sm:$0xff] %v4161_v39  ;;  %4297 = vmatmul.mubr.f32.vlgmr.msra.gmra.mrb[28].mxu0 %v4161_v39  ;;  %4368 = vmatmul.mubr.f32.vlgmr.msra.gmra.mrb[28].mxu1 %v4161_v39 }
 0xe80   :  { %5836 = vmatpush1.bf16.msra.mxu0 %v7434_v55  ;;  %5868 = vmatpush1.bf16.msra.mxu1 %v7437_v26 }
 0xe81   :  { %5838 = vmatprep.subr.bf16.mxu0 %v7442_v53  ;;  %5870 = vmatprep.subr.bf16.mxu1 %v7444_v5 }
 0xe82   :  { %4536 = vmatprep.mubr.f32.mxu0 %v6443_v0  ;;  %4607 = vmatprep.mubr.f32.mxu1 %v6443_v0 }
 0xe84   :  { %5840 = vmatpush1.bf16.msra.mxu0 %v7446_v56  ;;  %5872 = vmatpush1.bf16.msra.mxu1 %v7449_v34 }
 0xe85   :  { %5842 = vmatprep.subr.bf16.mxu0 %v7454_v28  ;;  %5874 = vmatprep.subr.bf16.mxu1 %v7456_v9 }
 0xe88   :  { %5844 = vmatpush1.bf16.msra.mxu0 %v7458_v44  ;;  %5876 = vmatpush1.bf16.msra.mxu1 %v7461_v27 }
 0xe89   :  { %5846 = vmatprep.subr.bf16.mxu0 %v7466_v20  ;;  %5878 = vmatprep.subr.bf16.mxu1 %v7468_v12 }
 0xe8c   :  { %5848 = vmatpush1.bf16.msra.mxu0 %v7470_v58  ;;  %5880 = vmatpush1.bf16.msra.mxu1 %v7473_v49 }
 0xe8d   :  { %5850 = vmatprep.subr.bf16.mxu0 %v7478_v41  ;;  %5882 = vmatprep.subr.bf16.mxu1 %v7480_v1 }
 0xe90   :  { %5852 = vmatpush1.bf16.msra.mxu0 %v7482_v51  ;;  %5884 = vmatpush1.bf16.msra.mxu1 %v7485_v18 }
 0xe91   :  { %5854 = vmatprep.subr.bf16.mxu0 %v7490_v14  ;;  %5886 = vmatprep.subr.bf16.mxu1 %v7492_v40 }
 0xe94   :  { %5856 = vmatpush1.bf16.msra.mxu0 %v7494_v7  ;;  %5888 = vmatpush1.bf16.msra.mxu1 %v7497_v24 }
 0xe95   :  { %5858 = vmatprep.subr.bf16.mxu0 %v7501_v11  ;;  %5890 = vmatprep.subr.bf16.mxu1 %v7503_v46 }
 0xe98   :  { %5860 = vmatpush1.bf16.msra.mxu0 %v7506_v8  ;;  %5892 = vmatpush1.bf16.msra.mxu1 %v7510_v50 }
 0xe99   :  { %5862 = vmatprep.subr.bf16.mxu0 %v7512_v61  ;;  %5894 = vmatprep.subr.bf16.mxu1 %v7514_v62 }
 0xe9c   :  { %5864 = vmatpush1.bf16.msra.mxu0 %v7517_v37  ;;  %5896 = vmatpush1.bf16.msra.mxu1 %v7521_v45 }
 0xf52   :  { %v4298_v0 = vpop.f32.mrb[28].mxu0  ;;  %v4369_v55 = vpop.f32.mrb[28].mxu1 }
 0xf53   :  { %v5941_v26 = vadd.f32 %v4298_v0, %v7325_v59  ;;  %v4300_v53 = vpop.f32.mrb[29].mxu0  ;;  %v4371_v5 = vpop.f32.mrb[29].mxu1  ;;  %v5957_v9 = vadd.f32 %v4369_v55, %v7335_v29 }
 0xf54   :  { %v5942_v56 = vadd.f32 %v4300_v53, %v7329_v17  ;;  %v5958_v44 = vadd.f32 %v4371_v5, %v7340_v13 }
 0xf55   :  { %v4793_v34 = vmul.f32 -1.442695, %v5941_v26  ;;  %v4795_v27 = vmul.f32 -1.442695, %v5957_v9 }
 0xf56   :  { %v4794_v28 = vmul.f32 -1.442695, %v5942_v56 }
 0xf57   :  { %6262 = vpow2.f32 %v4793_v34 }
 0xf58   :  { %6264 = vpow2.f32 %v4794_v28 }
 0xf59   :  { %6266 = vtanh.f32 %v5958_v44 }
 0xf5a   :  { %6268 = vpow2.f32 %v4795_v27 }
 0xf61   :  { %v6263_v20 = vpop.eup %6262 }
 0xf62   :  { %v4387_v12 = vadd.f32 1.0, %v6263_v20  ;;  %v6265_v58 = vpop.eup %6264 }
 0xf63   :  { %v4388_v49 = vadd.f32 1.0, %v6265_v58  ;;  %v6267_v41 = vpop.eup %6266 }
 0xf64   :  { %6270 = vrcp.f32 %v4387_v12  ;;  %v6269_v1 = vpop.eup %6268 }
 0xf65   :  { %6272 = vrcp.f32 %v4388_v49  ;;  %v4389_v40 = vadd.f32 1.0, %v6269_v1 }
 0xf67   :  { %6274 = vrcp.f32 %v4389_v40 }
 0xf6e   :  { %v6271_v51 = vpop.eup %6270 }
 0xf6f   :  { %v4398_v18 = vmul.f32 %v6271_v51, %v6267_v41  ;;  %v6273_v14 = vpop.eup %6272 }
 0xf70   :  { %v4397_v7 = vmul.f32 %v6273_v14, %v7617_v2 }
 0xf71   :  { %v6275_v11 = vpop.eup %6274 }
 0xf72   :  { %v4399_v24 = vadd.f32 %v4398_v18, %v4397_v7 }
 0xf74   :  { %6276 = vtanh.f32 %v4399_v24 }
 0xf7e   :  { %v6277_v46 = vpop.eup %6276 }
 0xf7f   :  { %v4401_v8 = vmul.f32 %v6277_v46, %v6275_v11 }
 0xf81   :  { %4403 = vst [vmem:[#allocation10 + $0x30] sm:$0xff] %v4401_v8  ;;  %4537 = vmatmul.mubr.f32.vlgmr.msra.gmra.mrb[30].mxu0 %v4401_v8  ;;  %4608 = vmatmul.mubr.f32.vlgmr.msra.gmra.mrb[30].mxu1 %v4401_v8 }
0x1054   :  { %v4538_v50 = vpop.f32.mrb[30].mxu0  ;;  %v4609_v61 = vpop.f32.mrb[30].mxu1 }
0x1055   :  { %v5943_v62 = vadd.f32 %v4538_v50, %v7325_v59  ;;  %v4540_v37 = vpop.f32.mrb[31].mxu0  ;;  %v4611_v45 = vpop.f32.mrb[31].mxu1  ;;  %v5959_v57 = vadd.f32 %v4609_v61, %v7335_v29 }
0x1056   :  { %v5944_v15 = vadd.f32 %v4540_v37, %v7329_v17  ;;  %v5960_v47 = vadd.f32 %v4611_v45, %v7340_v13 }
0x1057   :  { %v4796_v22 = vmul.f32 -1.442695, %v5943_v62  ;;  %v4798_v48 = vmul.f32 -1.442695, %v5959_v57 }
0x1058   :  { %v4797_v32 = vmul.f32 -1.442695, %v5944_v15 }
0x1059   :  { %6278 = vpow2.f32 %v4796_v22 }
0x105a   :  { %6280 = vpow2.f32 %v4797_v32 }
0x105b   :  { %6282 = vtanh.f32 %v5960_v47 }
0x105c   :  { %6284 = vpow2.f32 %v4798_v48 }
0x1063   :  { %v6279_v54 = vpop.eup %6278 }
0x1064   :  { %v4627_v6 = vadd.f32 1.0, %v6279_v54  ;;  %v6281_v36 = vpop.eup %6280 }
0x1065   :  { %v4628_v59 = vadd.f32 1.0, %v6281_v36  ;;  %v6283_v19 = vpop.eup %6282 }
0x1066   :  { %6286 = vrcp.f32 %v4627_v6  ;;  %v6285_v3 = vpop.eup %6284 }
0x1067   :  { %6288 = vrcp.f32 %v4628_v59  ;;  %v4629_v10 = vadd.f32 1.0, %v6285_v3 }
0x1069   :  { %6290 = vrcp.f32 %v4629_v10 }
0x1070   :  { %v6287_v17 = vpop.eup %6286 }
0x1071   :  { %v4638_v43 = vmul.f32 %v6287_v17, %v6283_v19  ;;  %v6289_v31 = vpop.eup %6288 }
0x1072   :  { %v4637_v35 = vmul.f32 %v6289_v31, %v4399_v24 }
0x1073   :  { %v6291_v29 = vpop.eup %6290 }
0x1074   :  { %v4639_v25 = vadd.f32 %v4638_v43, %v4637_v35 }
0x1076   :  { %6292 = vtanh.f32 %v4639_v25  ;;  %4645 = vst [vmem:[#allocation13 + $0x8] sm:$0xff] %v4639_v25 }
0x1080   :  { %v6293_v13 = vpop.eup %6292 }
0x1081   :  { %v4641_v52 = vmul.f32 %v6293_v13, %v6291_v29 }
0x1083   :  { %4646 = vadd.xlane.f32.xlu0 %v4641_v52  ;;  %4643 = vst [vmem:[#allocation10 + $0x38] sm:$0xff] %v4641_v52  ;;  %v4649_v42 = vmul.f32 %v4641_v52, %v4641_v52 }
0x1085   :  { %4650 = vadd.xlane.f32.xlu1 %v4649_v42 }
0x1086   :  { %6375 = shalt.err (!%p6372_p0)
}
0x1087   :  { %s6376_s15 = scalar_lea.hbm %s7728_s9, 1024 }
0x1088   :  { %p6377_p1 = scmp.ne.s32.totalorder %s7728_s9, %s6376_s15  ;;  %p6380_p2 = scmp.lt.u32.totalorder %s6376_s15, %s7728_s9 }
0x108a   :  { %p6382_p3 = pnand %p6380_p2, %p6377_p1 }
0x108c   :  { %6385 = shalt.err (!%p6382_p3)
}
0x108d   :  { %s6445_s19 = smov 128   ;;  %s6446_s21 = smov 8   ;;  %v6296_v39 = vld [vmem:[%s7726_s7] ss:$0 sm:$0xff] }
0x108e   :  { %4688 = dma.vmem_to_hbm [thread:$0]  %s4683_s12, 1024, %s7728_s9, [#allocation6], %s6445_s19, %s6445_s19, %s6446_s21  }
0x108f   :  { %s6447_s4 = smov [#allocation11]   ;;  %s6448_s0 = smov [#allocation13]   ;;  %v6297_v55 = vld [vmem:[%s7727_s8] ss:$0 sm:$0xff] }
0x1090   :  { %s4694_s5 = sshll.u32 %s6447_s4, 4  ;;  %s4706_s9 = sshll.u32 %s6448_s0, 4  ;;  %s4695_s5 = int_to_ptr.vmem [resolvable:$true] %s4694_s5  ;;  %s7682_s9 = int_to_ptr.vmem [resolvable:$true] %s4706_s9 }
0x1091   :  { %s6386_s24 = scalar_lea.vmem %s4695_s5, 256  ;;  %p6391_p5 = scmp.lt.s32.totalorder %s4695_s5, %s4695_s5 }
0x1092   :  { %p6387_p4 = scmp.ne.s32.totalorder %s4695_s5, %s6386_s24  ;;  %p6392_p6 = scmp.lt.s32.totalorder %s6386_s24, %s6386_s24 }
0x1094   :  { %p6393_p7 = por %p6392_p6, %p6391_p5 }
0x1096   :  { %p6394_p8 = pnand %p6393_p7, %p6387_p4 }
0x1110   :  { %v4647_v21 = vpop.xlane.xlu0 %4646 }
0x1111   :  { %v4648_v16 = vmul.f32 0.03125, %v4647_v21 }
0x1112   :  { %v4651_v30 = vpop.xlane.xlu1 %4650 }
0x1113   :  { %v4653_v63 = vmul.f32 %v4648_v16, %v4648_v16  ;;  %v4652_v23 = vmul.f32 0.03125, %v4651_v30  ;;  %v4655_v2 = vsub.f32 %v4641_v52, %v4648_v16 }
0x1115   :  { %v4654_v60 = vsub.f32 %v4652_v23, %v4653_v63 }
0x1117   :  { %v4656_v4 = vadd.f32 1e-05, %v4654_v60 }
0x1119   :  { %6294 = vrsqrt.f32 %v4656_v4 }
0x1123   :  { %v6295_v38 = vpop.eup %6294 }
0x1124   :  { %v4658_v33 = vmul.f32 %v6295_v38, %v4655_v2 }
0x1126   :  { %v4666_v0 = vmul.f32 %v6296_v39, %v4658_v33 }
0x1128   :  { %v4674_v26 = vadd.f32 %v6297_v55, %v4666_v0 }
0x112a   :  { %4676 = vst [vmem:[#allocation11 + $0x8] sm:$0xff] %v4674_v26 }
0x112b   :  { %6397 = shalt.err (!%p6394_p8)
}
0x112c   :  { %s6398_s26 = scalar_lea.hbm %s7729_s10, 256 }
0x112d   :  { %p6399_p9 = scmp.ne.s32.totalorder %s7729_s10, %s6398_s26  ;;  %p6402_p10 = scmp.lt.u32.totalorder %s6398_s26, %s7729_s10 }
0x112f   :  { %p6404_p11 = pnand %p6402_p10, %p6399_p9 }
0x1131   :  { %6407 = shalt.err (!%p6404_p11)
}
0x1132   :  { %4700 = dma.vmem_to_hbm [thread:$0]  %s4695_s5, 256, %s7729_s10, [#allocation12], %s6445_s19, %s6445_s19, %s6446_s21  }
0x1133   :  { %s6408_s14 = scalar_lea.vmem %s7682_s9, 256  ;;  %p6413_p13 = scmp.lt.s32.totalorder %s7682_s9, %s7682_s9 }
0x1134   :  { %p6409_p12 = scmp.ne.s32.totalorder %s7682_s9, %s6408_s14  ;;  %p6414_p0 = scmp.lt.s32.totalorder %s6408_s14, %s6408_s14 }
0x1136   :  { %p6415_p1 = por %p6414_p0, %p6413_p13 }
0x1138   :  { %p6416_p2 = pnand %p6415_p1, %p6409_p12 }
0x113a   :  { %6419 = shalt.err (!%p6416_p2)
}
0x113b   :  { %s6420_s16 = scalar_lea.hbm %s7730_s11, 256 }
0x113c   :  { %p6421_p3 = scmp.ne.s32.totalorder %s7730_s11, %s6420_s16  ;;  %p6424_p4 = scmp.lt.u32.totalorder %s6420_s16, %s7730_s11 }
0x113e   :  { %p6426_p5 = pnand %p6424_p4, %p6421_p3 }
0x1140   :  { %6429 = shalt.err (!%p6426_p5)
}
0x1141   :  { %4712 = dma.vmem_to_hbm [thread:$0]  %s7682_s9, 256, %s7730_s11, [#allocation12], %s6445_s19, %s6445_s19, %s6446_s21  }
0x1142   :  { %6434 = dma.done.wait [#allocation6], 1024  }
0x1143   :  { %6435 = vsyncadd [#allocation6], 4294966272 }
0x1144   :  { %6436 = dma.done.wait [#allocation12], 512  }
0x1145   :  { %6437 = vsyncadd [#allocation12], 4294966784 }
0x1146   :  { %4722 = vsyncpa [#allocation5], 1 }
0x1147   :  { %4723 = vsyncpa [#allocation8], 1 }
0x1148   :  { %4724 = vsyncpa [#allocation6], 1 }
0x1149   :  { %4725 = vsyncpa [#allocation12], 1 }

</bundles_post_ra>
